<compile_context>
chip_gen: v5e
topology: v5e:2x2
jax: 0.10.0
libtpu: 0.0.40
codegen_flags: <defaults>
</compile_context>

<pallas_src>
import numpy as np

import jax
import jax.numpy as jnp
from jax.experimental import pallas as pl
from jax.experimental.pallas import tpu as pltpu

BT = 8  # images per grid step


# ----------------------------------------------------------------------------
# Fused forward-pass kernel (one grid step == BT images)
# ----------------------------------------------------------------------------
def _net_fused_kernel(x_ref,      # (BT*28, 28)          f32  batch-stacked image rows
                      b1m_ref,    # (5, 28, 240)         bf16 conv1 banded weights
                      sw1_ref,    # (2, 240, 120)        bf16 pool1 W-select (even/odd)
                      sh1_ref,    # (2, BT*12, BT*28-4)  bf16 pool1 H-select (even/odd)
                      b1t_ref,    # (1, 120)             f32  conv1 bias, W-tiled
                      b2m_ref,    # (5, 120, 160)        bf16 conv2 banded weights
                      sw2_ref,    # (2, 160, 80)         bf16 pool2 W-select
                      sh2_ref,    # (2, 4*BT, BT*12-4)   bf16 pool2 H-select (i2-major rows)
                      b2t_ref,    # (1, 80)              f32  conv2 bias, W-tiled
                      g1_ref,     # (4, 80, 50)          bf16 fc1 weights, regrouped
                      fb1_ref,    # (1, 50)              f32  fc1 bias
                      w2t_ref,    # (50, 10)             bf16 fc2 weights (transposed)
                      fb2_ref,    # (1, 10)              f32  fc2 bias
                      out_ref):   # (BT, 10)             f32  log-probabilities
    f32, bf16 = jnp.float32, jnp.bfloat16

    rows = x_ref.shape[0]            # BT*28
    n1 = rows - 4                    # valid conv1 rows in the stacked layout

    # ---- conv1 (1->10, k=5): 5 banded MXU matmuls over the batch slab ----
    x_bf = x_ref[...].astype(bf16)                            # hoisted cast
    a1 = jnp.dot(x_bf[0:n1, :], b1m_ref[0], preferred_element_type=f32)
    for ki in range(1, 5):
        a1 = a1 + jnp.dot(x_bf[ki:ki + n1, :], b1m_ref[ki],
                          preferred_element_type=f32)         # (BT*28-4, 240)

    # ---- fused 2x2 max-pool + bias + ReLU (bf16 0/1 selects, f32 max) ----
    a1_bf = a1.astype(bf16)
    pw1 = jnp.maximum(jnp.dot(a1_bf, sw1_ref[0], preferred_element_type=f32),
                      jnp.dot(a1_bf, sw1_ref[1], preferred_element_type=f32))
    pw1_bf = pw1.astype(bf16)
    p1 = jnp.maximum(jnp.dot(sh1_ref[0], pw1_bf, preferred_element_type=f32),
                     jnp.dot(sh1_ref[1], pw1_bf, preferred_element_type=f32))
    p1 = jnp.maximum(p1 + b1t_ref[...], 0.0)                  # (BT*12, 120)

    # ---- conv2 (10->20, k=5): same banded trick; conv2_drop = identity ----
    p1_bf = p1.astype(bf16)                                   # hoisted cast
    n2 = p1.shape[0] - 4
    a2 = jnp.dot(p1_bf[0:n2, :], b2m_ref[0], preferred_element_type=f32)
    for ki in range(1, 5):
        a2 = a2 + jnp.dot(p1_bf[ki:ki + n2, :], b2m_ref[ki],
                          preferred_element_type=f32)         # (BT*12-4, 160)

    a2_bf = a2.astype(bf16)
    pw2 = jnp.maximum(jnp.dot(a2_bf, sw2_ref[0], preferred_element_type=f32),
                      jnp.dot(a2_bf, sw2_ref[1], preferred_element_type=f32))
    pw2_bf = pw2.astype(bf16)
    p2 = jnp.maximum(jnp.dot(sh2_ref[0], pw2_bf, preferred_element_type=f32),
                     jnp.dot(sh2_ref[1], pw2_bf, preferred_element_type=f32))
    p2 = jnp.maximum(p2 + b2t_ref[...], 0.0)                  # (4*BT, 80), row = i2*BT + b

    # ---- fc1 (320->50)+ReLU: 4 aligned row slices, independent dots, tree-sum ----
    p2_bf = p2.astype(bf16)
    nbt = p2.shape[0] // 4                                    # == BT
    d = [jnp.dot(p2_bf[i2 * nbt:(i2 + 1) * nbt, :], g1_ref[i2],
                 preferred_element_type=f32) for i2 in range(4)]
    h = (d[0] + d[1]) + (d[2] + d[3]) + fb1_ref[...]
    h = jnp.maximum(h, 0.0)                                   # (BT, 50)
    # F.dropout(training=False) is identity in eval mode.

    # ---- fc2 (50->10) + numerically stable log_softmax (f32) ----
    logits = jnp.dot(h.astype(bf16), w2t_ref[...],
                     preferred_element_type=f32) + fb2_ref[...]   # (BT, 10)
    m = jnp.max(logits, axis=-1, keepdims=True)
    s = logits - m
    lse = jnp.log(jnp.sum(jnp.exp(s), axis=-1, keepdims=True))
    out_ref[...] = (s - lse).astype(out_ref.dtype)


# ----------------------------------------------------------------------------
# Wrapper: one pallas_call, grid over batch tiles of BT images
# ----------------------------------------------------------------------------
def net_forward(x, prep):
    """x: (B, 1, 28, 28) float32 -> log-probabilities (B, 10)."""
    B = x.shape[0]
    Bp = ((B + BT - 1) // BT) * BT
    xr = x.reshape(B, 28 * 28).astype(jnp.float32)
    if Bp != B:  # pad batch to a multiple of BT
        xr = jnp.concatenate(
            [xr, jnp.zeros((Bp - B, 28 * 28), jnp.float32)], axis=0)
    xf = xr.reshape(Bp * 28, 28)   # images stacked along the sublane axis

    (b1m, sw1, sh1, b1t, b2m, sw2, sh2, b2t, g1, fb1, w2t, fb2) = prep

    c2 = lambda b: (0, 0)
    c3 = lambda b: (0, 0, 0)
    out = pl.pallas_call(
        _net_fused_kernel,
        out_shape=jax.ShapeDtypeStruct((Bp, 10), jnp.float32),
        grid=(Bp // BT,),
        in_specs=[
            pl.BlockSpec((BT * 28, 28), lambda b: (b, 0)),
            pl.BlockSpec(b1m.shape, c3),
            pl.BlockSpec(sw1.shape, c3),
            pl.BlockSpec(sh1.shape, c3),
            pl.BlockSpec(b1t.shape, c2),
            pl.BlockSpec(b2m.shape, c3),
            pl.BlockSpec(sw2.shape, c3),
            pl.BlockSpec(sh2.shape, c3),
            pl.BlockSpec(b2t.shape, c2),
            pl.BlockSpec(g1.shape, c3),
            pl.BlockSpec(fb1.shape, c2),
            pl.BlockSpec(w2t.shape, c2),
            pl.BlockSpec(fb2.shape, c2),
        ],
        out_specs=pl.BlockSpec((BT, 10), lambda b: (b, 0)),
        compiler_params=pltpu.CompilerParams(
            dimension_semantics=("parallel",)),
    )(xf, b1m, sw1, sh1, b1t, b2m, sw2, sh2, b2t, g1, fb1, w2t, fb2)
    return out[:B]


# ----------------------------------------------------------------------------
# One-time host-side weight repack (constant w.r.t. the input batch)
# ----------------------------------------------------------------------------
def prepare_params(params, bt=BT):
    w1 = np.asarray(params["conv1_w"], np.float32)    # (10, 1, 5, 5)
    b1 = np.asarray(params["conv1_b"], np.float32)    # (10,)
    w2 = np.asarray(params["conv2_w"], np.float32)    # (20, 10, 5, 5)
    b2 = np.asarray(params["conv2_b"], np.float32)    # (20,)
    f1 = np.asarray(params["fc1_w"], np.float32)      # (50, 320)
    fb1 = np.asarray(params["fc1_b"], np.float32)     # (50,)
    f2 = np.asarray(params["fc2_w"], np.float32)      # (10, 50)
    fb2 = np.asarray(params["fc2_b"], np.float32)     # (10,)

    # conv1 banded: a1[r, ow*10+co] = sum_ki sum_w' x[r+ki, w'] * B1[ki][w', ow*10+co]
    B1 = np.zeros((5, 28, 240), np.float32)
    for ki in range(5):
        for ow in range(24):
            for kj in range(5):
                B1[ki, ow + kj, ow * 10:(ow + 1) * 10] = w1[:, 0, ki, kj]

    # conv2 banded: a2[r, q*20+co] = sum_ki sum_{j,ci} p1[r+ki, j*10+ci] * B2[ki][...]
    B2 = np.zeros((5, 120, 160), np.float32)
    for ki in range(5):
        for q in range(8):
            for kj in range(5):
                for ci in range(10):
                    B2[ki, (q + kj) * 10 + ci, q * 20:(q + 1) * 20] = w2[:, ci, ki, kj]

    # Width-decimation (even/odd column-group) 0/1 selects; exact in bf16.
    def w_select(n_out_w, n_ch):
        s = np.zeros((2, 2 * n_out_w * n_ch, n_out_w * n_ch), np.float32)
        for j in range(n_out_w):
            for c in range(n_ch):
                s[0, (2 * j) * n_ch + c, j * n_ch + c] = 1.0
                s[1, (2 * j + 1) * n_ch + c, j * n_ch + c] = 1.0
        return s

    SW1 = w_select(12, 10)          # (2, 240, 120)
    SW2 = w_select(4, 20)           # (2, 160, 80)

    # Height-decimation (even/odd row) 0/1 selects over batch-stacked rows.
    # Pool1: input rows b*28 + oh (oh valid 0..23) -> output row b*12 + i.
    SH1 = np.zeros((2, bt * 12, bt * 28 - 4), np.float32)
    for b in range(bt):
        for i in range(12):
            SH1[0, b * 12 + i, b * 28 + 2 * i] = 1.0
            SH1[1, b * 12 + i, b * 28 + 2 * i + 1] = 1.0
    # Pool2: input rows b*12 + p (p valid 0..7) -> output row i2*bt + b
    # (i2-major so fc1 uses 4 aligned contiguous row slices).
    SH2 = np.zeros((2, 4 * bt, bt * 12 - 4), np.float32)
    for b in range(bt):
        for i2 in range(4):
            SH2[0, i2 * bt + b, b * 12 + 2 * i2] = 1.0
            SH2[1, i2 * bt + b, b * 12 + 2 * i2 + 1] = 1.0

    # Bias after max-pool is valid (per-channel bias constant in each window).
    b1t = np.tile(b1, 12)[None, :]  # (1, 120)
    b2t = np.tile(b2, 4)[None, :]   # (1, 80)

    # fc1 regrouped: h[b,n] += p2[i2*bt+b, qq*20+co] * f1[n, co*16 + i2*4 + qq]
    # (matches PyTorch's x.view(-1, 320) NCHW flatten order exactly).
    G1 = np.zeros((4, 80, 50), np.float32)
    for i2 in range(4):
        for qq in range(4):
            for co in range(20):
                G1[i2, qq * 20 + co, :] = f1[:, co * 16 + i2 * 4 + qq]

    bf16, f32 = jnp.bfloat16, jnp.float32
    return (
        jnp.asarray(B1, bf16), jnp.asarray(SW1, bf16), jnp.asarray(SH1, bf16),
        jnp.asarray(b1t, f32), jnp.asarray(B2, bf16), jnp.asarray(SW2, bf16),
        jnp.asarray(SH2, bf16), jnp.asarray(b2t, f32), jnp.asarray(G1, bf16),
        jnp.asarray(fb1[None, :], f32), jnp.asarray(f2.T, bf16),
        jnp.asarray(fb2[None, :], f32),
    )


# ----------------------------------------------------------------------------
# Parameter init (PyTorch-style) and a pure-XLA reference for validation
# ----------------------------------------------------------------------------
def init_params(key):
    ks = jax.random.split(key, 8)

    def u(k, shape, fan_in):
        bound = 1.0 / jnp.sqrt(float(fan_in))
        return jax.random.uniform(k, shape, jnp.float32, -bound, bound)

    return {
        "conv1_w": u(ks[0], (10, 1, 5, 5), 1 * 5 * 5),
        "conv1_b": u(ks[1], (10,), 1 * 5 * 5),
        "conv2_w": u(ks[2], (20, 10, 5, 5), 10 * 5 * 5),
        "conv2_b": u(ks[3], (20,), 10 * 5 * 5),
        "fc1_w": u(ks[4], (50, 320), 320),
        "fc1_b": u(ks[5], (50,), 320),
        "fc2_w": u(ks[6], (10, 50), 50),
        "fc2_b": u(ks[7], (10,), 50),
    }


def net_reference(x, params):
    dn = ("NCHW", "OIHW", "NCHW")
    y = jax.lax.conv_general_dilated(x, params["conv1_w"], (1, 1), "VALID",
                                     dimension_numbers=dn)
    y = y + params["conv1_b"][None, :, None, None]
    y = jax.lax.reduce_window(y, -jnp.inf, jax.lax.max,
                              (1, 1, 2, 2), (1, 1, 2, 2), "VALID")
    y = jax.nn.relu(y)
    y = jax.lax.conv_general_dilated(y, params["conv2_w"], (1, 1), "VALID",
                                     dimension_numbers=dn)
    y = y + params["conv2_b"][None, :, None, None]
    y = jax.lax.reduce_window(y, -jnp.inf, jax.lax.max,
                              (1, 1, 2, 2), (1, 1, 2, 2), "VALID")
    y = jax.nn.relu(y)
    h = y.reshape(y.shape[0], 320)
    h = jax.nn.relu(h @ params["fc1_w"].T + params["fc1_b"])
    logits = h @ params["fc2_w"].T + params["fc2_b"]
    return jax.nn.log_softmax(logits, axis=-1)


if __name__ == "__main__":
    key = jax.random.PRNGKey(0)
    pkey, xkey = jax.random.split(key)

    params = init_params(pkey)
    prep = prepare_params(params)

    # fc1 (320 = 20*4*4) fixes the spatial size at 28x28.
    # B=16, BT=8 -> grid of 2 "parallel" steps (even and >=2 for v7x's 2 TCs).
    x = jax.random.normal(xkey, (16, 1, 28, 28), dtype=jnp.float32)

    out = jax.jit(net_forward)(x, prep)
    out = jax.block_until_ready(out)

    assert out.shape == (16, 10)
    assert bool(jnp.all(jnp.isfinite(out)))
    # log_softmax rows must exponentiate-sum to 1.
    assert jnp.allclose(jnp.exp(out).sum(axis=-1), 1.0, atol=1e-4)

    # Cross-check against a pure-XLA f32 reference (bf16 matmuls => loose tol).
    ref = jax.jit(net_reference)(x, params)
    assert jnp.allclose(out, ref, atol=1e-1), float(jnp.max(jnp.abs(out - ref)))
    # Top-1 must agree wherever the reference has a clear winner (guards against
    # layout/regroup bugs hiding under the loose numeric tolerance).
    srt = jnp.sort(ref, axis=-1)
    confident = (srt[:, -1] - srt[:, -2]) > 0.05
    agree = jnp.argmax(out, axis=-1) == jnp.argmax(ref, axis=-1)
    assert bool(jnp.all(jnp.where(confident, agree, True)))

    print("KERNEL_OK")
</pallas_src>

<mosaic_0001>
module attributes {stable_mosaic.version = 11 : i64} {
  func.func @_net_fused_kernel(%arg0: i32, %arg1: memref<224x28xf32, #tpu.memory_space<vmem>>, %arg2: memref<5x28x240xbf16, #tpu.memory_space<vmem>>, %arg3: memref<2x240x120xbf16, #tpu.memory_space<vmem>>, %arg4: memref<2x96x220xbf16, #tpu.memory_space<vmem>>, %arg5: memref<1x120xf32, #tpu.memory_space<vmem>>, %arg6: memref<5x120x160xbf16, #tpu.memory_space<vmem>>, %arg7: memref<2x160x80xbf16, #tpu.memory_space<vmem>>, %arg8: memref<2x32x92xbf16, #tpu.memory_space<vmem>>, %arg9: memref<1x80xf32, #tpu.memory_space<vmem>>, %arg10: memref<4x80x50xbf16, #tpu.memory_space<vmem>>, %arg11: memref<1x50xf32, #tpu.memory_space<vmem>>, %arg12: memref<50x10xbf16, #tpu.memory_space<vmem>>, %arg13: memref<1x10xf32, #tpu.memory_space<vmem>>, %arg14: memref<8x10xf32, #tpu.memory_space<vmem>>) attributes {dimension_semantics = [#tpu.dimension_semantics<parallel>], iteration_bounds = array<i64: 2>, scalar_prefetch = 0 : i64, scratch_operands = 0 : i64, tpu.core_type = #tpu.core_type<tc>, window_params = [{transform_indices = @transform_0, window_bounds = array<i64: 224, 28>}, {pipeline_mode = #tpu.pipeline_mode<synchronous>, transform_indices = @transform_1, window_bounds = array<i64: 5, 28, 240>}, {pipeline_mode = #tpu.pipeline_mode<synchronous>, transform_indices = @transform_2, window_bounds = array<i64: 2, 240, 120>}, {pipeline_mode = #tpu.pipeline_mode<synchronous>, transform_indices = @transform_3, window_bounds = array<i64: 2, 96, 220>}, {pipeline_mode = #tpu.pipeline_mode<synchronous>, transform_indices = @transform_4, window_bounds = array<i64: 1, 120>}, {pipeline_mode = #tpu.pipeline_mode<synchronous>, transform_indices = @transform_5, window_bounds = array<i64: 5, 120, 160>}, {pipeline_mode = #tpu.pipeline_mode<synchronous>, transform_indices = @transform_6, window_bounds = array<i64: 2, 160, 80>}, {pipeline_mode = #tpu.pipeline_mode<synchronous>, transform_indices = @transform_7, window_bounds = array<i64: 2, 32, 92>}, {pipeline_mode = #tpu.pipeline_mode<synchronous>, transform_indices = @transform_8, window_bounds = array<i64: 1, 80>}, {pipeline_mode = #tpu.pipeline_mode<synchronous>, transform_indices = @transform_9, window_bounds = array<i64: 4, 80, 50>}, {pipeline_mode = #tpu.pipeline_mode<synchronous>, transform_indices = @transform_10, window_bounds = array<i64: 1, 50>}, {pipeline_mode = #tpu.pipeline_mode<synchronous>, transform_indices = @transform_11, window_bounds = array<i64: 50, 10>}, {pipeline_mode = #tpu.pipeline_mode<synchronous>, transform_indices = @transform_12, window_bounds = array<i64: 1, 10>}, {transform_indices = @transform_13, window_bounds = array<i64: 8, 10>}]} {
    %c0 = arith.constant 0 : index
    %c0_0 = arith.constant 0 : index
    %0 = vector.load %arg1[%c0, %c0_0] : memref<224x28xf32, #tpu.memory_space<vmem>>, vector<224x28xf32>
    %1 = arith.truncf %0 : vector<224x28xf32> to vector<224x28xbf16>
    %2 = vector.extract_strided_slice %1 {offsets = [0, 0], sizes = [220, 28], strides = [1, 1]} : vector<224x28xbf16> to vector<220x28xbf16>
    %c0_1 = arith.constant 0 : index
    %c0_2 = arith.constant 0 : index
    %c0_3 = arith.constant 0 : index
    %3 = vector.load %arg2[%c0_1, %c0_2, %c0_3] : memref<5x28x240xbf16, #tpu.memory_space<vmem>>, vector<1x28x240xbf16>
    %4 = vector.shape_cast %3 : vector<1x28x240xbf16> to vector<28x240xbf16>
    %cst = arith.constant dense<0.000000e+00> : vector<220x240xf32>
    %5 = tpu.matmul %2, %4, %cst {dimension_numbers = #tpu.dot_dimension_numbers<[1], [0], [0], [1], [0, 0, 1, 1], [], []>} : vector<220x28xbf16>, vector<28x240xbf16>, vector<220x240xf32> -> vector<220x240xf32>
    %6 = vector.extract_strided_slice %1 {offsets = [1, 0], sizes = [220, 28], strides = [1, 1]} : vector<224x28xbf16> to vector<220x28xbf16>
    %c1 = arith.constant 1 : index
    %c0_4 = arith.constant 0 : index
    %c0_5 = arith.constant 0 : index
    %7 = vector.load %arg2[%c1, %c0_4, %c0_5] : memref<5x28x240xbf16, #tpu.memory_space<vmem>>, vector<1x28x240xbf16>
    %8 = vector.shape_cast %7 : vector<1x28x240xbf16> to vector<28x240xbf16>
    %cst_6 = arith.constant dense<0.000000e+00> : vector<220x240xf32>
    %9 = tpu.matmul %6, %8, %cst_6 {dimension_numbers = #tpu.dot_dimension_numbers<[1], [0], [0], [1], [0, 0, 1, 1], [], []>} : vector<220x28xbf16>, vector<28x240xbf16>, vector<220x240xf32> -> vector<220x240xf32>
    %10 = arith.addf %5, %9 : vector<220x240xf32>
    %11 = vector.extract_strided_slice %1 {offsets = [2, 0], sizes = [220, 28], strides = [1, 1]} : vector<224x28xbf16> to vector<220x28xbf16>
    %c2 = arith.constant 2 : index
    %c0_7 = arith.constant 0 : index
    %c0_8 = arith.constant 0 : index
    %12 = vector.load %arg2[%c2, %c0_7, %c0_8] : memref<5x28x240xbf16, #tpu.memory_space<vmem>>, vector<1x28x240xbf16>
    %13 = vector.shape_cast %12 : vector<1x28x240xbf16> to vector<28x240xbf16>
    %cst_9 = arith.constant dense<0.000000e+00> : vector<220x240xf32>
    %14 = tpu.matmul %11, %13, %cst_9 {dimension_numbers = #tpu.dot_dimension_numbers<[1], [0], [0], [1], [0, 0, 1, 1], [], []>} : vector<220x28xbf16>, vector<28x240xbf16>, vector<220x240xf32> -> vector<220x240xf32>
    %15 = arith.addf %10, %14 : vector<220x240xf32>
    %16 = vector.extract_strided_slice %1 {offsets = [3, 0], sizes = [220, 28], strides = [1, 1]} : vector<224x28xbf16> to vector<220x28xbf16>
    %c3 = arith.constant 3 : index
    %c0_10 = arith.constant 0 : index
    %c0_11 = arith.constant 0 : index
    %17 = vector.load %arg2[%c3, %c0_10, %c0_11] : memref<5x28x240xbf16, #tpu.memory_space<vmem>>, vector<1x28x240xbf16>
    %18 = vector.shape_cast %17 : vector<1x28x240xbf16> to vector<28x240xbf16>
    %cst_12 = arith.constant dense<0.000000e+00> : vector<220x240xf32>
    %19 = tpu.matmul %16, %18, %cst_12 {dimension_numbers = #tpu.dot_dimension_numbers<[1], [0], [0], [1], [0, 0, 1, 1], [], []>} : vector<220x28xbf16>, vector<28x240xbf16>, vector<220x240xf32> -> vector<220x240xf32>
    %20 = arith.addf %15, %19 : vector<220x240xf32>
    %21 = vector.extract_strided_slice %1 {offsets = [4, 0], sizes = [220, 28], strides = [1, 1]} : vector<224x28xbf16> to vector<220x28xbf16>
    %c4 = arith.constant 4 : index
    %c0_13 = arith.constant 0 : index
    %c0_14 = arith.constant 0 : index
    %22 = vector.load %arg2[%c4, %c0_13, %c0_14] : memref<5x28x240xbf16, #tpu.memory_space<vmem>>, vector<1x28x240xbf16>
    %23 = vector.shape_cast %22 : vector<1x28x240xbf16> to vector<28x240xbf16>
    %cst_15 = arith.constant dense<0.000000e+00> : vector<220x240xf32>
    %24 = tpu.matmul %21, %23, %cst_15 {dimension_numbers = #tpu.dot_dimension_numbers<[1], [0], [0], [1], [0, 0, 1, 1], [], []>} : vector<220x28xbf16>, vector<28x240xbf16>, vector<220x240xf32> -> vector<220x240xf32>
    %25 = arith.addf %20, %24 : vector<220x240xf32>
    %26 = arith.truncf %25 : vector<220x240xf32> to vector<220x240xbf16>
    %c0_16 = arith.constant 0 : index
    %c0_17 = arith.constant 0 : index
    %c0_18 = arith.constant 0 : index
    %27 = vector.load %arg3[%c0_16, %c0_17, %c0_18] : memref<2x240x120xbf16, #tpu.memory_space<vmem>>, vector<1x240x120xbf16>
    %28 = vector.shape_cast %27 : vector<1x240x120xbf16> to vector<240x120xbf16>
    %cst_19 = arith.constant dense<0.000000e+00> : vector<220x120xf32>
    %29 = tpu.matmul %26, %28, %cst_19 {dimension_numbers = #tpu.dot_dimension_numbers<[1], [0], [0], [1], [0, 0, 1, 1], [], []>} : vector<220x240xbf16>, vector<240x120xbf16>, vector<220x120xf32> -> vector<220x120xf32>
    %c1_20 = arith.constant 1 : index
    %c0_21 = arith.constant 0 : index
    %c0_22 = arith.constant 0 : index
    %30 = vector.load %arg3[%c1_20, %c0_21, %c0_22] : memref<2x240x120xbf16, #tpu.memory_space<vmem>>, vector<1x240x120xbf16>
    %31 = vector.shape_cast %30 : vector<1x240x120xbf16> to vector<240x120xbf16>
    %cst_23 = arith.constant dense<0.000000e+00> : vector<220x120xf32>
    %32 = tpu.matmul %26, %31, %cst_23 {dimension_numbers = #tpu.dot_dimension_numbers<[1], [0], [0], [1], [0, 0, 1, 1], [], []>} : vector<220x240xbf16>, vector<240x120xbf16>, vector<220x120xf32> -> vector<220x120xf32>
    %33 = arith.maximumf %29, %32 : vector<220x120xf32>
    %34 = arith.truncf %33 : vector<220x120xf32> to vector<220x120xbf16>
    %c0_24 = arith.constant 0 : index
    %c0_25 = arith.constant 0 : index
    %c0_26 = arith.constant 0 : index
    %35 = vector.load %arg4[%c0_24, %c0_25, %c0_26] : memref<2x96x220xbf16, #tpu.memory_space<vmem>>, vector<1x96x220xbf16>
    %36 = vector.shape_cast %35 : vector<1x96x220xbf16> to vector<96x220xbf16>
    %cst_27 = arith.constant dense<0.000000e+00> : vector<96x120xf32>
    %37 = tpu.matmul %36, %34, %cst_27 {dimension_numbers = #tpu.dot_dimension_numbers<[1], [0], [0], [1], [0, 0, 1, 1], [], []>} : vector<96x220xbf16>, vector<220x120xbf16>, vector<96x120xf32> -> vector<96x120xf32>
    %c1_28 = arith.constant 1 : index
    %c0_29 = arith.constant 0 : index
    %c0_30 = arith.constant 0 : index
    %38 = vector.load %arg4[%c1_28, %c0_29, %c0_30] : memref<2x96x220xbf16, #tpu.memory_space<vmem>>, vector<1x96x220xbf16>
    %39 = vector.shape_cast %38 : vector<1x96x220xbf16> to vector<96x220xbf16>
    %cst_31 = arith.constant dense<0.000000e+00> : vector<96x120xf32>
    %40 = tpu.matmul %39, %34, %cst_31 {dimension_numbers = #tpu.dot_dimension_numbers<[1], [0], [0], [1], [0, 0, 1, 1], [], []>} : vector<96x220xbf16>, vector<220x120xbf16>, vector<96x120xf32> -> vector<96x120xf32>
    %41 = arith.maximumf %37, %40 : vector<96x120xf32>
    %c0_32 = arith.constant 0 : index
    %c0_33 = arith.constant 0 : index
    %42 = vector.load %arg5[%c0_32, %c0_33] : memref<1x120xf32, #tpu.memory_space<vmem>>, vector<1x120xf32>
    %43 = vector.broadcast %42 : vector<1x120xf32> to vector<96x120xf32>
    %44 = arith.addf %41, %43 : vector<96x120xf32>
    %cst_34 = arith.constant 0.000000e+00 : f32
    %45 = vector.broadcast %cst_34 : f32 to vector<96x120xf32>
    %46 = arith.maximumf %44, %45 : vector<96x120xf32>
    %47 = arith.truncf %46 : vector<96x120xf32> to vector<96x120xbf16>
    %48 = vector.extract_strided_slice %47 {offsets = [0, 0], sizes = [92, 120], strides = [1, 1]} : vector<96x120xbf16> to vector<92x120xbf16>
    %c0_35 = arith.constant 0 : index
    %c0_36 = arith.constant 0 : index
    %c0_37 = arith.constant 0 : index
    %49 = vector.load %arg6[%c0_35, %c0_36, %c0_37] : memref<5x120x160xbf16, #tpu.memory_space<vmem>>, vector<1x120x160xbf16>
    %50 = vector.shape_cast %49 : vector<1x120x160xbf16> to vector<120x160xbf16>
    %cst_38 = arith.constant dense<0.000000e+00> : vector<92x160xf32>
    %51 = tpu.matmul %48, %50, %cst_38 {dimension_numbers = #tpu.dot_dimension_numbers<[1], [0], [0], [1], [0, 0, 1, 1], [], []>} : vector<92x120xbf16>, vector<120x160xbf16>, vector<92x160xf32> -> vector<92x160xf32>
    %52 = vector.extract_strided_slice %47 {offsets = [1, 0], sizes = [92, 120], strides = [1, 1]} : vector<96x120xbf16> to vector<92x120xbf16>
    %c1_39 = arith.constant 1 : index
    %c0_40 = arith.constant 0 : index
    %c0_41 = arith.constant 0 : index
    %53 = vector.load %arg6[%c1_39, %c0_40, %c0_41] : memref<5x120x160xbf16, #tpu.memory_space<vmem>>, vector<1x120x160xbf16>
    %54 = vector.shape_cast %53 : vector<1x120x160xbf16> to vector<120x160xbf16>
    %cst_42 = arith.constant dense<0.000000e+00> : vector<92x160xf32>
    %55 = tpu.matmul %52, %54, %cst_42 {dimension_numbers = #tpu.dot_dimension_numbers<[1], [0], [0], [1], [0, 0, 1, 1], [], []>} : vector<92x120xbf16>, vector<120x160xbf16>, vector<92x160xf32> -> vector<92x160xf32>
    %56 = arith.addf %51, %55 : vector<92x160xf32>
    %57 = vector.extract_strided_slice %47 {offsets = [2, 0], sizes = [92, 120], strides = [1, 1]} : vector<96x120xbf16> to vector<92x120xbf16>
    %c2_43 = arith.constant 2 : index
    %c0_44 = arith.constant 0 : index
    %c0_45 = arith.constant 0 : index
    %58 = vector.load %arg6[%c2_43, %c0_44, %c0_45] : memref<5x120x160xbf16, #tpu.memory_space<vmem>>, vector<1x120x160xbf16>
    %59 = vector.shape_cast %58 : vector<1x120x160xbf16> to vector<120x160xbf16>
    %cst_46 = arith.constant dense<0.000000e+00> : vector<92x160xf32>
    %60 = tpu.matmul %57, %59, %cst_46 {dimension_numbers = #tpu.dot_dimension_numbers<[1], [0], [0], [1], [0, 0, 1, 1], [], []>} : vector<92x120xbf16>, vector<120x160xbf16>, vector<92x160xf32> -> vector<92x160xf32>
    %61 = arith.addf %56, %60 : vector<92x160xf32>
    %62 = vector.extract_strided_slice %47 {offsets = [3, 0], sizes = [92, 120], strides = [1, 1]} : vector<96x120xbf16> to vector<92x120xbf16>
    %c3_47 = arith.constant 3 : index
    %c0_48 = arith.constant 0 : index
    %c0_49 = arith.constant 0 : index
    %63 = vector.load %arg6[%c3_47, %c0_48, %c0_49] : memref<5x120x160xbf16, #tpu.memory_space<vmem>>, vector<1x120x160xbf16>
    %64 = vector.shape_cast %63 : vector<1x120x160xbf16> to vector<120x160xbf16>
    %cst_50 = arith.constant dense<0.000000e+00> : vector<92x160xf32>
    %65 = tpu.matmul %62, %64, %cst_50 {dimension_numbers = #tpu.dot_dimension_numbers<[1], [0], [0], [1], [0, 0, 1, 1], [], []>} : vector<92x120xbf16>, vector<120x160xbf16>, vector<92x160xf32> -> vector<92x160xf32>
    %66 = arith.addf %61, %65 : vector<92x160xf32>
    %67 = vector.extract_strided_slice %47 {offsets = [4, 0], sizes = [92, 120], strides = [1, 1]} : vector<96x120xbf16> to vector<92x120xbf16>
    %c4_51 = arith.constant 4 : index
    %c0_52 = arith.constant 0 : index
    %c0_53 = arith.constant 0 : index
    %68 = vector.load %arg6[%c4_51, %c0_52, %c0_53] : memref<5x120x160xbf16, #tpu.memory_space<vmem>>, vector<1x120x160xbf16>
    %69 = vector.shape_cast %68 : vector<1x120x160xbf16> to vector<120x160xbf16>
    %cst_54 = arith.constant dense<0.000000e+00> : vector<92x160xf32>
    %70 = tpu.matmul %67, %69, %cst_54 {dimension_numbers = #tpu.dot_dimension_numbers<[1], [0], [0], [1], [0, 0, 1, 1], [], []>} : vector<92x120xbf16>, vector<120x160xbf16>, vector<92x160xf32> -> vector<92x160xf32>
    %71 = arith.addf %66, %70 : vector<92x160xf32>
    %72 = arith.truncf %71 : vector<92x160xf32> to vector<92x160xbf16>
    %c0_55 = arith.constant 0 : index
    %c0_56 = arith.constant 0 : index
    %c0_57 = arith.constant 0 : index
    %73 = vector.load %arg7[%c0_55, %c0_56, %c0_57] : memref<2x160x80xbf16, #tpu.memory_space<vmem>>, vector<1x160x80xbf16>
    %74 = vector.shape_cast %73 : vector<1x160x80xbf16> to vector<160x80xbf16>
    %cst_58 = arith.constant dense<0.000000e+00> : vector<92x80xf32>
    %75 = tpu.matmul %72, %74, %cst_58 {dimension_numbers = #tpu.dot_dimension_numbers<[1], [0], [0], [1], [0, 0, 1, 1], [], []>} : vector<92x160xbf16>, vector<160x80xbf16>, vector<92x80xf32> -> vector<92x80xf32>
    %c1_59 = arith.constant 1 : index
    %c0_60 = arith.constant 0 : index
    %c0_61 = arith.constant 0 : index
    %76 = vector.load %arg7[%c1_59, %c0_60, %c0_61] : memref<2x160x80xbf16, #tpu.memory_space<vmem>>, vector<1x160x80xbf16>
    %77 = vector.shape_cast %76 : vector<1x160x80xbf16> to vector<160x80xbf16>
    %cst_62 = arith.constant dense<0.000000e+00> : vector<92x80xf32>
    %78 = tpu.matmul %72, %77, %cst_62 {dimension_numbers = #tpu.dot_dimension_numbers<[1], [0], [0], [1], [0, 0, 1, 1], [], []>} : vector<92x160xbf16>, vector<160x80xbf16>, vector<92x80xf32> -> vector<92x80xf32>
    %79 = arith.maximumf %75, %78 : vector<92x80xf32>
    %80 = arith.truncf %79 : vector<92x80xf32> to vector<92x80xbf16>
    %c0_63 = arith.constant 0 : index
    %c0_64 = arith.constant 0 : index
    %c0_65 = arith.constant 0 : index
    %81 = vector.load %arg8[%c0_63, %c0_64, %c0_65] : memref<2x32x92xbf16, #tpu.memory_space<vmem>>, vector<1x32x92xbf16>
    %82 = vector.shape_cast %81 : vector<1x32x92xbf16> to vector<32x92xbf16>
    %cst_66 = arith.constant dense<0.000000e+00> : vector<32x80xf32>
    %83 = tpu.matmul %82, %80, %cst_66 {dimension_numbers = #tpu.dot_dimension_numbers<[1], [0], [0], [1], [0, 0, 1, 1], [], []>} : vector<32x92xbf16>, vector<92x80xbf16>, vector<32x80xf32> -> vector<32x80xf32>
    %c1_67 = arith.constant 1 : index
    %c0_68 = arith.constant 0 : index
    %c0_69 = arith.constant 0 : index
    %84 = vector.load %arg8[%c1_67, %c0_68, %c0_69] : memref<2x32x92xbf16, #tpu.memory_space<vmem>>, vector<1x32x92xbf16>
    %85 = vector.shape_cast %84 : vector<1x32x92xbf16> to vector<32x92xbf16>
    %cst_70 = arith.constant dense<0.000000e+00> : vector<32x80xf32>
    %86 = tpu.matmul %85, %80, %cst_70 {dimension_numbers = #tpu.dot_dimension_numbers<[1], [0], [0], [1], [0, 0, 1, 1], [], []>} : vector<32x92xbf16>, vector<92x80xbf16>, vector<32x80xf32> -> vector<32x80xf32>
    %87 = arith.maximumf %83, %86 : vector<32x80xf32>
    %c0_71 = arith.constant 0 : index
    %c0_72 = arith.constant 0 : index
    %88 = vector.load %arg9[%c0_71, %c0_72] : memref<1x80xf32, #tpu.memory_space<vmem>>, vector<1x80xf32>
    %89 = vector.broadcast %88 : vector<1x80xf32> to vector<32x80xf32>
    %90 = arith.addf %87, %89 : vector<32x80xf32>
    %cst_73 = arith.constant 0.000000e+00 : f32
    %91 = vector.broadcast %cst_73 : f32 to vector<32x80xf32>
    %92 = arith.maximumf %90, %91 : vector<32x80xf32>
    %93 = arith.truncf %92 : vector<32x80xf32> to vector<32x80xbf16>
    %94 = vector.extract_strided_slice %93 {offsets = [0, 0], sizes = [8, 80], strides = [1, 1]} : vector<32x80xbf16> to vector<8x80xbf16>
    %c0_74 = arith.constant 0 : index
    %c0_75 = arith.constant 0 : index
    %c0_76 = arith.constant 0 : index
    %95 = vector.load %arg10[%c0_74, %c0_75, %c0_76] : memref<4x80x50xbf16, #tpu.memory_space<vmem>>, vector<1x80x50xbf16>
    %96 = vector.shape_cast %95 : vector<1x80x50xbf16> to vector<80x50xbf16>
    %cst_77 = arith.constant dense<0.000000e+00> : vector<8x50xf32>
    %97 = tpu.matmul %94, %96, %cst_77 {dimension_numbers = #tpu.dot_dimension_numbers<[1], [0], [0], [1], [0, 0, 1, 1], [], []>} : vector<8x80xbf16>, vector<80x50xbf16>, vector<8x50xf32> -> vector<8x50xf32>
    %98 = vector.extract_strided_slice %93 {offsets = [8, 0], sizes = [8, 80], strides = [1, 1]} : vector<32x80xbf16> to vector<8x80xbf16>
    %c1_78 = arith.constant 1 : index
    %c0_79 = arith.constant 0 : index
    %c0_80 = arith.constant 0 : index
    %99 = vector.load %arg10[%c1_78, %c0_79, %c0_80] : memref<4x80x50xbf16, #tpu.memory_space<vmem>>, vector<1x80x50xbf16>
    %100 = vector.shape_cast %99 : vector<1x80x50xbf16> to vector<80x50xbf16>
    %cst_81 = arith.constant dense<0.000000e+00> : vector<8x50xf32>
    %101 = tpu.matmul %98, %100, %cst_81 {dimension_numbers = #tpu.dot_dimension_numbers<[1], [0], [0], [1], [0, 0, 1, 1], [], []>} : vector<8x80xbf16>, vector<80x50xbf16>, vector<8x50xf32> -> vector<8x50xf32>
    %102 = vector.extract_strided_slice %93 {offsets = [16, 0], sizes = [8, 80], strides = [1, 1]} : vector<32x80xbf16> to vector<8x80xbf16>
    %c2_82 = arith.constant 2 : index
    %c0_83 = arith.constant 0 : index
    %c0_84 = arith.constant 0 : index
    %103 = vector.load %arg10[%c2_82, %c0_83, %c0_84] : memref<4x80x50xbf16, #tpu.memory_space<vmem>>, vector<1x80x50xbf16>
    %104 = vector.shape_cast %103 : vector<1x80x50xbf16> to vector<80x50xbf16>
    %cst_85 = arith.constant dense<0.000000e+00> : vector<8x50xf32>
    %105 = tpu.matmul %102, %104, %cst_85 {dimension_numbers = #tpu.dot_dimension_numbers<[1], [0], [0], [1], [0, 0, 1, 1], [], []>} : vector<8x80xbf16>, vector<80x50xbf16>, vector<8x50xf32> -> vector<8x50xf32>
    %106 = vector.extract_strided_slice %93 {offsets = [24, 0], sizes = [8, 80], strides = [1, 1]} : vector<32x80xbf16> to vector<8x80xbf16>
    %c3_86 = arith.constant 3 : index
    %c0_87 = arith.constant 0 : index
    %c0_88 = arith.constant 0 : index
    %107 = vector.load %arg10[%c3_86, %c0_87, %c0_88] : memref<4x80x50xbf16, #tpu.memory_space<vmem>>, vector<1x80x50xbf16>
    %108 = vector.shape_cast %107 : vector<1x80x50xbf16> to vector<80x50xbf16>
    %cst_89 = arith.constant dense<0.000000e+00> : vector<8x50xf32>
    %109 = tpu.matmul %106, %108, %cst_89 {dimension_numbers = #tpu.dot_dimension_numbers<[1], [0], [0], [1], [0, 0, 1, 1], [], []>} : vector<8x80xbf16>, vector<80x50xbf16>, vector<8x50xf32> -> vector<8x50xf32>
    %110 = arith.addf %97, %101 : vector<8x50xf32>
    %111 = arith.addf %105, %109 : vector<8x50xf32>
    %112 = arith.addf %110, %111 : vector<8x50xf32>
    %c0_90 = arith.constant 0 : index
    %c0_91 = arith.constant 0 : index
    %113 = vector.load %arg11[%c0_90, %c0_91] : memref<1x50xf32, #tpu.memory_space<vmem>>, vector<1x50xf32>
    %114 = vector.broadcast %113 : vector<1x50xf32> to vector<8x50xf32>
    %115 = arith.addf %112, %114 : vector<8x50xf32>
    %cst_92 = arith.constant 0.000000e+00 : f32
    %116 = vector.broadcast %cst_92 : f32 to vector<8x50xf32>
    %117 = arith.maximumf %115, %116 : vector<8x50xf32>
    %118 = arith.truncf %117 : vector<8x50xf32> to vector<8x50xbf16>
    %c0_93 = arith.constant 0 : index
    %c0_94 = arith.constant 0 : index
    %119 = vector.load %arg12[%c0_93, %c0_94] : memref<50x10xbf16, #tpu.memory_space<vmem>>, vector<50x10xbf16>
    %cst_95 = arith.constant dense<0.000000e+00> : vector<8x10xf32>
    %120 = tpu.matmul %118, %119, %cst_95 {dimension_numbers = #tpu.dot_dimension_numbers<[1], [0], [0], [1], [0, 0, 1, 1], [], []>} : vector<8x50xbf16>, vector<50x10xbf16>, vector<8x10xf32> -> vector<8x10xf32>
    %c0_96 = arith.constant 0 : index
    %c0_97 = arith.constant 0 : index
    %121 = vector.load %arg13[%c0_96, %c0_97] : memref<1x10xf32, #tpu.memory_space<vmem>>, vector<1x10xf32>
    %122 = vector.broadcast %121 : vector<1x10xf32> to vector<8x10xf32>
    %123 = arith.addf %120, %122 : vector<8x10xf32>
    %cst_98 = arith.constant dense<0xFF800000> : vector<8xf32>
    %124 = vector.multi_reduction <maximumf>, %123, %cst_98 [1] : vector<8x10xf32> to vector<8xf32>
    %125 = vector.shape_cast %124 : vector<8xf32> to vector<8x1xf32>
    %126 = vector.broadcast %125 : vector<8x1xf32> to vector<8x10xf32>
    %127 = arith.subf %123, %126 : vector<8x10xf32>
    %128 = math.exp %127 : vector<8x10xf32>
    %cst_99 = arith.constant dense<0.000000e+00> : vector<8xf32>
    %129 = vector.multi_reduction <add>, %128, %cst_99 [1] : vector<8x10xf32> to vector<8xf32>
    %130 = vector.shape_cast %129 : vector<8xf32> to vector<8x1xf32>
    %131 = math.log %130 : vector<8x1xf32>
    %132 = vector.broadcast %131 : vector<8x1xf32> to vector<8x10xf32>
    %133 = arith.subf %127, %132 : vector<8x10xf32>
    %c0_100 = arith.constant 0 : index
    %c0_101 = arith.constant 0 : index
    %134 = vector.load %arg14[%c0_100, %c0_101] : memref<8x10xf32, #tpu.memory_space<vmem>>, vector<8x10xf32>
    tpu.vector_store %arg14[%c0_100, %c0_101], %133 {strides = array<i32>} : memref<8x10xf32, #tpu.memory_space<vmem>>, vector<8x10xf32>,
    return
  }
  func.func @transform_0(%arg0: i32) -> (i32, i32) {
    %c0_i32 = arith.constant 0 : i32
    %c0_i32_0 = arith.constant 0 : i32
    return %arg0, %c0_i32 : i32, i32
  }
  func.func @transform_1(%arg0: i32) -> (i32, i32, i32) {
    %c0_i32 = arith.constant 0 : i32
    %c0_i32_0 = arith.constant 0 : i32
    %c0_i32_1 = arith.constant 0 : i32
    %c0_i32_2 = arith.constant 0 : i32
    return %c0_i32, %c0_i32_0, %c0_i32_1 : i32, i32, i32
  }
  func.func @transform_2(%arg0: i32) -> (i32, i32, i32) {
    %c0_i32 = arith.constant 0 : i32
    %c0_i32_0 = arith.constant 0 : i32
    %c0_i32_1 = arith.constant 0 : i32
    %c0_i32_2 = arith.constant 0 : i32
    return %c0_i32, %c0_i32_0, %c0_i32_1 : i32, i32, i32
  }
  func.func @transform_3(%arg0: i32) -> (i32, i32, i32) {
    %c0_i32 = arith.constant 0 : i32
    %c0_i32_0 = arith.constant 0 : i32
    %c0_i32_1 = arith.constant 0 : i32
    %c0_i32_2 = arith.constant 0 : i32
    return %c0_i32, %c0_i32_0, %c0_i32_1 : i32, i32, i32
  }
  func.func @transform_4(%arg0: i32) -> (i32, i32) {
    %c0_i32 = arith.constant 0 : i32
    %c0_i32_0 = arith.constant 0 : i32
    %c0_i32_1 = arith.constant 0 : i32
    return %c0_i32, %c0_i32_0 : i32, i32
  }
  func.func @transform_5(%arg0: i32) -> (i32, i32, i32) {
    %c0_i32 = arith.constant 0 : i32
    %c0_i32_0 = arith.constant 0 : i32
    %c0_i32_1 = arith.constant 0 : i32
    %c0_i32_2 = arith.constant 0 : i32
    return %c0_i32, %c0_i32_0, %c0_i32_1 : i32, i32, i32
  }
  func.func @transform_6(%arg0: i32) -> (i32, i32, i32) {
    %c0_i32 = arith.constant 0 : i32
    %c0_i32_0 = arith.constant 0 : i32
    %c0_i32_1 = arith.constant 0 : i32
    %c0_i32_2 = arith.constant 0 : i32
    return %c0_i32, %c0_i32_0, %c0_i32_1 : i32, i32, i32
  }
  func.func @transform_7(%arg0: i32) -> (i32, i32, i32) {
    %c0_i32 = arith.constant 0 : i32
    %c0_i32_0 = arith.constant 0 : i32
    %c0_i32_1 = arith.constant 0 : i32
    %c0_i32_2 = arith.constant 0 : i32
    return %c0_i32, %c0_i32_0, %c0_i32_1 : i32, i32, i32
  }
  func.func @transform_8(%arg0: i32) -> (i32, i32) {
    %c0_i32 = arith.constant 0 : i32
    %c0_i32_0 = arith.constant 0 : i32
    %c0_i32_1 = arith.constant 0 : i32
    return %c0_i32, %c0_i32_0 : i32, i32
  }
  func.func @transform_9(%arg0: i32) -> (i32, i32, i32) {
    %c0_i32 = arith.constant 0 : i32
    %c0_i32_0 = arith.constant 0 : i32
    %c0_i32_1 = arith.constant 0 : i32
    %c0_i32_2 = arith.constant 0 : i32
    return %c0_i32, %c0_i32_0, %c0_i32_1 : i32, i32, i32
  }
  func.func @transform_10(%arg0: i32) -> (i32, i32) {
    %c0_i32 = arith.constant 0 : i32
    %c0_i32_0 = arith.constant 0 : i32
    %c0_i32_1 = arith.constant 0 : i32
    return %c0_i32, %c0_i32_0 : i32, i32
  }
  func.func @transform_11(%arg0: i32) -> (i32, i32) {
    %c0_i32 = arith.constant 0 : i32
    %c0_i32_0 = arith.constant 0 : i32
    %c0_i32_1 = arith.constant 0 : i32
    return %c0_i32, %c0_i32_0 : i32, i32
  }
  func.func @transform_12(%arg0: i32) -> (i32, i32) {
    %c0_i32 = arith.constant 0 : i32
    %c0_i32_0 = arith.constant 0 : i32
    %c0_i32_1 = arith.constant 0 : i32
    return %c0_i32, %c0_i32_0 : i32, i32
  }
  func.func @transform_13(%arg0: i32) -> (i32, i32) {
    %c0_i32 = arith.constant 0 : i32
    %c0_i32_0 = arith.constant 0 : i32
    return %arg0, %c0_i32 : i32, i32
  }
}

</mosaic_0001>

<bundles_post_ra>
// kernel: net_forward.1
= control target key start
LH: loop header
LB: loop body
LE: loop exit
PB: predicated region body
PF: predicated region fallthrough
CT: control target
= control target key end

     0   :  { %18 = vsyncpa [#allocation3], 0  ;;  %s9511_s0 = inlined_call_operand.vmem [shape: f32[448,28], index: 0, kind: input, shape index: {}]   ;;  %s9512_s1 = inlined_call_operand.vmem [shape: bf16[5,28,240], index: 1, kind: input, shape index: {}]   ;;  %s9513_s2 = inlined_call_operand.vmem [shape: bf16[2,240,120], index: 2, kind: input, shape index: {}]   ;;  %s9514_s3 = inlined_call_operand.vmem [shape: bf16[2,96,220], index: 3, kind: input, shape index: {}]   ;;  %s9515_s4 = inlined_call_operand.vmem [shape: f32[1,120], index: 4, kind: input, shape index: {}]   ;;  %s9516_s5 = inlined_call_operand.vmem [shape: bf16[5,120,160], index: 5, kind: input, shape index: {}]   ;;  %s9517_s6 = inlined_call_operand.vmem [shape: bf16[2,160,80], index: 6, kind: input, shape index: {}]   ;;  %s9518_s7 = inlined_call_operand.vmem [shape: bf16[2,32,92], index: 7, kind: input, shape index: {}]   ;;  %s9519_s8 = inlined_call_operand.vmem [shape: f32[1,80], index: 8, kind: input, shape index: {}]   ;;  %s9520_s9 = inlined_call_operand.vmem [shape: bf16[4,80,50], index: 9, kind: input, shape index: {}]   ;;  %s9521_s10 = inlined_call_operand.vmem [shape: f32[1,50], index: 10, kind: input, shape index: {}]   ;;  %s9522_s11 = inlined_call_operand.vmem [shape: bf16[50,10], index: 11, kind: input, shape index: {}]   ;;  %s9523_s12 = inlined_call_operand.vmem [shape: f32[1,10], index: 12, kind: input, shape index: {}]   ;;  %s9524_s13 = inlined_call_operand.hbm [shape: f32[16,10], index: 13, kind: output, shape index: {}]  }
   0x1   :  { %20 = vsyncpa [#allocation3 + $0x1], 0  ;;  %s6722_s25 = smov 0   ;;  %s6724_s26 = smov 0  }
   0x2   :  { %s6726_s27 = smov 0   ;;  %s6728_s28 = smov 0  }
   0x3 LB: > { %9554 = sst [smem:[#allocation5_spill]] %s6646_s27  ;;  %s6743_s29 = sadd.s32 4294967295, %s6650_s28   ;;  %s6650_s28 = sphi %s6728_s28, %s9706_s28   ;;  %s6646_s27 = sphi %s6726_s27, %s9708_s27   ;;  %s6642_s26 = sphi %s6724_s26, %s9710_s26   ;;  %s6638_s25 = sphi %s6722_s25, %s9709_s25  }
   0x4   : > { %s5143_s30 = sadd.s32 4294967294, %s6650_s28   ;;  %s6747_s14 = sadd.s32 1, %s6650_s28  }
   0x5   : > { %9555 = sst [smem:[#allocation6_spill]] %s6747_s14  ;;  %s311_s15 = sadd.s32 1, %s6646_s27 }
   0x6   : > { %s308_s16 = ssub.s32 %s6650_s28, %s6747_s14  ;;  %p321_p0 = scmp.ne.s32.totalorder %s6646_s27, %s6642_s26 }
   0x7   : > { %p309_p1 = scmp.eq.s32.totalorder %s308_s16, 0  ;;  %p322_p2 = scmp.eq.s32.totalorder %s6743_s29, 1 }
   0x8   : > { %p327_p3 = scmp.ne.s32.totalorder %s6642_s26, %s6638_s25  ;;  %p328_p4 = scmp.eq.s32.totalorder %s5143_s30, 1 }
   0x9   : > { %s6758_s17 = scalar_select %p309_p1, %s6646_s27, %s311_s15  }
   0xa   : > { %p6760_p5 = por %p322_p2, %p321_p0  ;;  %p6764_p6 = por %p328_p4, %p327_p3 }
   0xb   : > { %9556 = sst [smem:[#allocation7_spill]] %s6758_s17  ;;  %p5146_p7 = scmp.ge.s32.totalorder %s6650_s28, 1 }
   0xc   : > { %s9558_s19 = scalar_select %p6764_p6, 1, 0 }
   0xd   : > { %p391_p8 = scmp.lt.s32.totalorder %s6650_s28, 3 }
   0xe   : > { %9559 = sst [smem:[#allocation8_spill]] %s9558_s19 }
   0xf   : > { %p392_p9 = pnand %p5146_p7, %p391_p8 }
  0x11   : > { %395 = sbr.rel (%p392_p9) target bundleno = 2649 (0xa59), region = 72 }
  0x16   : > { %v5207_v0 = vld [vmem:[%s9512_s1 + $0x10] sm:$0xf]  ;;  %v6353_v1 = vld [vmem:[%s9512_s1 + $0x14] sm:$0x30]  ;;  %vm750_vm0 = vcmask 1045504   ;;  %s435_s24 = smul.u32 28, %s6743_s29 }
  0x17   : > { %v5208_v2 = vor.u32 %v6353_v1, %v5207_v0  ;;  %v6352_v3 = vld [vmem:[%s9512_s1 + $0x14] sm:$0xf]  ;;  %v5209_v4 = vld [vmem:[%s9512_s1 + $0x18] sm:$0x30]  ;;  %v5199_v5 = vld [vmem:[%s9512_s1] sm:$0xf] }
  0x18   : > { %v5212_v6 = vor.u32 %v6352_v3, %v5209_v4  ;;  %v6351_v7 = vld [vmem:[%s9512_s1 + $0x4] sm:$0xf0]  ;;  %v6350_v8 = vld [vmem:[%s9512_s1 + $0x4] sm:$0xf]  ;;  %v5201_v9 = vld [vmem:[%s9512_s1 + $0x8] sm:$0xf0] }
  0x19   : > { %v962_v10 = vsel %vm750_vm0, %v5208_v2, 0  ;;  %v5163_v11 = vld [vmem:[%s9512_s1 + $0x30] sm:$0xf]  ;;  %v6357_v12 = vld [vmem:[%s9512_s1 + $0x34] sm:$0x30]  ;;  %p436_p10 = scmp.lt.s32.totalorder %s435_s24, 55  ;;  %v5200_v14 = vor.u32 %v6351_v7, %v5199_v5  ;;  %v5204_v18 = vor.u32 %v6350_v8, %v5201_v9 }
  0x1a   : > { %973 = vmatpush.bf16.msra.mxu2 %v962_v10  ;;  %v965_v13 = vsel %vm750_vm0, %v5212_v6, 0  ;;  %v5164_v15 = vor.u32 %v6357_v12, %v5163_v11  ;;  %v6356_v16 = vld [vmem:[%s9512_s1 + $0x34] sm:$0xf]  ;;  %v5165_v17 = vld [vmem:[%s9512_s1 + $0x38] sm:$0x30]  ;;  %vm707_vm1 = vcmask 228352  }
  0x1b   : > { %1052 = vmatpush.bf16.msra.mxu3 %v965_v13  ;;  %v5168_v19 = vor.u32 %v6356_v16, %v5165_v17  ;;  %s9712_s24 = smov (!%p436_p10, %s435_s24), 55  ;;  %v5155_v20 = vld [vmem:[%s9512_s1 + $0x20] sm:$0xf]  ;;  %v6355_v21 = vld [vmem:[%s9512_s1 + $0x24] sm:$0xf0]  ;;  %vm1130_vm4 = vcmask 1046528  }
  0x1c   : > { %v752_v22 = vsel %vm750_vm0, %v5164_v15, 0  ;;  %v6354_v23 = vld [vmem:[%s9512_s1 + $0x24] sm:$0xf]  ;;  %v5157_v24 = vld [vmem:[%s9512_s1 + $0x28] sm:$0xf0]  ;;  %s5148_s20 = sshll.u32 %s9712_s24, 3  ;;  %v5156_v26 = vor.u32 %v6355_v21, %v5155_v20 }
  0x1d   : > { %763 = vmatpush.bf16.msra.mxu0 %v752_v22  ;;  %v755_v25 = vsel %vm750_vm0, %v5168_v19, 0  ;;  %s6826_s22 = scalar_lea.vmem %s9511_s0, %s5148_s20  ;;  %v5160_v27 = vor.u32 %v6354_v23, %v5157_v24  ;;  %vm577_vm2 = vsmask.f32 7424  ;;  %vm1443_vm3 = vsmask.f32 6400  ;;  %s432_s21 = sand.u32 1, %s6642_s26  }
  0x1e   : > { %974 = vmatpush.bf16.msra.mxu2 %v5200_v14  ;;  %842 = vmatpush.bf16.msra.mxu1 %v755_v25  ;;  %v442_v28 = vld [vmem:[%s6826_s22] sm:$0xff]  ;;  %v443_v29 = vld [vmem:[%s6826_s22 + $0x8] sm:$0xff]  ;;  %v444_v30 = vld [vmem:[%s6826_s22 + $0x10] sm:$0xff]  ;;  %vm2240_vm5 = vcmask 916480   ;;  %vm2828_vm6 = vcmask 752640   ;;  %vm3345_vm7 = vcmask 1043456  }
  0x1f   : > { %1053 = vmatpush.bf16.msra.mxu3 %v5204_v18  ;;  %v470_v31 = vpack.c.bf16 %v442_v28, %v442_v28  ;;  %v471_v32 = vpack.c.bf16 %v443_v29, %v443_v29  ;;  %v445_v33 = vld [vmem:[%s6826_s22 + $0x18] sm:$0xff]  ;;  %v472_v34 = vpack.c.bf16 %v444_v30, %v444_v30  ;;  %v446_v40 = vld [vmem:[%s6826_s22 + $0x20] sm:$0xff]  ;;  %v447_v41 = vld [vmem:[%s6826_s22 + $0x28] sm:$0xff]  ;;  %vm3326_vm8 = vcmask 982016   ;;  %s6347_s24 = sshll.u32 %s6743_s29, 3  ;;  %s5069_s16 = scalar_lea.sflag [#allocation3], %s432_s21 }
  0x20   : > { %v473_v35 = vpack.c.bf16 %v445_v33, %v445_v33  ;;  %v474_v46 = vpack.c.bf16 %v446_v40, %v446_v40  ;;  %v475_v47 = vpack.c.bf16 %v447_v41, %v447_v41  ;;  %v448_v58 = vld [vmem:[%s6826_s22 + $0x30] sm:$0xff]  ;;  %v449_v59 = vld [vmem:[%s6826_s22 + $0x38] sm:$0xff]  ;;  %v450_v6 = vld [vmem:[%s6826_s22 + $0x40] sm:$0xff]  ;;  %vm4389_vm9 = vcmask 261120   ;;  %s5079_s17 = scalar_lea.hbm %s9524_s13, %s6347_s24 }
  0x21   : > { %764 = vmatpush.bf16.msra.mxu0 %v5156_v26  ;;  %v535_v36 = vunpack.c.l.b16 %v470_v31  ;;  %v536_v37 = vunpack.c.l.b16 %v471_v32  ;;  %v537_v38 = vunpack.c.l.b16 %v472_v34  ;;  %v476_v62 = vpack.c.bf16 %v448_v58, %v448_v58  ;;  %v451_v7 = vld [vmem:[%s6826_s22 + $0x48] sm:$0xff]  ;;  %v452_v18 = vld [vmem:[%s6826_s22 + $0x50] sm:$0xff]  ;;  %v453_v19 = vld [vmem:[%s6826_s22 + $0x58] sm:$0xff]  ;;  %s5083_s14 = sshll.u32 %s5079_s17, 4  ;;  %s5084_s14 = int_to_ptr.hbm [resolvable:$true] %s5083_s14 }
  0x22   : > { %843 = vmatpush.bf16.msra.mxu1 %v5160_v27  ;;  %v538_v39 = vunpack.c.l.b16 %v473_v35  ;;  %v539_v52 = vunpack.c.l.b16 %v474_v46  ;;  %v540_v53 = vunpack.c.l.b16 %v475_v47  ;;  %v477_v63 = vpack.c.bf16 %v449_v59, %v449_v59  ;;  %v454_v30 = vld [vmem:[%s6826_s22 + $0x60] sm:$0xff]  ;;  %v455_v31 = vld [vmem:[%s6826_s22 + $0x68] sm:$0xff]  ;;  %v456_v46 = vld [vmem:[%s6826_s22 + $0x70] sm:$0xff]  ;;  %s6602_s20 = sshra.s32 %s5084_s14, 4  ;;  %s6603_s20 = int_to_ptr.hbm [resolvable:$true] %s6602_s20 }
  0x23   : > { %v6834_v42 = vpack.c.b16 %v536_v37, %v535_v36  ;;  %v541_v1 = vunpack.c.l.b16 %v476_v62  ;;  %v478_v10 = vpack.c.bf16 %v450_v6, %v450_v6  ;;  %v479_v11 = vpack.c.bf16 %v451_v7, %v451_v7  ;;  %v457_v47 = vld [vmem:[%s6826_s22 + $0x78] sm:$0xff]  ;;  %v458_v62 = vld [vmem:[%s6826_s22 + $0x80] sm:$0xff]  ;;  %s6604_s19 = scalar_lea.hbm %s6603_s20, 8  ;;  %p6609_p0 = scmp.lt.s32.totalorder %s6603_s20, %s9524_s13 }
  0x24   : > { %v6836_v43 = vpack.c.b16 %v538_v39, %v537_v38  ;;  %v6854_v55 = vpack.c.b16 %v540_v53, %v539_v52  ;;  %v542_v2 = vunpack.c.l.b16 %v477_v63  ;;  %v480_v22 = vpack.c.bf16 %v452_v18, %v452_v18  ;;  %v459_v63 = vld [vmem:[%s6826_s22 + $0x88] sm:$0xff]  ;;  %p6605_p11 = scmp.ne.s32.totalorder %s6603_s20, %s6604_s19 }
  0x25   : > { %5213 = vmatmul.msk.bf16.vlgmr.msra.gmra.mxu2 %vm707_vm1, %v6834_v42  ;;  %5227 = vmatmul.msk.bf16.vlgmr.msra.gmra.mxu3 %vm707_vm1, %v6834_v42  ;;  %v579_v44 = vshrl.u32 %v6834_v42, 16  ;;  %v581_v45 = vshll.u32 %v6834_v42, 16  ;;  %v543_v13 = vunpack.c.l.b16 %v478_v10  ;;  %v544_v14 = vunpack.c.l.b16 %v479_v11 }
  0x26   : > { %v586_v48 = vshll.u32 %v6836_v43, 16  ;;  %v590_v56 = vshrl.u32 %v6836_v43, 16  ;;  %v594_v57 = vshll.u32 %v6854_v55, 16  ;;  %v6871_v3 = vpack.c.b16 %v542_v2, %v541_v1  ;;  %p6606_p12 = pnand %p6605_p11, %p6760_p5 }
  0x27   : > { %v583_v49 = vrot.slane %v581_v45, 1  ;;  %v598_v4 = vshrl.u32 %v6854_v55, 16  ;;  %v6888_v15 = vpack.c.b16 %v544_v14, %v543_v13  ;;  %v481_v23 = vpack.c.bf16 %v453_v19, %v453_v19  ;;  %v460_v13 = vld [vmem:[%s6826_s22 + $0x90] sm:$0xff]  ;;  %v461_v14 = vld [vmem:[%s6826_s22 + $0x98] sm:$0xff] }
  0x28   : > { %v588_v50 = vrot.slane %v586_v48, 1  ;;  %v596_v61 = vrot.slane %v594_v57, 1  ;;  %9560 = vst [vmem:[#allocation9_spill] sm:$0xff] %v6871_v3  ;;  %v602_v5 = vshll.u32 %v6871_v3, 16  ;;  %v606_v16 = vshrl.u32 %v6871_v3, 16  ;;  %p6607_p13 = pneg %p6606_p12 }
  0x29   : > { %v584_v51 = vor.u32 %v583_v49, %v579_v44  ;;  %9561 = vst [vmem:[#allocation10_spill] sm:$0xff] %v6888_v15  ;;  %v610_v17 = vshll.u32 %v6888_v15, 16  ;;  %v545_v25 = vunpack.c.l.b16 %v480_v22  ;;  %v546_v26 = vunpack.c.l.b16 %v481_v23 }
  0x2a   : > { %v592_v60 = vor.u32 %v590_v56, %v588_v50  ;;  %v600_v8 = vor.u32 %v598_v4, %v596_v61  ;;  %v604_v9 = vrot.slane %v602_v5, 1  ;;  %v614_v28 = vshrl.u32 %v6888_v15, 16 }
  0x2b   : > { %v589_v54 = vsel %vm577_vm2, %v584_v51, %v588_v50  ;;  %v612_v21 = vrot.slane %v610_v17, 1  ;;  %v6905_v27 = vpack.c.b16 %v546_v26, %v545_v25  ;;  %v482_v34 = vpack.c.bf16 %v454_v30, %v454_v30 }
  0x2c   : > { %5169 = vmatmul.msk.bf16.vlgmr.msra.gmra.mxu0 %vm707_vm1, %v589_v54  ;;  %5183 = vmatmul.msk.bf16.vlgmr.msra.gmra.mxu1 %vm707_vm1, %v589_v54  ;;  %v597_v0 = vsel %vm577_vm2, %v592_v60, %v596_v61  ;;  %v605_v12 = vsel %vm577_vm2, %v600_v8, %v604_v9  ;;  %v608_v20 = vor.u32 %v606_v16, %v604_v9  ;;  %vm4816_vm10 = vcmask 654336  }
  0x2d   : > { %9562 = vst [vmem:[#allocation11_spill] sm:$0xff] %v6905_v27  ;;  %v9545_v29 = vshll.u32 %v6905_v27, 16  ;;  %v616_v32 = vor.u32 %v614_v28, %v612_v21  ;;  %v483_v35 = vpack.c.bf16 %v455_v31, %v455_v31  ;;  %v547_v37 = vunpack.c.l.b16 %v482_v34  ;;  %v462_v31 = vld [vmem:[%s6826_s22 + $0xa0] sm:$0xff] }
  0x2e   : > { %v613_v24 = vsel %vm577_vm2, %v608_v20, %v612_v21  ;;  %v9546_v40 = vshrl.u32 %v6905_v27, 16  ;;  %v484_v51 = vpack.c.bf16 %v456_v46, %v456_v46  ;;  %v485_v52 = vpack.c.bf16 %v457_v47, %v457_v47 }
  0x2f   : > { %v620_v33 = vrot.slane %v9545_v29, 1  ;;  %v548_v38 = vunpack.c.l.b16 %v483_v35  ;;  %v486_v2 = vpack.c.bf16 %v458_v62, %v458_v62  ;;  %v487_v6 = vpack.c.bf16 %v459_v63, %v459_v63 }
  0x30   : > { %v549_v54 = vunpack.c.l.b16 %v484_v51  ;;  %v550_v58 = vunpack.c.l.b16 %v485_v52  ;;  %v488_v20 = vpack.c.bf16 %v460_v13, %v460_v13  ;;  %v489_v21 = vpack.c.bf16 %v461_v14, %v461_v14 }
  0x31   : > { %v621_v36 = vsel %vm577_vm2, %v616_v32, %v620_v33  ;;  %v6922_v39 = vpack.c.b16 %v548_v38, %v547_v37  ;;  %v624_v49 = vor.u32 %v9546_v40, %v620_v33  ;;  %v551_v8 = vunpack.c.l.b16 %v486_v2  ;;  %v463_v32 = vld [vmem:[%s6826_s22 + $0xa8] sm:$0xff] }
  0x32   : > { %v6939_v59 = vpack.c.b16 %v550_v58, %v549_v54  ;;  %v552_v9 = vunpack.c.l.b16 %v487_v6  ;;  %v553_v23 = vunpack.c.l.b16 %v488_v20  ;;  %v490_v35 = vpack.c.bf16 %v462_v31, %v462_v31 }
  0x33   : > { %9563 = vst [vmem:[#allocation12_spill] sm:$0xff] %v6922_v39  ;;  %v9543_v41 = vshll.u32 %v6922_v39, 16  ;;  %v9544_v60 = vshrl.u32 %v6922_v39, 16  ;;  %vm5037_vm11 = vcmask 1040384   ;;  %vm5033_vm12 = vcmask 408576  }
  0x34   : > { %9564 = vst [vmem:[#allocation13_spill] sm:$0xff] %v6939_v59  ;;  %v9541_v61 = vshll.u32 %v6939_v59, 16  ;;  %v6956_v10 = vpack.c.b16 %v552_v9, %v551_v8  ;;  %v9542_v11 = vshrl.u32 %v6939_v59, 16  ;;  %v464_v8 = vld [vmem:[%s6826_s22 + $0xb0] sm:$0xff]  ;;  %v465_v9 = vld [vmem:[%s6826_s22 + $0xb8] sm:$0xff]  ;;  %vm5054_vm13 = vcmask 80896  }
  0x35   : > { %5214 = vmatmul.msk.bf16.gmra.mxu2 %vm707_vm1, %v6836_v43  ;;  %5228 = vmatmul.msk.bf16.gmra.mxu3 %vm707_vm1, %v6836_v43  ;;  %v628_v50 = vrot.slane %v9543_v41, 1 }
  0x36   : > { %v636_v1 = vrot.slane %v9541_v61, 1  ;;  %9565 = vst [vmem:[#allocation14_spill] sm:$0xff] %v6956_v10  ;;  %v9540_v26 = vshrl.u32 %v6956_v10, 16 }
  0x37   : > { %v629_v53 = vsel %vm577_vm2, %v624_v49, %v628_v50 }
  0x38   : > { %v640_v18 = vor.u32 %v9542_v11, %v636_v1 }
  0x3c   : > { %5170 = vmatmul.msk.bf16.gmra.mxu0 %vm707_vm1, %v597_v0  ;;  %5184 = vmatmul.msk.bf16.gmra.mxu1 %vm707_vm1, %v597_v0  ;;  %v632_v0 = vor.u32 %v9544_v60, %v628_v50  ;;  %v555_v50 = vunpack.c.l.b16 %v490_v35 }
  0x3e   : > { %v637_v7 = vsel %vm577_vm2, %v632_v0, %v636_v1 }
  0x45   : > { %5215 = vmatmul.msk.bf16.gmra.mxu2 %vm707_vm1, %v6854_v55  ;;  %5229 = vmatmul.msk.bf16.gmra.mxu3 %vm707_vm1, %v6854_v55 }
  0x4c   : > { %5171 = vmatmul.msk.bf16.gmra.mxu0 %vm707_vm1, %v605_v12  ;;  %5185 = vmatmul.msk.bf16.gmra.mxu1 %vm707_vm1, %v605_v12  ;;  %v9538_v12 = vshll.u32 %v6956_v10, 16 }
  0x4e   : > { %v644_v19 = vrot.slane %v9538_v12, 1 }
  0x50   : > { %v645_v22 = vsel %vm577_vm2, %v640_v18, %v644_v19  ;;  %v648_v33 = vor.u32 %v9540_v26, %v644_v19  ;;  %v492_v18 = vpack.c.bf16 %v464_v8, %v464_v8  ;;  %v493_v19 = vpack.c.bf16 %v465_v9, %v465_v9 }
  0x52   : > { %v557_v31 = vunpack.c.l.b16 %v492_v18 }
  0x55   : > { %5216 = vmatmul.msk.bf16.gmra.mxu2 %vm707_vm1, %v6871_v3  ;;  %5230 = vmatmul.msk.bf16.gmra.mxu3 %vm707_vm1, %v6871_v3 }
  0x5c   : > { %5172 = vmatmul.msk.bf16.gmra.mxu0 %vm707_vm1, %v613_v24  ;;  %5186 = vmatmul.msk.bf16.gmra.mxu1 %vm707_vm1, %v613_v24  ;;  %v554_v24 = vunpack.c.l.b16 %v489_v21 }
  0x5e   : > { %v6973_v25 = vpack.c.b16 %v554_v24, %v553_v23 }
  0x60   : > { %9566 = vst [vmem:[#allocation15_spill] sm:$0xff] %v6973_v25  ;;  %v9533_v30 = vshll.u32 %v6973_v25, 16  ;;  %v9537_v1 = vshrl.u32 %v6973_v25, 16 }
  0x62   : > { %v652_v34 = vrot.slane %v9533_v30, 1 }
  0x64   : > { %v653_v49 = vsel %vm577_vm2, %v648_v33, %v652_v34  ;;  %v656_v13 = vor.u32 %v9537_v1, %v652_v34 }
  0x65   : > { %5217 = vmatmul.msk.bf16.gmra.mxu2 %vm707_vm1, %v6888_v15  ;;  %5231 = vmatmul.msk.bf16.gmra.mxu3 %vm707_vm1, %v6888_v15 }
  0x6c   : > { %5173 = vmatmul.msk.bf16.gmra.mxu0 %vm707_vm1, %v621_v36  ;;  %5187 = vmatmul.msk.bf16.gmra.mxu1 %vm707_vm1, %v621_v36  ;;  %v491_v36 = vpack.c.bf16 %v463_v32, %v463_v32  ;;  %v558_v32 = vunpack.c.l.b16 %v493_v19 }
  0x6e   : > { %v556_v51 = vunpack.c.l.b16 %v491_v36  ;;  %v7019_v34 = vpack.c.b16 %v558_v32, %v557_v31 }
  0x70   : > { %v6994_v54 = vpack.c.b16 %v556_v51, %v555_v50 }
  0x72   : > { %v9531_v2 = vshll.u32 %v6994_v54, 16 }
  0x74   : > { %v660_v14 = vrot.slane %v9531_v2, 1 }
  0x75   : > { %5218 = vmatmul.msk.bf16.gmra.mxu2 %vm707_vm1, %v6905_v27  ;;  %5232 = vmatmul.msk.bf16.gmra.mxu3 %vm707_vm1, %v6905_v27 }
  0x76   : > { %v661_v24 = vsel %vm577_vm2, %v656_v13, %v660_v14 }
  0x7c   : > { %5174 = vmatmul.msk.bf16.gmra.mxu0 %vm707_vm1, %v629_v53  ;;  %5188 = vmatmul.msk.bf16.gmra.mxu1 %vm707_vm1, %v629_v53 }
  0x85   : > { %5219 = vmatmul.msk.bf16.gmra.mxu2 %vm707_vm1, %v6922_v39  ;;  %5233 = vmatmul.msk.bf16.gmra.mxu3 %vm707_vm1, %v6922_v39 }
  0x8c   : > { %5175 = vmatmul.msk.bf16.gmra.mxu0 %vm707_vm1, %v637_v7  ;;  %5189 = vmatmul.msk.bf16.gmra.mxu1 %vm707_vm1, %v637_v7 }
  0x95   : > { %5220 = vmatmul.msk.bf16.gmra.mxu2 %vm707_vm1, %v6939_v59  ;;  %5234 = vmatmul.msk.bf16.gmra.mxu3 %vm707_vm1, %v6939_v59 }
  0x9c   : > { %5176 = vmatmul.msk.bf16.gmra.mxu0 %vm707_vm1, %v645_v22  ;;  %5190 = vmatmul.msk.bf16.gmra.mxu1 %vm707_vm1, %v645_v22 }
  0xa5   : > { %5221 = vmatmul.msk.bf16.gmra.mxu2 %vm707_vm1, %v6956_v10  ;;  %5235 = vmatmul.msk.bf16.gmra.mxu3 %vm707_vm1, %v6956_v10 }
  0xa8   : > { %v976_v37 = vpop.f32.mrf.mxu2  ;;  %v1055_v38 = vpop.f32.mrf.mxu3 }
  0xa9   : > { %v766_v46 = vpop.f32.mrf.mxu0  ;;  %v845_v47 = vpop.f32.mrf.mxu1 }
  0xaa   : > { %v6988_v52 = vadd.f32 %v976_v37, %v766_v46  ;;  %v6990_v53 = vadd.f32 %v1055_v38, %v845_v47  ;;  %v9532_v47 = vshrl.u32 %v6994_v54, 16 }
  0xac   : > { %5177 = vmatmul.msk.bf16.gmra.mxu0 %vm707_vm1, %v653_v49  ;;  %5191 = vmatmul.msk.bf16.gmra.mxu1 %vm707_vm1, %v653_v49  ;;  %v9529_v49 = vshll.u32 %v7019_v34, 16 }
  0xb0   : > { %v978_v58 = vpop.f32.mrf.mxu2  ;;  %v1057_v62 = vpop.f32.mrf.mxu3 }
  0xb1   : > { %v768_v63 = vpop.f32.mrf.mxu0  ;;  %v847_v0 = vpop.f32.mrf.mxu1 }
  0xb2   : > { %v6998_v6 = vadd.f32 %v978_v58, %v768_v63  ;;  %v7000_v7 = vadd.f32 %v1057_v62, %v847_v0  ;;  %v466_v58 = vld [vmem:[%s6826_s22 + $0xc0] sm:$0xff]  ;;  %v467_v62 = vld [vmem:[%s6826_s22 + $0xc8] sm:$0xff]  ;;  %v664_v63 = vor.u32 %v9532_v47, %v660_v14  ;;  %v668_v0 = vrot.slane %v9529_v49, 1 }
  0xb3   : > { %v494_v8 = vpack.c.bf16 %v466_v58, %v466_v58  ;;  %v495_v9 = vpack.c.bf16 %v467_v62, %v467_v62  ;;  %v468_v62 = vld [vmem:[%s6826_s22 + $0xd0] sm:$0xff] }
  0xb5   : > { %5222 = vmatmul.msk.bf16.gmra.mxu2 %vm707_vm1, %v6973_v25  ;;  %5236 = vmatmul.msk.bf16.gmra.mxu3 %vm707_vm1, %v6973_v25 }
  0xb8   : > { %v981_v20 = vpop.f32.mrf.mxu2  ;;  %v1060_v21 = vpop.f32.mrf.mxu3 }
  0xb9   : > { %v771_v22 = vpop.f32.mrf.mxu0  ;;  %v850_v23 = vpop.f32.mrf.mxu1 }
  0xba   : > { %v7013_v33 = vadd.f32 %v981_v20, %v771_v22  ;;  %v7015_v35 = vadd.f32 %v1060_v21, %v850_v23  ;;  %v669_v21 = vsel %vm577_vm2, %v664_v63, %v668_v0  ;;  %v559_v22 = vunpack.c.l.b16 %v494_v8  ;;  %v469_v63 = vld [vmem:[%s6826_s22 + $0xd8] sm:$0xff]  ;;  %s5147_s22 = sshll.u32 %s432_s21, 3 }
  0xbb   : > { %v560_v23 = vunpack.c.l.b16 %v495_v9  ;;  %s434_s15 = scalar_lea.vmem [#allocation2], %s5147_s22  ;;  %s6608_s22 = scalar_lea.hbm %s9524_s13, 16 }
  0xbc   : > { %5178 = vmatmul.msk.bf16.gmra.mxu0 %vm707_vm1, %v661_v24  ;;  %5192 = vmatmul.msk.bf16.gmra.mxu1 %vm707_vm1, %v661_v24  ;;  %s5081_s27 = sshll.u32 %s434_s15, 4  ;;  %p6610_p1 = scmp.lt.s32.totalorder %s6608_s22, %s6604_s19  ;;  %s5082_s27 = int_to_ptr.vmem [resolvable:$true] %s5081_s27 }
  0xbd   : > { %v7044_v14 = vpack.c.b16 %v560_v23, %v559_v22 }
  0xbe   : > { %p6611_p2 = por %p6610_p1, %p6609_p0 }
  0xbf   : > { %v9535_v58 = vshll.u32 %v7044_v14, 16 }
  0xc0   : > { %v983_v36 = vpop.f32.mrf.mxu2  ;;  %v1062_v37 = vpop.f32.mrf.mxu3  ;;  %p6612_p3 = pnand %p6611_p2, %p6607_p13 }
  0xc1   : > { %v773_v38 = vpop.f32.mrf.mxu0  ;;  %v852_v46 = vpop.f32.mrf.mxu1 }
  0xc2   : > { %v7023_v50 = vadd.f32 %v983_v36, %v773_v38  ;;  %v7025_v51 = vadd.f32 %v1062_v37, %v852_v46  ;;  %v9530_v37 = vshrl.u32 %v7019_v34, 16 }
  0xc4   : > { %v672_v22 = vor.u32 %v9530_v37, %v668_v0 }
  0xc5   : > { %5223 = vmatmul.msk.bf16.gmra.mxu2 %vm707_vm1, %v6994_v54  ;;  %5237 = vmatmul.msk.bf16.gmra.mxu3 %vm707_vm1, %v6994_v54 }
  0xc8   : > { %v986_v13 = vpop.f32.mrf.mxu2  ;;  %v1065_v18 = vpop.f32.mrf.mxu3 }
  0xc9   : > { %v776_v19 = vpop.f32.mrf.mxu0  ;;  %v855_v20 = vpop.f32.mrf.mxu1 }
  0xca   : > { %v7038_v24 = vadd.f32 %v986_v13, %v776_v19  ;;  %v7040_v31 = vadd.f32 %v1065_v18, %v855_v20  ;;  %v5255_v13 = vld [vmem:[%s9512_s1 + $0x50] sm:$0xf]  ;;  %v6361_v18 = vld [vmem:[%s9512_s1 + $0x54] sm:$0x30]  ;;  %v6360_v19 = vld [vmem:[%s9512_s1 + $0x54] sm:$0xf] }
  0xcb   : > { %v5256_v20 = vor.u32 %v6361_v18, %v5255_v13 }
  0xcc   : > { %5179 = vmatmul.msk.bf16.gmra.mxu0 %vm707_vm1, %v669_v21  ;;  %5193 = vmatmul.msk.bf16.gmra.mxu1 %vm707_vm1, %v669_v21  ;;  %v5257_v21 = vld [vmem:[%s9512_s1 + $0x58] sm:$0x30] }
  0xcd   : > { %v5260_v23 = vor.u32 %v6360_v19, %v5257_v21 }
  0xcf   : > { %v1222_v13 = vsel %vm750_vm0, %v5260_v23, 0  ;;  %v1448_v23 = vrot.slane %v586_v48, 2  ;;  %v9536_v48 = vshrl.u32 %v7044_v14, 16 }
  0xd0   : > { %v988_v32 = vpop.f32.mrf.mxu2  ;;  %v1067_v36 = vpop.f32.mrf.mxu3  ;;  %1309 = vmatpush.bf16.msrb.mxu1 %v1222_v13 }
  0xd1   : > { %v778_v38 = vpop.f32.mrf.mxu0  ;;  %v857_v46 = vpop.f32.mrf.mxu1 }
  0xd2   : > { %v7050_v8 = vadd.f32 %v988_v32, %v778_v38  ;;  %v7052_v9 = vadd.f32 %v1067_v36, %v857_v46  ;;  %v676_v32 = vrot.slane %v9535_v58, 1  ;;  %v496_v36 = vpack.c.bf16 %v468_v62, %v468_v62 }
  0xd3   : > { %v497_v38 = vpack.c.bf16 %v469_v63, %v469_v63  ;;  %v1219_v46 = vsel %vm750_vm0, %v5256_v20, 0  ;;  %v5303_v63 = vld [vmem:[%s9512_s1 + $0x70] sm:$0xf]  ;;  %v6365_v20 = vld [vmem:[%s9512_s1 + $0x74] sm:$0x30] }
  0xd4   : > { %1230 = vmatpush.bf16.msrb.mxu0 %v1219_v46  ;;  %v677_v49 = vsel %vm577_vm2, %v672_v22, %v676_v32  ;;  %v561_v37 = vunpack.c.l.b16 %v496_v36  ;;  %v6364_v22 = vld [vmem:[%s9512_s1 + $0x74] sm:$0xf] }
  0xd5   : > { %5224 = vmatmul.msk.bf16.gmra.mxu2 %vm707_vm1, %v7019_v34  ;;  %5238 = vmatmul.msk.bf16.gmra.mxu3 %vm707_vm1, %v7019_v34  ;;  %v562_v2 = vunpack.c.l.b16 %v497_v38 }
  0xd7   : > { %v7083_v62 = vpack.c.b16 %v562_v2, %v561_v37  ;;  %v5304_v2 = vor.u32 %v6365_v20, %v5303_v63  ;;  %v5305_v37 = vld [vmem:[%s9512_s1 + $0x78] sm:$0x30] }
  0xd8   : > { %v991_v18 = vpop.f32.mrf.mxu2  ;;  %v1070_v0 = vpop.f32.mrf.mxu3  ;;  %v5308_v36 = vor.u32 %v6364_v22, %v5305_v37  ;;  %v5295_v22 = vld [vmem:[%s9512_s1 + $0x60] sm:$0xf] }
  0xd9   : > { %v781_v19 = vpop.f32.mrf.mxu0  ;;  %v860_v21 = vpop.f32.mrf.mxu1  ;;  %v1560_v13 = vsel %vm750_vm0, %v5304_v2, 0  ;;  %v6362_v2 = vld [vmem:[%s9512_s1 + $0x64] sm:$0xf] }
  0xda   : > { %v7077_v47 = vadd.f32 %v991_v18, %v781_v19  ;;  %v7079_v30 = vadd.f32 %v1070_v0, %v860_v21  ;;  %v1444_v18 = vrot.slane %v579_v44, 1  ;;  %v9534_v21 = vshll.u32 %v7083_v62, 16  ;;  %1571 = vmatpush.bf16.msrb.mxu2 %v1560_v13  ;;  %v6363_v44 = vld [vmem:[%s9512_s1 + $0x64] sm:$0xf0] }
  0xdc   : > { %5180 = vmatmul.msk.bf16.gmra.mxu0 %vm707_vm1, %v677_v49  ;;  %5194 = vmatmul.msk.bf16.gmra.mxu1 %vm707_vm1, %v677_v49  ;;  %v1447_v49 = vrot.slane %v590_v56, 1  ;;  %v1563_v56 = vsel %vm750_vm0, %v5308_v36, 0  ;;  %v5296_v36 = vor.u32 %v6363_v44, %v5295_v22 }
  0xdd   : > { %1650 = vmatpush.bf16.msrb.mxu3 %v1563_v56  ;;  %v6358_v56 = vld [vmem:[%s9512_s1 + $0x44] sm:$0xf] }
  0xde   : > { %v7120_v37 = vor.u32 %v1448_v23, %v1447_v49  ;;  %v680_v23 = vor.u32 %v9536_v48, %v676_v32  ;;  %v684_v49 = vrot.slane %v9534_v21, 1  ;;  %1572 = vmatpush.bf16.msrb.mxu2 %v5296_v36 }
  0xe0   : > { %v993_v38 = vpop.f32.mrf.mxu2  ;;  %v1072_v46 = vpop.f32.mrf.mxu3 }
  0xe1   : > { %v783_v0 = vpop.f32.mrf.mxu0  ;;  %v862_v19 = vpop.f32.mrf.mxu1 }
  0xe2   : > { %v7107_v63 = vadd.f32 %v993_v38, %v783_v0  ;;  %v7109_v20 = vadd.f32 %v1072_v46, %v862_v19  ;;  %v5297_v38 = vld [vmem:[%s9512_s1 + $0x68] sm:$0xf0]  ;;  %v1445_v46 = vrot.slane %v581_v45, 2  ;;  %v5247_v45 = vld [vmem:[%s9512_s1 + $0x40] sm:$0xf] }
  0xe3   : > { %v5300_v13 = vor.u32 %v6362_v2, %v5297_v38  ;;  %v6359_v19 = vld [vmem:[%s9512_s1 + $0x44] sm:$0xf0] }
  0xe4   : > { %v1446_v0 = vor.u32 %v1445_v46, %v1444_v18  ;;  %v5248_v22 = vor.u32 %v6359_v19, %v5247_v45  ;;  %v5249_v18 = vld [vmem:[%s9512_s1 + $0x48] sm:$0xf0] }
  0xe5   : > { %5225 = vmatmul.msk.bf16.gmra.mxu2 %vm707_vm1, %v7044_v14  ;;  %5239 = vmatmul.msk.bf16.gmra.mxu3 %vm707_vm1, %v7044_v14  ;;  %v5252_v36 = vor.u32 %v6358_v56, %v5249_v18 }
  0xe6   : > { %1651 = vmatpush.bf16.msrb.mxu3 %v5300_v13  ;;  %v1450_v32 = vsel %vm1443_vm3, %v1446_v0, %v7120_v37  ;;  %v685_v13 = vsel %vm577_vm2, %v680_v23, %v684_v49  ;;  %1231 = vmatpush.bf16.msrb.mxu0 %v5248_v22  ;;  %v9539_v23 = vshrl.u32 %v7083_v62, 16 }
  0xe7   : > { %1310 = vmatpush.bf16.msrb.mxu1 %v5252_v36 }
  0xe8   : > { %v996_v44 = vpop.f32.mrf.mxu2  ;;  %v1075_v2 = vpop.f32.mrf.mxu3 }
  0xe9   : > { %v786_v38 = vpop.f32.mrf.mxu0  ;;  %v865_v46 = vpop.f32.mrf.mxu1 }
  0xea   : > { %v7150_v21 = vadd.f32 %v996_v44, %v786_v38  ;;  %v7152_v58 = vadd.f32 %v1075_v2, %v865_v46  ;;  %v688_v44 = vor.u32 %v9539_v23, %v684_v49  ;;  %v1131_v49 = vrot.slane %v6834_v42, 1 }
  0xec   : > { %5181 = vmatmul.msk.bf16.gmra.mxu0 %vm707_vm1, %v685_v13  ;;  %5195 = vmatmul.msk.bf16.gmra.mxu1 %vm707_vm1, %v685_v13 }
  0xf0   : > { %v998_v0 = vpop.f32.mrf.mxu2  ;;  %v1077_v45 = vpop.f32.mrf.mxu3 }
  0xf1   : > { %v788_v19 = vpop.f32.mrf.mxu0  ;;  %v867_v48 = vpop.f32.mrf.mxu1 }
  0xf2   : > { %v7156_v1 = vadd.f32 %v998_v0, %v788_v19  ;;  %v7158_v56 = vadd.f32 %v1077_v45, %v867_v48 }
  0xf5   : > { %5226 = vmatmul.msk.bf16.gmra.mxu2 %vm707_vm1, %v7083_v62  ;;  %5240 = vmatmul.msk.bf16.gmra.mxu3 %vm707_vm1, %v7083_v62 }
  0xf8   : > { %v1001_v22 = vpop.f32.mrf.mxu2  ;;  %v1080_v18 = vpop.f32.mrf.mxu3 }
  0xf9   : > { %v791_v2 = vpop.f32.mrf.mxu0  ;;  %v870_v36 = vpop.f32.mrf.mxu1 }
  0xfa   : > { %v7167_v38 = vadd.f32 %v1001_v22, %v791_v2  ;;  %v7169_v46 = vadd.f32 %v1080_v18, %v870_v36  ;;  %v1132_v22 = vrot.slane %v6836_v43, 1 }
  0xfc   : > { %5182 = vmatmul.msk.bf16.gmra.mxu0 %vm707_vm1, %v688_v44  ;;  %5196 = vmatmul.msk.bf16.gmra.mxu1 %vm707_vm1, %v688_v44  ;;  %v1133_v23 = vsel %vm1130_vm4, %v1131_v49, %v1132_v22 }
 0x100   : > { %v1003_v48 = vpop.f32.mrf.mxu2  ;;  %v1082_v13 = vpop.f32.mrf.mxu3 }
 0x101   : > { %v793_v0 = vpop.f32.mrf.mxu0  ;;  %v872_v45 = vpop.f32.mrf.mxu1 }
 0x102   : > { %v7173_v19 = vadd.f32 %v1003_v48, %v793_v0  ;;  %v7175_v12 = vadd.f32 %v1082_v13, %v872_v45  ;;  %v1451_v13 = vrot.slane %v598_v4, 1 }
 0x105   : > { %5309 = vmatmul.msk.bf16.vlgmr.msrb.gmra.mxu2 %vm707_vm1, %v1450_v32  ;;  %5323 = vmatmul.msk.bf16.vlgmr.msrb.gmra.mxu3 %vm707_vm1, %v1450_v32  ;;  %v1452_v32 = vrot.slane %v594_v57, 2  ;;  %v1134_v57 = vrot.slane %v6854_v55, 1 }
 0x107   : > { %v1453_v0 = vor.u32 %v1452_v32, %v1451_v13  ;;  %v1135_v13 = vsel %vm1130_vm4, %v1132_v22, %v1134_v57 }
 0x108   : > { %v1006_v18 = vpop.f32.mrf.mxu2  ;;  %v1085_v2 = vpop.f32.mrf.mxu3 }
 0x109   : > { %v796_v44 = vpop.f32.mrf.mxu0  ;;  %v875_v36 = vpop.f32.mrf.mxu1 }
 0x10a   : > { %v7182_v26 = vadd.f32 %v1006_v18, %v796_v44  ;;  %v7184_v48 = vadd.f32 %v1085_v2, %v875_v36  ;;  %v1454_v2 = vsel %vm1443_vm3, %v7120_v37, %v1453_v0 }
 0x10c   : > { %5261 = vmatmul.msk.bf16.vlgmr.msrb.gmra.mxu0 %vm707_vm1, %v1133_v23  ;;  %5275 = vmatmul.msk.bf16.vlgmr.msrb.gmra.mxu1 %vm707_vm1, %v1133_v23 }
 0x110   : > { %v1008_v45 = vpop.f32.mrf.mxu2  ;;  %v1087_v61 = vpop.f32.mrf.mxu3 }
 0x111   : > { %v798_v11 = vpop.f32.mrf.mxu0  ;;  %v877_v41 = vpop.f32.mrf.mxu1 }
 0x112   : > { %v7192_v49 = vadd.f32 %v1008_v45, %v798_v11  ;;  %v7194_v18 = vadd.f32 %v1087_v61, %v877_v41  ;;  %v1455_v41 = vrot.slane %v606_v16, 1  ;;  %v1456_v61 = vrot.slane %v602_v5, 2 }
 0x113   : > { %v1136_v5 = vrot.slane %v6871_v3, 1 }
 0x114   : > { %v1457_v37 = vor.u32 %v1456_v61, %v1455_v41 }
 0x115   : > { %5310 = vmatmul.msk.bf16.gmra.mxu2 %vm707_vm1, %v1454_v2  ;;  %5324 = vmatmul.msk.bf16.gmra.mxu3 %vm707_vm1, %v1454_v2  ;;  %v1137_v41 = vsel %vm1130_vm4, %v1134_v57, %v1136_v5 }
 0x118   : > { %v1011_v4 = vpop.f32.mrf.mxu2  ;;  %v1090_v23 = vpop.f32.mrf.mxu3 }
 0x119   : > { %v801_v44 = vpop.f32.mrf.mxu0  ;;  %v880_v36 = vpop.f32.mrf.mxu1 }
 0x11a   : > { %v7202_v32 = vadd.f32 %v1011_v4, %v801_v44  ;;  %v7204_v11 = vadd.f32 %v1090_v23, %v880_v36  ;;  %v1458_v23 = vsel %vm1443_vm3, %v1453_v0, %v1457_v37  ;;  %v1460_v0 = vrot.slane %v610_v17, 2 }
 0x11b   : > { %v1138_v17 = vrot.slane %v6888_v15, 1 }
 0x11c   : > { %5262 = vmatmul.msk.bf16.gmra.mxu0 %vm707_vm1, %v1135_v13  ;;  %5276 = vmatmul.msk.bf16.gmra.mxu1 %vm707_vm1, %v1135_v13 }
 0x120   : > { %v1013_v45 = vpop.f32.mrf.mxu2  ;;  %v1092_v2 = vpop.f32.mrf.mxu3 }
 0x121   : > { %v803_v60 = vpop.f32.mrf.mxu0  ;;  %v882_v29 = vpop.f32.mrf.mxu1 }
 0x122   : > { %v7212_v22 = vadd.f32 %v1013_v45, %v803_v60  ;;  %v7214_v4 = vadd.f32 %v1092_v2, %v882_v29  ;;  %v1459_v29 = vrot.slane %v614_v28, 1 }
 0x124   : > { %v1461_v45 = vor.u32 %v1460_v0, %v1459_v29  ;;  %v1139_v29 = vsel %vm1130_vm4, %v1136_v5, %v1138_v17 }
 0x125   : > { %5311 = vmatmul.msk.bf16.gmra.mxu2 %vm707_vm1, %v1458_v23  ;;  %5325 = vmatmul.msk.bf16.gmra.mxu3 %vm707_vm1, %v1458_v23 }
 0x128   : > { %v1016_v16 = vpop.f32.mrf.mxu2  ;;  %v1095_v44 = vpop.f32.mrf.mxu3 }
 0x129   : > { %v806_v36 = vpop.f32.mrf.mxu0  ;;  %v885_v13 = vpop.f32.mrf.mxu1 }
 0x12a   : > { %v7221_v61 = vadd.f32 %v1016_v16, %v806_v36  ;;  %v7223_v60 = vadd.f32 %v1095_v44, %v885_v13  ;;  %v1462_v44 = vsel %vm1443_vm3, %v1457_v37, %v1461_v45  ;;  %v9572_v37 = vshll.u32 %v6905_v27, 16 }
 0x12c   : > { %9567 = vst [vmem:[#allocation16_spill] sm:$0xff] %v7223_v60  ;;  %5263 = vmatmul.msk.bf16.gmra.mxu0 %vm707_vm1, %v1137_v41  ;;  %5277 = vmatmul.msk.bf16.gmra.mxu1 %vm707_vm1, %v1137_v41 }
 0x130   : > { %v1018_v2 = vpop.f32.mrf.mxu2  ;;  %v1097_v23 = vpop.f32.mrf.mxu3 }
 0x131   : > { %v808_v40 = vpop.f32.mrf.mxu0  ;;  %v887_v3 = vpop.f32.mrf.mxu1 }
 0x132   : > { %v7231_v57 = vadd.f32 %v1018_v2, %v808_v40  ;;  %v7233_v16 = vadd.f32 %v1097_v23, %v887_v3  ;;  %v9571_v3 = vshrl.u32 %v6905_v27, 16  ;;  %v1464_v23 = vrot.slane %v9572_v37, 2 }
 0x134   : > { %9568 = vst [vmem:[#allocation17_spill] sm:$0xff] %v7231_v57  ;;  %v1463_v2 = vrot.slane %v9571_v3, 1 }
 0x135   : > { %9569 = vst [vmem:[#allocation18_spill] sm:$0xff] %v7233_v16  ;;  %5312 = vmatmul.msk.bf16.gmra.mxu2 %vm707_vm1, %v1462_v44  ;;  %5326 = vmatmul.msk.bf16.gmra.mxu3 %vm707_vm1, %v1462_v44 }
 0x136   : > { %v1465_v44 = vor.u32 %v1464_v23, %v1463_v2 }
 0x138   : > { %v1021_v28 = vpop.f32.mrf.mxu2  ;;  %v1100_v36 = vpop.f32.mrf.mxu3 }
 0x139   : > { %v811_v13 = vpop.f32.mrf.mxu0  ;;  %v890_v41 = vpop.f32.mrf.mxu1 }
 0x13a   : > { %v7240_v0 = vadd.f32 %v1021_v28, %v811_v13  ;;  %v7242_v40 = vadd.f32 %v1100_v36, %v890_v41  ;;  %v1466_v36 = vsel %vm1443_vm3, %v1461_v45, %v1465_v44  ;;  %v1140_v13 = vrot.slane %v6905_v27, 1 }
 0x13b   : > { %v9577_v45 = vshll.u32 %v6922_v39, 16 }
 0x13c   : > { %9570 = vst [vmem:[#allocation19_spill] sm:$0xff] %v7242_v40  ;;  %5264 = vmatmul.msk.bf16.gmra.mxu0 %vm707_vm1, %v1139_v29  ;;  %5278 = vmatmul.msk.bf16.gmra.mxu1 %vm707_vm1, %v1139_v29  ;;  %v1141_v37 = vsel %vm1130_vm4, %v1138_v17, %v1140_v13 }
 0x140   : > { %v1023_v15 = vpop.f32.mrf.mxu2  ;;  %v1102_v16 = vpop.f32.mrf.mxu3 }
 0x141   : > { %v813_v57 = vpop.f32.mrf.mxu0  ;;  %v892_v60 = vpop.f32.mrf.mxu1 }
 0x142   : > { %v7250_v5 = vadd.f32 %v1023_v15, %v813_v57  ;;  %v7252_v28 = vadd.f32 %v1102_v16, %v892_v60  ;;  %v9576_v60 = vshrl.u32 %v6922_v39, 16  ;;  %v1468_v16 = vrot.slane %v9577_v45, 2 }
 0x144   : > { %9573 = vst [vmem:[#allocation20_spill] sm:$0xff] %v7250_v5  ;;  %v1467_v57 = vrot.slane %v9576_v60, 1 }
 0x145   : > { %9574 = vst [vmem:[#allocation21_spill] sm:$0xff] %v7252_v28  ;;  %5313 = vmatmul.msk.bf16.gmra.mxu2 %vm707_vm1, %v1466_v36  ;;  %5327 = vmatmul.msk.bf16.gmra.mxu3 %vm707_vm1, %v1466_v36 }
 0x146   : > { %v1469_v36 = vor.u32 %v1468_v16, %v1467_v57 }
 0x148   : > { %v1026_v41 = vpop.f32.mrf.mxu2  ;;  %v1105_v3 = vpop.f32.mrf.mxu3 }
 0x149   : > { %v816_v29 = vpop.f32.mrf.mxu0  ;;  %v895_v2 = vpop.f32.mrf.mxu1 }
 0x14a   : > { %v7259_v23 = vadd.f32 %v1026_v41, %v816_v29  ;;  %v7261_v15 = vadd.f32 %v1105_v3, %v895_v2  ;;  %v1470_v3 = vsel %vm1443_vm3, %v1465_v44, %v1469_v36  ;;  %v1142_v29 = vrot.slane %v6922_v39, 1 }
 0x14b   : > { %v9582_v44 = vshll.u32 %v6939_v59, 16 }
 0x14c   : > { %9575 = vst [vmem:[#allocation22_spill] sm:$0xff] %v7261_v15  ;;  %5265 = vmatmul.msk.bf16.gmra.mxu0 %vm707_vm1, %v1141_v37  ;;  %5279 = vmatmul.msk.bf16.gmra.mxu1 %vm707_vm1, %v1141_v37  ;;  %v1143_v45 = vsel %vm1130_vm4, %v1140_v13, %v1142_v29 }
 0x150   : > { %v1028_v27 = vpop.f32.mrf.mxu2  ;;  %v1107_v28 = vpop.f32.mrf.mxu3 }
 0x151   : > { %v818_v5 = vpop.f32.mrf.mxu0  ;;  %v897_v40 = vpop.f32.mrf.mxu1 }
 0x152   : > { %v7269_v17 = vadd.f32 %v1028_v27, %v818_v5  ;;  %v7271_v41 = vadd.f32 %v1107_v28, %v897_v40  ;;  %v9581_v40 = vshrl.u32 %v6939_v59, 16  ;;  %v1472_v28 = vrot.slane %v9582_v44, 2 }
 0x154   : > { %9578 = vst [vmem:[#allocation23_spill] sm:$0xff] %v7269_v17  ;;  %v1471_v5 = vrot.slane %v9581_v40, 1 }
 0x155   : > { %9579 = vst [vmem:[#allocation24_spill] sm:$0xff] %v7271_v41  ;;  %5314 = vmatmul.msk.bf16.gmra.mxu2 %vm707_vm1, %v1470_v3  ;;  %5328 = vmatmul.msk.bf16.gmra.mxu3 %vm707_vm1, %v1470_v3 }
 0x156   : > { %v1473_v3 = vor.u32 %v1472_v28, %v1471_v5 }
 0x158   : > { %v1031_v2 = vpop.f32.mrf.mxu2  ;;  %v1110_v60 = vpop.f32.mrf.mxu3 }
 0x159   : > { %v821_v37 = vpop.f32.mrf.mxu0  ;;  %v900_v57 = vpop.f32.mrf.mxu1 }
 0x15a   : > { %v7278_v16 = vadd.f32 %v1031_v2, %v821_v37  ;;  %v7280_v27 = vadd.f32 %v1110_v60, %v900_v57  ;;  %v1474_v60 = vsel %vm1443_vm3, %v1469_v36, %v1473_v3  ;;  %v1144_v37 = vrot.slane %v6939_v59, 1 }
 0x15b   : > { %v9587_v36 = vshll.u32 %v6956_v10, 16 }
 0x15c   : > { %9580 = vst [vmem:[#allocation25_spill] sm:$0xff] %v7280_v27  ;;  %5266 = vmatmul.msk.bf16.gmra.mxu0 %vm707_vm1, %v1143_v45  ;;  %5280 = vmatmul.msk.bf16.gmra.mxu1 %vm707_vm1, %v1143_v45  ;;  %v1145_v44 = vsel %vm1130_vm4, %v1142_v29, %v1144_v37 }
 0x160   : > { %v1033_v39 = vpop.f32.mrf.mxu2  ;;  %v1112_v41 = vpop.f32.mrf.mxu3 }
 0x161   : > { %v823_v17 = vpop.f32.mrf.mxu0  ;;  %v902_v15 = vpop.f32.mrf.mxu1 }
 0x162   : > { %v7288_v13 = vadd.f32 %v1033_v39, %v823_v17  ;;  %v7290_v2 = vadd.f32 %v1112_v41, %v902_v15  ;;  %v9586_v15 = vshrl.u32 %v6956_v10, 16  ;;  %v1476_v41 = vrot.slane %v9587_v36, 2 }
 0x164   : > { %9583 = vst [vmem:[#allocation26_spill] sm:$0xff] %v7288_v13  ;;  %v1475_v17 = vrot.slane %v9586_v15, 1 }
 0x165   : > { %9584 = vst [vmem:[#allocation27_spill] sm:$0xff] %v7290_v2  ;;  %5315 = vmatmul.msk.bf16.gmra.mxu2 %vm707_vm1, %v1474_v60  ;;  %5329 = vmatmul.msk.bf16.gmra.mxu3 %vm707_vm1, %v1474_v60 }
 0x166   : > { %v1477_v60 = vor.u32 %v1476_v41, %v1475_v17 }
 0x168   : > { %v1036_v57 = vpop.f32.mrf.mxu2  ;;  %v1115_v40 = vpop.f32.mrf.mxu3 }
 0x169   : > { %v826_v45 = vpop.f32.mrf.mxu0  ;;  %v905_v5 = vpop.f32.mrf.mxu1 }
 0x16a   : > { %v7297_v28 = vadd.f32 %v1036_v57, %v826_v45  ;;  %v7299_v39 = vadd.f32 %v1115_v40, %v905_v5  ;;  %v1478_v40 = vsel %vm1443_vm3, %v1473_v3, %v1477_v60  ;;  %v1146_v45 = vrot.slane %v6956_v10, 1 }
 0x16b   : > { %v9591_v3 = vshll.u32 %v6973_v25, 16 }
 0x16c   : > { %9585 = vst [vmem:[#allocation28_spill] sm:$0xff] %v7299_v39  ;;  %5267 = vmatmul.msk.bf16.gmra.mxu0 %vm707_vm1, %v1145_v44  ;;  %5281 = vmatmul.msk.bf16.gmra.mxu1 %vm707_vm1, %v1145_v44  ;;  %v1147_v36 = vsel %vm1130_vm4, %v1144_v37, %v1146_v45 }
 0x170   : > { %v1038_v59 = vpop.f32.mrf.mxu2  ;;  %v1117_v2 = vpop.f32.mrf.mxu3 }
 0x171   : > { %v828_v13 = vpop.f32.mrf.mxu0  ;;  %v907_v27 = vpop.f32.mrf.mxu1 }
 0x172   : > { %v7307_v29 = vadd.f32 %v1038_v59, %v828_v13  ;;  %v7309_v57 = vadd.f32 %v1117_v2, %v907_v27  ;;  %v9590_v27 = vshrl.u32 %v6973_v25, 16  ;;  %v1480_v2 = vrot.slane %v9591_v3, 2 }
 0x174   : > { %9588 = vst [vmem:[#allocation29_spill] sm:$0xff] %v7307_v29  ;;  %v1479_v13 = vrot.slane %v9590_v27, 1 }
 0x175   : > { %9589 = vst [vmem:[#allocation30_spill] sm:$0xff] %v7309_v57  ;;  %5316 = vmatmul.msk.bf16.gmra.mxu2 %vm707_vm1, %v1478_v40  ;;  %5330 = vmatmul.msk.bf16.gmra.mxu3 %vm707_vm1, %v1478_v40 }
 0x176   : > { %v1481_v40 = vor.u32 %v1480_v2, %v1479_v13 }
 0x178   : > { %v1041_v5 = vpop.f32.mrf.mxu2  ;;  %v1120_v15 = vpop.f32.mrf.mxu3 }
 0x179   : > { %v831_v44 = vpop.f32.mrf.mxu0  ;;  %v910_v17 = vpop.f32.mrf.mxu1 }
 0x17a   : > { %v7316_v41 = vadd.f32 %v1041_v5, %v831_v44  ;;  %v7318_v59 = vadd.f32 %v1120_v15, %v910_v17  ;;  %v1482_v15 = vsel %vm1443_vm3, %v1477_v60, %v1481_v40  ;;  %v1148_v44 = vrot.slane %v6973_v25, 1 }
 0x17b   : > { %v9595_v60 = vshll.u32 %v6994_v54, 16 }
 0x17c   : > { %5268 = vmatmul.msk.bf16.gmra.mxu0 %vm707_vm1, %v1147_v36  ;;  %5282 = vmatmul.msk.bf16.gmra.mxu1 %vm707_vm1, %v1147_v36  ;;  %v1149_v3 = vsel %vm1130_vm4, %v1146_v45, %v1148_v44 }
 0x180   : > { %v1043_v10 = vpop.f32.mrf.mxu2  ;;  %v1122_v57 = vpop.f32.mrf.mxu3 }
 0x181   : > { %v833_v29 = vpop.f32.mrf.mxu0  ;;  %v912_v39 = vpop.f32.mrf.mxu1 }
 0x182   : > { %v7326_v37 = vadd.f32 %v1043_v10, %v833_v29  ;;  %v7328_v5 = vadd.f32 %v1122_v57, %v912_v39  ;;  %v9594_v39 = vshrl.u32 %v6994_v54, 16  ;;  %v1484_v57 = vrot.slane %v9595_v60, 2 }
 0x184   : > { %9592 = vst [vmem:[#allocation31_spill] sm:$0xff] %v7326_v37  ;;  %v1483_v29 = vrot.slane %v9594_v39, 1 }
 0x185   : > { %9593 = vst [vmem:[#allocation32_spill] sm:$0xff] %v7328_v5  ;;  %5317 = vmatmul.msk.bf16.gmra.mxu2 %vm707_vm1, %v1482_v15  ;;  %5331 = vmatmul.msk.bf16.gmra.mxu3 %vm707_vm1, %v1482_v15 }
 0x186   : > { %v1485_v25 = vor.u32 %v1484_v57, %v1483_v29  ;;  %v9596_v57 = vshrl.u32 %v7019_v34, 16 }
 0x188   : > { %v1574_v17 = vpop.f32.mrf.mxu2  ;;  %v1653_v27 = vpop.f32.mrf.mxu3  ;;  %v1486_v39 = vsel %vm1443_vm3, %v1481_v40, %v1485_v25 }
 0x189   : > { %v1233_v36 = vpop.f32.mrf.mxu0  ;;  %v1312_v13 = vpop.f32.mrf.mxu1 }
 0x18a   : > { %v1382_v2 = vadd.f32 %v1233_v36, %v6988_v52  ;;  %v1383_v10 = vadd.f32 %v1312_v13, %v6990_v53 }
 0x18c   : > { %v7341_v5 = vadd.f32 %v1574_v17, %v1382_v2  ;;  %v7343_v15 = vadd.f32 %v1653_v27, %v1383_v10  ;;  %5269 = vmatmul.msk.bf16.gmra.mxu0 %vm707_vm1, %v1149_v3  ;;  %5283 = vmatmul.msk.bf16.gmra.mxu1 %vm707_vm1, %v1149_v3  ;;  %v1150_v27 = vrot.slane %v6994_v54, 1 }
 0x190   : > { %v1576_v45 = vpop.f32.mrf.mxu2  ;;  %v1655_v37 = vpop.f32.mrf.mxu3 }
 0x191   : > { %v1235_v52 = vpop.f32.mrf.mxu0  ;;  %v1314_v36 = vpop.f32.mrf.mxu1 }
 0x192   : > { %v1384_v53 = vadd.f32 %v1235_v52, %v6998_v6  ;;  %v1385_v13 = vadd.f32 %v1314_v36, %v7000_v7  ;;  %v1151_v6 = vsel %vm1130_vm4, %v1148_v44, %v1150_v27 }
 0x194   : > { %v7350_v60 = vadd.f32 %v1576_v45, %v1384_v53  ;;  %v7352_v17 = vadd.f32 %v1655_v37, %v1385_v13  ;;  %v1487_v37 = vrot.slane %v9596_v57, 1  ;;  %v9597_v45 = vshll.u32 %v7019_v34, 16 }
 0x195   : > { %5318 = vmatmul.msk.bf16.gmra.mxu2 %vm707_vm1, %v1486_v39  ;;  %5332 = vmatmul.msk.bf16.gmra.mxu3 %vm707_vm1, %v1486_v39 }
 0x196   : > { %v1488_v52 = vrot.slane %v9597_v45, 2 }
 0x198   : > { %v1579_v3 = vpop.f32.mrf.mxu2  ;;  %v1658_v2 = vpop.f32.mrf.mxu3  ;;  %v1489_v13 = vor.u32 %v1488_v52, %v1487_v37  ;;  %v9599_v52 = vshll.u32 %v7044_v14, 16 }
 0x199   : > { %v1238_v10 = vpop.f32.mrf.mxu0  ;;  %v1317_v29 = vpop.f32.mrf.mxu1 }
 0x19a   : > { %v1386_v7 = vadd.f32 %v1238_v10, %v7013_v33  ;;  %v1387_v40 = vadd.f32 %v1317_v29, %v7015_v35  ;;  %v1490_v57 = vsel %vm1443_vm3, %v1485_v25, %v1489_v13  ;;  %v9598_v25 = vshrl.u32 %v7044_v14, 16 }
 0x19c   : > { %v7364_v36 = vadd.f32 %v1579_v3, %v1386_v7  ;;  %v7366_v53 = vadd.f32 %v1658_v2, %v1387_v40  ;;  %5270 = vmatmul.msk.bf16.gmra.mxu0 %vm707_vm1, %v1151_v6  ;;  %5284 = vmatmul.msk.bf16.gmra.mxu1 %vm707_vm1, %v1151_v6  ;;  %v1152_v2 = vrot.slane %v7019_v34, 1  ;;  %v1491_v37 = vrot.slane %v9598_v25, 1 }
 0x19e   : > { %v1153_v40 = vsel %vm1130_vm4, %v1150_v27, %v1152_v2 }
 0x1a0   : > { %v1581_v44 = vpop.f32.mrf.mxu2  ;;  %v1660_v39 = vpop.f32.mrf.mxu3 }
 0x1a1   : > { %v1240_v33 = vpop.f32.mrf.mxu0  ;;  %v1319_v10 = vpop.f32.mrf.mxu1 }
 0x1a2   : > { %v1388_v35 = vadd.f32 %v1240_v33, %v7023_v50  ;;  %v1389_v29 = vadd.f32 %v1319_v10, %v7025_v51 }
 0x1a4   : > { %v7373_v45 = vadd.f32 %v1581_v44, %v1388_v35  ;;  %v7375_v3 = vadd.f32 %v1660_v39, %v1389_v29  ;;  %v1492_v44 = vrot.slane %v9599_v52, 2  ;;  %v5351_v35 = vld [vmem:[%s9512_s1 + $0x90] sm:$0xf]  ;;  %v6369_v29 = vld [vmem:[%s9512_s1 + $0x94] sm:$0x30] }
 0x1a5   : > { %5319 = vmatmul.msk.bf16.gmra.mxu2 %vm707_vm1, %v1490_v57  ;;  %5333 = vmatmul.msk.bf16.gmra.mxu3 %vm707_vm1, %v1490_v57  ;;  %v6368_v57 = vld [vmem:[%s9512_s1 + $0x94] sm:$0xf] }
 0x1a6   : > { %v1493_v39 = vor.u32 %v1492_v44, %v1491_v37 }
 0x1a9   : > { %v1243_v6 = vpop.f32.mrf.mxu0  ;;  %v1322_v7 = vpop.f32.mrf.mxu1 }
 0x1aa   : > { %v7382_v50 = vadd.f32 %v1243_v6, %v7038_v24  ;;  %v7385_v51 = vadd.f32 %v1322_v7, %v7040_v31  ;;  %v1494_v31 = vsel %vm1443_vm3, %v1489_v13, %v1493_v39  ;;  %v5353_v13 = vld [vmem:[%s9512_s1 + $0x98] sm:$0x30] }
 0x1ab   : > { %v5356_v6 = vor.u32 %v6368_v57, %v5353_v13 }
 0x1ac   : > { %5271 = vmatmul.msk.bf16.gmra.mxu0 %vm707_vm1, %v1153_v40  ;;  %5285 = vmatmul.msk.bf16.gmra.mxu1 %vm707_vm1, %v1153_v40 }
 0x1ad   : > { %v1876_v40 = vsel %vm750_vm0, %v5356_v6, 0  ;;  %v1156_v6 = vrot.slane %v7083_v62, 1 }
 0x1ae   : > { %1963 = vmatpush.bf16.msra.mxu1 %v1876_v40 }
 0x1b1   : > { %v1245_v33 = vpop.f32.mrf.mxu0  ;;  %v1324_v10 = vpop.f32.mrf.mxu1 }
 0x1b2   : > { %v7394_v27 = vadd.f32 %v1245_v33, %v7050_v8  ;;  %v7397_v24 = vadd.f32 %v1324_v10, %v7052_v9  ;;  %v1154_v8 = vrot.slane %v7044_v14, 1  ;;  %v5352_v9 = vor.u32 %v6369_v29, %v5351_v35 }
 0x1b3   : > { %v9600_v10 = vshrl.u32 %v7083_v62, 16  ;;  %v9601_v35 = vshll.u32 %v7083_v62, 16 }
 0x1b4   : > { %v1873_v7 = vsel %vm750_vm0, %v5352_v9, 0  ;;  %v1155_v52 = vsel %vm1130_vm4, %v1152_v2, %v1154_v8 }
 0x1b5   : > { %5320 = vmatmul.msk.bf16.gmra.mxu2 %vm707_vm1, %v1494_v31  ;;  %5334 = vmatmul.msk.bf16.gmra.mxu3 %vm707_vm1, %v1494_v31  ;;  %v1495_v31 = vrot.slane %v9600_v10, 1  ;;  %v1496_v29 = vrot.slane %v9601_v35, 2  ;;  %v1157_v10 = vsel %vm1130_vm4, %v1154_v8, %v1156_v6 }
 0x1b6   : > { %1884 = vmatpush.bf16.msra.mxu0 %v1873_v7  ;;  %v5343_v7 = vld [vmem:[%s9512_s1 + $0x80] sm:$0xf] }
 0x1b7   : > { %v1497_v57 = vor.u32 %v1496_v29, %v1495_v31 }
 0x1b9   : > { %v1248_v25 = vpop.f32.mrf.mxu0  ;;  %v1327_v37 = vpop.f32.mrf.mxu1 }
 0x1ba   : > { %v7419_v44 = vadd.f32 %v1248_v25, %v7077_v47  ;;  %v7422_v33 = vadd.f32 %v1327_v37, %v7079_v30  ;;  %v1498_v30 = vsel %vm1443_vm3, %v1493_v39, %v1497_v57  ;;  %v5345_v39 = vld [vmem:[%s9512_s1 + $0x88] sm:$0xf0] }
 0x1bc   : > { %5272 = vmatmul.msk.bf16.gmra.mxu0 %vm707_vm1, %v1155_v52  ;;  %5286 = vmatmul.msk.bf16.gmra.mxu1 %vm707_vm1, %v1155_v52 }
 0x1c1   : > { %v1250_v9 = vpop.f32.mrf.mxu0  ;;  %v1329_v2 = vpop.f32.mrf.mxu1 }
 0x1c2   : > { %v7431_v13 = vadd.f32 %v1250_v9, %v7107_v63  ;;  %v7434_v47 = vadd.f32 %v1329_v2, %v7109_v20  ;;  %v6367_v63 = vld [vmem:[%s9512_s1 + $0x84] sm:$0xf0]  ;;  %v6366_v20 = vld [vmem:[%s9512_s1 + $0x84] sm:$0xf] }
 0x1c3   : > { %v5344_v40 = vor.u32 %v6367_v63, %v5343_v7  ;;  %v5348_v25 = vor.u32 %v6366_v20, %v5345_v39 }
 0x1c5   : > { %5321 = vmatmul.msk.bf16.gmra.mxu2 %vm707_vm1, %v1498_v30  ;;  %5335 = vmatmul.msk.bf16.gmra.mxu3 %vm707_vm1, %v1498_v30 }
 0x1c6   : > { %1885 = vmatpush.bf16.msra.mxu0 %v5344_v40  ;;  %1964 = vmatpush.bf16.msra.mxu1 %v5348_v25 }
 0x1c9   : > { %v1253_v37 = vpop.f32.mrf.mxu0  ;;  %v1332_v52 = vpop.f32.mrf.mxu1 }
 0x1ca   : > { %v7454_v31 = vadd.f32 %v1253_v37, %v7150_v21  ;;  %v7457_v35 = vadd.f32 %v1332_v52, %v7152_v58  ;;  %v1788_v37 = vrot.slane %v6854_v55, 2 }
 0x1cc   : > { %5273 = vmatmul.msk.bf16.gmra.mxu0 %vm707_vm1, %v1157_v10  ;;  %5287 = vmatmul.msk.bf16.gmra.mxu1 %vm707_vm1, %v1157_v10 }
 0x1d1   : > { %v1255_v29 = vpop.f32.mrf.mxu0  ;;  %v1334_v9 = vpop.f32.mrf.mxu1 }
 0x1d2   : > { %v7462_v2 = vadd.f32 %v1255_v29, %v7156_v1  ;;  %v7465_v30 = vadd.f32 %v1334_v9, %v7158_v56 }
 0x1d5   : > { %5322 = vmatmul.msk.bf16.gmra.mxu2 %vm707_vm1, %v1497_v57  ;;  %5336 = vmatmul.msk.bf16.gmra.mxu3 %vm707_vm1, %v1497_v57  ;;  %v1785_v57 = vrot.slane %v6834_v42, 2 }
 0x1d9   : > { %v1258_v21 = vpop.f32.mrf.mxu0  ;;  %v1337_v58 = vpop.f32.mrf.mxu1 }
 0x1da   : > { %v7470_v8 = vadd.f32 %v1258_v21, %v7167_v38  ;;  %v7473_v7 = vadd.f32 %v1337_v58, %v7169_v46  ;;  %v1786_v38 = vrot.slane %v6836_v43, 2  ;;  %v9609_v21 = vld [vmem:[#allocation9_spill] sm:$0xff] }
 0x1db   : > { %v1790_v58 = vrot.slane %v9609_v21, 2 }
 0x1dc   : > { %5274 = vmatmul.msk.bf16.gmra.mxu0 %vm707_vm1, %v1156_v6  ;;  %5288 = vmatmul.msk.bf16.gmra.mxu1 %vm707_vm1, %v1156_v6  ;;  %v1787_v46 = vsel %vm750_vm0, %v1785_v57, %v1786_v38  ;;  %v1789_v10 = vsel %vm750_vm0, %v1786_v38, %v1788_v37  ;;  %v9611_v57 = vld [vmem:[#allocation16_spill] sm:$0xff] }
 0x1e1   : > { %v1260_v1 = vpop.f32.mrf.mxu0  ;;  %v1339_v63 = vpop.f32.mrf.mxu1 }
 0x1e2   : > { %v7478_v56 = vadd.f32 %v1260_v1, %v7173_v19  ;;  %v7481_v20 = vadd.f32 %v1339_v63, %v7175_v12  ;;  %v1791_v63 = vsel %vm750_vm0, %v1788_v37, %v1790_v58 }
 0x1e9   : > { %v1263_v40 = vpop.f32.mrf.mxu0  ;;  %v1342_v39 = vpop.f32.mrf.mxu1 }
 0x1ea   : > { %v7487_v25 = vadd.f32 %v1263_v40, %v7182_v26  ;;  %v7490_v6 = vadd.f32 %v1342_v39, %v7184_v48  ;;  %v7524_v40 = vpop.f32.mrf.mxu2  ;;  %v7526_v39 = vpop.f32.mrf.mxu3 }
 0x1ec   : > { %9602 = vst [vmem:[#allocation33_spill] sm:$0xff] %v7490_v6  ;;  %5357 = vmatmul.msk.bf16.vlgmr.msra.gmra.mxu0 %vm707_vm1, %v1787_v46  ;;  %5371 = vmatmul.msk.bf16.vlgmr.msra.gmra.mxu1 %vm707_vm1, %v1787_v46  ;;  %v9613_v46 = vld [vmem:[#allocation17_spill] sm:$0xff] }
 0x1f1   : > { %v1265_v12 = vpop.f32.mrf.mxu0  ;;  %v1344_v19 = vpop.f32.mrf.mxu1 }
 0x1f2   : > { %v7495_v42 = vadd.f32 %v1265_v12, %v7192_v49  ;;  %v7498_v43 = vadd.f32 %v1344_v19, %v7194_v18  ;;  %v9615_v19 = vld [vmem:[#allocation18_spill] sm:$0xff] }
 0x1f4   : > { %9603 = vst [vmem:[#allocation34_spill] sm:$0xff] %v7495_v42 }
 0x1f5   : > { %9604 = vst [vmem:[#allocation35_spill] sm:$0xff] %v7498_v43 }
 0x1f9   : > { %v1268_v52 = vpop.f32.mrf.mxu0  ;;  %v1347_v26 = vpop.f32.mrf.mxu1 }
 0x1fa   : > { %v7503_v48 = vadd.f32 %v1268_v52, %v7202_v32  ;;  %v7506_v29 = vadd.f32 %v1347_v26, %v7204_v11  ;;  %v7537_v26 = vpop.f32.mrf.mxu2 }
 0x1fc   : > { %9605 = vst [vmem:[#allocation36_spill] sm:$0xff] %v7503_v48  ;;  %5358 = vmatmul.msk.bf16.gmra.mxu0 %vm707_vm1, %v1789_v10  ;;  %5372 = vmatmul.msk.bf16.gmra.mxu1 %vm707_vm1, %v1789_v10  ;;  %v7539_v10 = vpop.f32.mrf.mxu3 }
 0x1fd   : > { %9606 = vst [vmem:[#allocation37_spill] sm:$0xff] %v7506_v29 }
 0x201   : > { %v1270_v49 = vpop.f32.mrf.mxu0  ;;  %v1349_v9 = vpop.f32.mrf.mxu1 }
 0x202   : > { %v7511_v18 = vadd.f32 %v1270_v49, %v7212_v22  ;;  %v7514_v55 = vadd.f32 %v1349_v9, %v7214_v4 }
 0x204   : > { %9607 = vst [vmem:[#allocation38_spill] sm:$0xff] %v7511_v18 }
 0x205   : > { %9608 = vst [vmem:[#allocation39_spill] sm:$0xff] %v7514_v55 }
 0x209   : > { %v1273_v1 = vpop.f32.mrf.mxu0  ;;  %v1352_v32 = vpop.f32.mrf.mxu1 }
 0x20a   : > { %v7519_v11 = vadd.f32 %v1273_v1, %v7221_v61  ;;  %v7522_v38 = vadd.f32 %v1352_v32, %v9611_v57  ;;  %v9617_v61 = vld [vmem:[#allocation10_spill] sm:$0xff]  ;;  %v9619_v32 = vld [vmem:[#allocation19_spill] sm:$0xff]  ;;  %v7550_v57 = vpop.f32.mrf.mxu2 }
 0x20b   : > { %v1792_v52 = vrot.slane %v9617_v61, 2 }
 0x20c   : > { %9610 = vst [vmem:[#allocation9_spill] sm:$0xff] %v7519_v11  ;;  %5359 = vmatmul.msk.bf16.gmra.mxu0 %vm707_vm1, %v1791_v63  ;;  %5373 = vmatmul.msk.bf16.gmra.mxu1 %vm707_vm1, %v1791_v63 }
 0x20d   : > { %9612 = vst [vmem:[#allocation16_spill] sm:$0xff] %v7522_v38  ;;  %v1793_v21 = vsel %vm750_vm0, %v1790_v58, %v1792_v52  ;;  %v9623_v58 = vld [vmem:[#allocation21_spill] sm:$0xff]  ;;  %v9627_v38 = vld [vmem:[#allocation22_spill] sm:$0xff] }
 0x211   : > { %v1275_v22 = vpop.f32.mrf.mxu0  ;;  %v1354_v4 = vpop.f32.mrf.mxu1 }
 0x212   : > { %v7531_v12 = vadd.f32 %v1275_v22, %v9613_v46  ;;  %v7534_v37 = vadd.f32 %v1354_v4, %v9615_v19  ;;  %v7552_v22 = vpop.f32.mrf.mxu3  ;;  %v9621_v19 = vld [vmem:[#allocation20_spill] sm:$0xff] }
 0x214   : > { %9614 = vst [vmem:[#allocation17_spill] sm:$0xff] %v7531_v12 }
 0x215   : > { %9616 = vst [vmem:[#allocation18_spill] sm:$0xff] %v7534_v37 }
 0x219   : > { %v1278_v49 = vpop.f32.mrf.mxu0  ;;  %v1357_v9 = vpop.f32.mrf.mxu1 }
 0x21a   : > { %v7543_v1 = vadd.f32 %v1278_v49, %v7240_v0  ;;  %v7546_v63 = vadd.f32 %v1357_v9, %v9619_v32  ;;  %v9625_v0 = vld [vmem:[#allocation11_spill] sm:$0xff] }
 0x21b   : > { %v1794_v49 = vrot.slane %v9625_v0, 2 }
 0x21c   : > { %9618 = vst [vmem:[#allocation10_spill] sm:$0xff] %v7543_v1  ;;  %5360 = vmatmul.msk.bf16.gmra.mxu0 %vm707_vm1, %v1793_v21  ;;  %5374 = vmatmul.msk.bf16.gmra.mxu1 %vm707_vm1, %v1793_v21  ;;  %v7562_v1 = vpop.f32.mrf.mxu2  ;;  %v7564_v21 = vpop.f32.mrf.mxu3 }
 0x21d   : > { %9620 = vst [vmem:[#allocation19_spill] sm:$0xff] %v7546_v63  ;;  %v1795_v63 = vsel %vm750_vm0, %v1792_v52, %v1794_v49  ;;  %v9631_v52 = vld [vmem:[#allocation24_spill] sm:$0xff] }
 0x221   : > { %v1280_v4 = vpop.f32.mrf.mxu0  ;;  %v1359_v46 = vpop.f32.mrf.mxu1 }
 0x222   : > { %v7555_v61 = vadd.f32 %v1280_v4, %v9621_v19  ;;  %v7558_v37 = vadd.f32 %v1359_v46, %v9623_v58  ;;  %v9629_v19 = vld [vmem:[#allocation23_spill] sm:$0xff] }
 0x224   : > { %9622 = vst [vmem:[#allocation20_spill] sm:$0xff] %v7555_v61  ;;  %v7582_v61 = vpop.f32.mrf.mxu3 }
 0x225   : > { %9624 = vst [vmem:[#allocation21_spill] sm:$0xff] %v7558_v37  ;;  %v7580_v37 = vpop.f32.mrf.mxu2 }
 0x229   : > { %v1283_v9 = vpop.f32.mrf.mxu0  ;;  %v1362_v32 = vpop.f32.mrf.mxu1 }
 0x22a   : > { %v7567_v12 = vadd.f32 %v1283_v9, %v7259_v23  ;;  %v7570_v11 = vadd.f32 %v1362_v32, %v9627_v38  ;;  %v6377_v23 = vld [vmem:[%s9513_s2 + $0x38] sm:$0xff]  ;;  %v9633_v38 = vld [vmem:[#allocation12_spill] sm:$0xff] }
 0x22b   : > { %v1796_v9 = vrot.slane %v9633_v38, 2  ;;  %2283 = vmatpush.bf16.msra.mxu2 %v6377_v23  ;;  %v6383_v23 = vld [vmem:[%s9513_s2 + $0x68] sm:$0xff] }
 0x22c   : > { %9626 = vst [vmem:[#allocation11_spill] sm:$0xff] %v7567_v12  ;;  %5361 = vmatmul.msk.bf16.gmra.mxu0 %vm707_vm1, %v1795_v63  ;;  %5375 = vmatmul.msk.bf16.gmra.mxu1 %vm707_vm1, %v1795_v63 }
 0x22d   : > { %9628 = vst [vmem:[#allocation22_spill] sm:$0xff] %v7570_v11  ;;  %v1797_v11 = vsel %vm750_vm0, %v1794_v49, %v1796_v9  ;;  %v6375_v49 = vld [vmem:[%s9513_s2 + $0x28] sm:$0xff]  ;;  %v7609_v38 = vpop.f32.mrf.mxu2 }
 0x231   : > { %v1285_v4 = vpop.f32.mrf.mxu0  ;;  %v1364_v46 = vpop.f32.mrf.mxu1 }
 0x232   : > { %v7575_v58 = vadd.f32 %v1285_v4, %v9629_v19  ;;  %v7578_v0 = vadd.f32 %v1364_v46, %v9631_v52  ;;  %v6376_v4 = vld [vmem:[%s9513_s2 + $0x30] sm:$0xff] }
 0x233   : > { %v6384_v46 = vld [vmem:[%s9513_s2 + $0x70] sm:$0xff]  ;;  %2284 = vmatpush.bf16.msra.mxu2 %v6376_v4  ;;  %v6382_v4 = vld [vmem:[%s9513_s2 + $0x60] sm:$0xff] }
 0x234   : > { %9630 = vst [vmem:[#allocation23_spill] sm:$0xff] %v7575_v58  ;;  %v9635_v52 = vld [vmem:[#allocation25_spill] sm:$0xff]  ;;  %2363 = vmatpush.bf16.msra.mxu3 %v6384_v46  ;;  %v9637_v46 = vld [vmem:[#allocation26_spill] sm:$0xff] }
 0x235   : > { %9632 = vst [vmem:[#allocation24_spill] sm:$0xff] %v7578_v0  ;;  %v9641_v58 = vld [vmem:[#allocation13_spill] sm:$0xff]  ;;  %v7632_v55 = vpop.f32.mrf.mxu2 }
 0x236   : > { %v1798_v12 = vrot.slane %v9641_v58, 2 }
 0x237   : > { %2285 = vmatpush.bf16.msra.mxu2 %v6375_v49  ;;  %v6373_v49 = vld [vmem:[%s9513_s2 + $0x18] sm:$0xff] }
 0x238   : > { %2364 = vmatpush.bf16.msra.mxu3 %v6383_v23  ;;  %v6381_v23 = vld [vmem:[%s9513_s2 + $0x58] sm:$0xff] }
 0x239   : > { %v1288_v63 = vpop.f32.mrf.mxu0  ;;  %v1367_v32 = vpop.f32.mrf.mxu1 }
 0x23a   : > { %v7596_v19 = vadd.f32 %v1288_v63, %v7278_v16  ;;  %v7599_v0 = vadd.f32 %v1367_v32, %v9635_v52  ;;  %v7611_v16 = vpop.f32.mrf.mxu3 }
 0x23c   : > { %9634 = vst [vmem:[#allocation12_spill] sm:$0xff] %v7596_v19  ;;  %5362 = vmatmul.msk.bf16.gmra.mxu0 %vm707_vm1, %v1797_v11  ;;  %5376 = vmatmul.msk.bf16.gmra.mxu1 %vm707_vm1, %v1797_v11  ;;  %v6374_v11 = vld [vmem:[%s9513_s2 + $0x20] sm:$0xff] }
 0x23d   : > { %9636 = vst [vmem:[#allocation25_spill] sm:$0xff] %v7599_v0  ;;  %v9639_v0 = vld [vmem:[#allocation27_spill] sm:$0xff]  ;;  %2286 = vmatpush.bf16.msra.mxu2 %v6374_v11  ;;  %2365 = vmatpush.bf16.msra.mxu3 %v6382_v4  ;;  %v1799_v11 = vsel %vm750_vm0, %v1796_v9, %v1798_v12  ;;  %v6372_v4 = vld [vmem:[%s9513_s2 + $0x10] sm:$0xff]  ;;  %v6371_v9 = vld [vmem:[%s9513_s2 + $0x8] sm:$0xff] }
 0x241   : > { %v1290_v63 = vpop.f32.mrf.mxu0  ;;  %v1369_v32 = vpop.f32.mrf.mxu1  ;;  %2287 = vmatpush.bf16.msra.mxu2 %v6373_v49  ;;  %2366 = vmatpush.bf16.msra.mxu3 %v6381_v23  ;;  %v9643_v49 = vld [vmem:[#allocation28_spill] sm:$0xff] }
 0x242   : > { %v7620_v52 = vadd.f32 %v1290_v63, %v9637_v46  ;;  %v7623_v19 = vadd.f32 %v1369_v32, %v9639_v0  ;;  %v7634_v63 = vpop.f32.mrf.mxu3  ;;  %v6380_v46 = vld [vmem:[%s9513_s2 + $0x50] sm:$0xff] }
 0x244   : > { %9638 = vst [vmem:[#allocation26_spill] sm:$0xff] %v7620_v52 }
 0x245   : > { %9640 = vst [vmem:[#allocation27_spill] sm:$0xff] %v7623_v19  ;;  %2288 = vmatpush.bf16.msra.mxu2 %v6372_v4  ;;  %2367 = vmatpush.bf16.msra.mxu3 %v6380_v46  ;;  %v6379_v19 = vld [vmem:[%s9513_s2 + $0x48] sm:$0xff]  ;;  %v7663_v4 = vpop.f32.mrf.mxu2 }
 0x249   : > { %v1293_v0 = vpop.f32.mrf.mxu0  ;;  %v1372_v32 = vpop.f32.mrf.mxu1  ;;  %2289 = vmatpush.bf16.msra.mxu2 %v6371_v9  ;;  %2368 = vmatpush.bf16.msra.mxu3 %v6379_v19  ;;  %v9649_v19 = vld [vmem:[#allocation14_spill] sm:$0xff] }
 0x24a   : > { %v7644_v58 = vadd.f32 %v1293_v0, %v7297_v28  ;;  %v7647_v23 = vadd.f32 %v1372_v32, %v9643_v49  ;;  %v6370_v32 = vld [vmem:[%s9513_s2] sm:$0xff]  ;;  %v7665_v46 = vpop.f32.mrf.mxu3  ;;  %v9645_v49 = vld [vmem:[#allocation29_spill] sm:$0xff]  ;;  %v1800_v52 = vrot.slane %v9649_v19, 2 }
 0x24c   : > { %9642 = vst [vmem:[#allocation13_spill] sm:$0xff] %v7644_v58  ;;  %5363 = vmatmul.msk.bf16.gmra.mxu0 %vm707_vm1, %v1799_v11  ;;  %5377 = vmatmul.msk.bf16.gmra.mxu1 %vm707_vm1, %v1799_v11  ;;  %v6378_v11 = vld [vmem:[%s9513_s2 + $0x40] sm:$0xff]  ;;  %v9647_v58 = vld [vmem:[#allocation30_spill] sm:$0xff]  ;;  %v1801_v48 = vsel %vm750_vm0, %v1798_v12, %v1800_v52  ;;  %v9654_v12 = vld [vmem:[#allocation32_spill] sm:$0xff] }
 0x24d   : > { %9644 = vst [vmem:[#allocation28_spill] sm:$0xff] %v7647_v23  ;;  %2290 = vmatpush.bf16.msra.mxu2 %v6370_v32  ;;  %2369 = vmatpush.bf16.msra.mxu3 %v6378_v11  ;;  %v7681_v6 = vpop.f32.mrf.mxu2  ;;  %v9652_v32 = vld [vmem:[#allocation31_spill] sm:$0xff] }
 0x251   : > { %v1295_v28 = vpop.f32.mrf.mxu0  ;;  %v1374_v0 = vpop.f32.mrf.mxu1 }
 0x252   : > { %v7668_v23 = vadd.f32 %v1295_v28, %v9645_v49  ;;  %v7671_v9 = vadd.f32 %v1374_v0, %v9647_v58  ;;  %v7683_v28 = vpop.f32.mrf.mxu3 }
 0x254   : > { %9646 = vst [vmem:[#allocation29_spill] sm:$0xff] %v7668_v23 }
 0x255   : > { %9648 = vst [vmem:[#allocation30_spill] sm:$0xff] %v7671_v9 }
 0x259   : > { %v1298_v18 = vpop.f32.mrf.mxu0  ;;  %v1377_v29 = vpop.f32.mrf.mxu1 }
 0x25a   : > { %v7676_v43 = vadd.f32 %v1298_v18, %v7316_v41  ;;  %v7679_v42 = vadd.f32 %v1377_v29, %v7318_v59  ;;  %v9656_v41 = vld [vmem:[#allocation15_spill] sm:$0xff]  ;;  %v7694_v59 = vpop.f32.mrf.mxu2  ;;  %v7696_v29 = vpop.f32.mrf.mxu3 }
 0x25b   : > { %v1802_v18 = vrot.slane %v9656_v41, 2 }
 0x25c   : > { %9650 = vst [vmem:[#allocation14_spill] sm:$0xff] %v7676_v43  ;;  %5364 = vmatmul.msk.bf16.gmra.mxu0 %vm707_vm1, %v1801_v48  ;;  %5378 = vmatmul.msk.bf16.gmra.mxu1 %vm707_vm1, %v1801_v48 }
 0x25d   : > { %9651 = vst [vmem:[#allocation40_spill] sm:$0xff] %v7679_v42  ;;  %v1803_v43 = vsel %vm750_vm0, %v1800_v52, %v1802_v18 }
 0x261   : > { %v1300_v58 = vpop.f32.mrf.mxu0  ;;  %v1379_v0 = vpop.f32.mrf.mxu1 }
 0x262   : > { %v7688_v11 = vadd.f32 %v1300_v58, %v9652_v32  ;;  %v7691_v49 = vadd.f32 %v1379_v0, %v9654_v12  ;;  %v7701_v48 = vpop.f32.mrf.mxu2  ;;  %v7703_v58 = vpop.f32.mrf.mxu3 }
 0x264   : > { %9653 = vst [vmem:[#allocation31_spill] sm:$0xff] %v7688_v11 }
 0x265   : > { %9655 = vst [vmem:[#allocation32_spill] sm:$0xff] %v7691_v49 }
 0x269   : > { %v1887_v19 = vpop.f32.mrf.mxu0  ;;  %v1966_v42 = vpop.f32.mrf.mxu1 }
 0x26a   : > { %v2036_v12 = vadd.f32 %v1887_v19, %v7341_v5  ;;  %v2037_v41 = vadd.f32 %v1966_v42, %v7343_v15  ;;  %v7718_v42 = vpop.f32.mrf.mxu2 }
 0x26c   : > { %5365 = vmatmul.msk.bf16.gmra.mxu0 %vm707_vm1, %v1803_v43  ;;  %5379 = vmatmul.msk.bf16.gmra.mxu1 %vm707_vm1, %v1803_v43  ;;  %v1804_v43 = vrot.slane %v6994_v54, 2 }
 0x26e   : > { %v1805_v15 = vsel %vm750_vm0, %v1802_v18, %v1804_v43 }
 0x271   : > { %v1889_v0 = vpop.f32.mrf.mxu0  ;;  %v1968_v32 = vpop.f32.mrf.mxu1 }
 0x272   : > { %v2038_v49 = vadd.f32 %v1889_v0, %v7350_v60  ;;  %v2039_v11 = vadd.f32 %v1968_v32, %v7352_v17  ;;  %v7720_v60 = vpop.f32.mrf.mxu3  ;;  %v7728_v32 = vpop.f32.mrf.mxu2 }
 0x274   : > { %v7709_v52 = vpack.c.bf16 %v2038_v49, %v2036_v12  ;;  %v7711_v9 = vpack.c.bf16 %v2039_v11, %v2037_v41 }
 0x276   : > { %2291 = vmatmul.bf16.vlgmr.msra.gmra.mxu2 %v7709_v52  ;;  %5445 = vmatmul.msk.bf16.vlgmr.msra.gmra.mxu3 %vm2240_vm5, %v7711_v9 }
 0x279   : > { %v1892_v23 = vpop.f32.mrf.mxu0  ;;  %v1971_v5 = vpop.f32.mrf.mxu1 }
 0x27a   : > { %v2040_v54 = vadd.f32 %v1892_v23, %v7364_v36  ;;  %v2041_v49 = vadd.f32 %v1971_v5, %v7366_v53  ;;  %v7730_v18 = vpop.f32.mrf.mxu3  ;;  %v7746_v23 = vpop.f32.mrf.mxu2  ;;  %v6391_v5 = vld [vmem:[%s9513_s2 + $0xa8] sm:$0xff] }
 0x27b   : > { %9657 = vst [vmem:[#allocation15_spill] sm:$0xff] %v7746_v23 }
 0x27c   : > { %5366 = vmatmul.msk.bf16.gmra.mxu0 %vm707_vm1, %v1805_v15  ;;  %5380 = vmatmul.msk.bf16.gmra.mxu1 %vm707_vm1, %v1805_v15  ;;  %v1806_v15 = vrot.slane %v7019_v34, 2 }
 0x281   : > { %v1894_v17 = vpop.f32.mrf.mxu0  ;;  %v1973_v11 = vpop.f32.mrf.mxu1 }
 0x282   : > { %v2042_v19 = vadd.f32 %v1894_v17, %v7373_v45  ;;  %v2043_v0 = vadd.f32 %v1973_v11, %v7375_v3  ;;  %v1807_v45 = vsel %vm750_vm0, %v1804_v43, %v1806_v15  ;;  %v6392_v3 = vld [vmem:[%s9513_s2 + $0xb0] sm:$0xff]  ;;  %v7748_v34 = vpop.f32.mrf.mxu3  ;;  %v6399_v43 = vld [vmem:[%s9513_s2 + $0xe8] sm:$0xff]  ;;  %v1731_v17 = vadd.f32 %v7524_v40, %v7382_v50  ;;  %v6390_v50 = vld [vmem:[%s9513_s2 + $0xa0] sm:$0xff] }
 0x283   : > { %2562 = vmatpush.bf16.msrb.mxu0 %v6392_v3  ;;  %9658 = vst [vmem:[#allocation41_spill] sm:$0xff] %v7748_v34  ;;  %v1732_v11 = vadd.f32 %v7526_v39, %v7385_v51  ;;  %2642 = vmatpush.bf16.msrb.mxu1 %v6399_v43  ;;  %v6398_v51 = vld [vmem:[%s9513_s2 + $0xe0] sm:$0xff]  ;;  %v6389_v39 = vld [vmem:[%s9513_s2 + $0x98] sm:$0xff]  ;;  %v6395_v43 = vld [vmem:[%s9513_s2 + $0xc8] sm:$0xff] }
 0x284   : > { %v7732_v12 = vpack.c.bf16 %v2042_v19, %v2040_v54  ;;  %v7734_v41 = vpack.c.bf16 %v2043_v0, %v2041_v49  ;;  %v1733_v54 = vadd.f32 %v7537_v26, %v7394_v27  ;;  %v1734_v49 = vadd.f32 %v7539_v10, %v7397_v24  ;;  %v6397_v26 = vld [vmem:[%s9513_s2 + $0xd8] sm:$0xff]  ;;  %v7784_v10 = vpop.f32.mrf.mxu2 }
 0x285   : > { %v1808_v24 = vrot.slane %v7044_v14, 2 }
 0x286   : > { %2296 = vmatmul.bf16.gmra.mxu2 %v7732_v12  ;;  %5446 = vmatmul.msk.bf16.gmra.mxu3 %vm2240_vm5, %v7734_v41 }
 0x287   : > { %2563 = vmatpush.bf16.msrb.mxu0 %v6391_v5  ;;  %2643 = vmatpush.bf16.msrb.mxu1 %v6398_v51  ;;  %v6396_v5 = vld [vmem:[%s9513_s2 + $0xd0] sm:$0xff] }
 0x289   : > { %v1897_v36 = vpop.f32.mrf.mxu0  ;;  %v1976_v53 = vpop.f32.mrf.mxu1 }
 0x28a   : > { %v2045_v3 = vadd.f32 %v1976_v53, %v1732_v11  ;;  %v1736_v11 = vadd.f32 %v7552_v22, %v7422_v33  ;;  %v6386_v33 = vld [vmem:[%s9513_s2 + $0x80] sm:$0xff]  ;;  %v1810_v22 = vrot.slane %v7083_v62, 2 }
 0x28b   : > { %2564 = vmatpush.bf16.msrb.mxu0 %v6390_v50  ;;  %2644 = vmatpush.bf16.msrb.mxu1 %v6397_v26 }
 0x28c   : > { %5367 = vmatmul.msk.bf16.gmra.mxu0 %vm707_vm1, %v1807_v45  ;;  %5381 = vmatmul.msk.bf16.gmra.mxu1 %vm707_vm1, %v1807_v45  ;;  %v2044_v45 = vadd.f32 %v1897_v36, %v1731_v17  ;;  %v7786_v36 = vpop.f32.mrf.mxu3  ;;  %v1735_v17 = vadd.f32 %v7550_v57, %v7419_v44 }
 0x28f   : > { %2565 = vmatpush.bf16.msrb.mxu0 %v6389_v39  ;;  %2645 = vmatpush.bf16.msrb.mxu1 %v6396_v5  ;;  %v6393_v39 = vld [vmem:[%s9513_s2 + $0xb8] sm:$0xff]  ;;  %v1740_v5 = vadd.f32 %v7582_v61, %v7457_v35  ;;  %v1744_v61 = vadd.f32 %v7634_v63, %v7473_v7 }
 0x291   : > { %v1899_v19 = vpop.f32.mrf.mxu0  ;;  %v1978_v0 = vpop.f32.mrf.mxu1 }
 0x292   : > { %v2046_v34 = vadd.f32 %v1899_v19, %v1733_v54  ;;  %v2047_v23 = vadd.f32 %v1978_v0, %v1734_v49  ;;  %v1737_v54 = vadd.f32 %v7562_v1, %v7431_v13  ;;  %v1738_v49 = vadd.f32 %v7564_v21, %v7434_v47  ;;  %v6394_v13 = vld [vmem:[%s9513_s2 + $0xc0] sm:$0xff]  ;;  %v6385_v21 = vld [vmem:[%s9513_s2 + $0x78] sm:$0xff] }
 0x293   : > { %2646 = vmatpush.bf16.msrb.mxu1 %v6395_v43 }
 0x294   : > { %v7770_v27 = vpack.c.bf16 %v2046_v34, %v2044_v45  ;;  %v7772_v40 = vpack.c.bf16 %v2047_v23, %v2045_v3  ;;  %v1809_v23 = vsel %vm750_vm0, %v1806_v15, %v1808_v24  ;;  %v6388_v34 = vld [vmem:[%s9513_s2 + $0x90] sm:$0xff]  ;;  %v6387_v15 = vld [vmem:[%s9513_s2 + $0x88] sm:$0xff]  ;;  %v7811_v45 = vpop.f32.mrf.mxu2  ;;  %v7813_v3 = vpop.f32.mrf.mxu3 }
 0x295   : > { %2566 = vmatpush.bf16.msrb.mxu0 %v6388_v34  ;;  %v1739_v34 = vadd.f32 %v7580_v37, %v7454_v31 }
 0x296   : > { %2301 = vmatmul.bf16.gmra.mxu2 %v7770_v27  ;;  %5447 = vmatmul.msk.bf16.gmra.mxu3 %vm2240_vm5, %v7772_v40 }
 0x297   : > { %2647 = vmatpush.bf16.msrb.mxu1 %v6394_v13 }
 0x299   : > { %v1902_v14 = vpop.f32.mrf.mxu0  ;;  %v1981_v53 = vpop.f32.mrf.mxu1  ;;  %2567 = vmatpush.bf16.msrb.mxu0 %v6387_v15  ;;  %v1741_v15 = vadd.f32 %v7609_v38, %v7462_v2  ;;  %v1745_v38 = vadd.f32 %v7663_v4, %v7478_v56  ;;  %v1747_v4 = vadd.f32 %v7681_v6, %v7487_v25 }
 0x29a   : > { %v2048_v50 = vadd.f32 %v1902_v14, %v1735_v17  ;;  %v2049_v51 = vadd.f32 %v1981_v53, %v1736_v11  ;;  %v1811_v53 = vsel %vm750_vm0, %v1808_v24, %v1810_v22  ;;  %v1742_v24 = vadd.f32 %v7611_v16, %v7465_v30 }
 0x29b   : > { %2648 = vmatpush.bf16.msrb.mxu1 %v6393_v39  ;;  %v1743_v30 = vadd.f32 %v7632_v55, %v7470_v8  ;;  %v1746_v16 = vadd.f32 %v7665_v46, %v7481_v20  ;;  %v9659_v46 = vld [vmem:[#allocation33_spill] sm:$0xff] }
 0x29c   : > { %5368 = vmatmul.msk.bf16.gmra.mxu0 %vm707_vm1, %v1809_v23  ;;  %5382 = vmatmul.msk.bf16.gmra.mxu1 %vm707_vm1, %v1809_v23  ;;  %v7836_v62 = vpop.f32.mrf.mxu2  ;;  %v7838_v23 = vpop.f32.mrf.mxu3 }
 0x29d   : > { %2568 = vmatpush.bf16.msrb.mxu0 %v6386_v33 }
 0x2a1   : > { %v1904_v19 = vpop.f32.mrf.mxu0  ;;  %v1983_v0 = vpop.f32.mrf.mxu1  ;;  %2569 = vmatpush.bf16.msrb.mxu0 %v6385_v21 }
 0x2a2   : > { %v2050_v44 = vadd.f32 %v1904_v19, %v1737_v54  ;;  %v2051_v57 = vadd.f32 %v1983_v0, %v1738_v49 }
 0x2a4   : > { %v7821_v47 = vpack.c.bf16 %v2050_v44, %v2048_v50  ;;  %v7823_v1 = vpack.c.bf16 %v2051_v57, %v2049_v51  ;;  %v7854_v31 = vpop.f32.mrf.mxu2  ;;  %v7856_v37 = vpop.f32.mrf.mxu3 }
 0x2a6   : > { %2306 = vmatmul.bf16.gmra.mxu2 %v7821_v47  ;;  %5448 = vmatmul.msk.bf16.gmra.mxu3 %vm2240_vm5, %v7823_v1 }
 0x2a9   : > { %v1907_v26 = vpop.f32.mrf.mxu0  ;;  %v1986_v14 = vpop.f32.mrf.mxu1 }
 0x2aa   : > { %v2052_v11 = vadd.f32 %v1907_v26, %v1739_v34  ;;  %v2053_v54 = vadd.f32 %v1986_v14, %v1740_v5  ;;  %v1748_v26 = vadd.f32 %v7683_v28, %v9659_v46  ;;  %v9660_v14 = vld [vmem:[#allocation34_spill] sm:$0xff]  ;;  %v9661_v34 = vld [vmem:[#allocation35_spill] sm:$0xff]  ;;  %v9667_v46 = vld [vmem:[#allocation16_spill] sm:$0xff] }
 0x2ab   : > { %v1750_v5 = vadd.f32 %v7696_v29, %v9661_v34 }
 0x2ac   : > { %5369 = vmatmul.msk.bf16.gmra.mxu0 %vm707_vm1, %v1811_v53  ;;  %5383 = vmatmul.msk.bf16.gmra.mxu1 %vm707_vm1, %v1811_v53  ;;  %v7871_v51 = vpop.f32.mrf.mxu2  ;;  %v7873_v44 = vpop.f32.mrf.mxu3  ;;  %v1749_v53 = vadd.f32 %v7694_v59, %v9660_v14  ;;  %v9668_v14 = vld [vmem:[#allocation17_spill] sm:$0xff] }
 0x2b1   : > { %v1909_v43 = vpop.f32.mrf.mxu0  ;;  %v1988_v17 = vpop.f32.mrf.mxu1 }
 0x2b2   : > { %v2054_v49 = vadd.f32 %v1909_v43, %v1741_v15  ;;  %v2055_v19 = vadd.f32 %v1988_v17, %v1742_v24 }
 0x2b4   : > { %v7850_v0 = vpack.c.bf16 %v2054_v49, %v2052_v11  ;;  %v7852_v50 = vpack.c.bf16 %v2055_v19, %v2053_v54  ;;  %v7882_v20 = vpop.f32.mrf.mxu2  ;;  %v7884_v63 = vpop.f32.mrf.mxu3  ;;  %v9662_v19 = vld [vmem:[#allocation36_spill] sm:$0xff] }
 0x2b6   : > { %2311 = vmatmul.bf16.gmra.mxu2 %v7850_v0  ;;  %5449 = vmatmul.msk.bf16.gmra.mxu3 %vm2240_vm5, %v7852_v50 }
 0x2b9   : > { %v1912_v35 = vpop.f32.mrf.mxu0  ;;  %v1991_v2 = vpop.f32.mrf.mxu1 }
 0x2ba   : > { %v2056_v13 = vadd.f32 %v1912_v35, %v1743_v30  ;;  %v1751_v35 = vadd.f32 %v7701_v48, %v9662_v19 }
 0x2bc   : > { %5370 = vmatmul.msk.bf16.gmra.mxu0 %vm707_vm1, %v1810_v22  ;;  %5384 = vmatmul.msk.bf16.gmra.mxu1 %vm707_vm1, %v1810_v22  ;;  %v2057_v22 = vadd.f32 %v1991_v2, %v1744_v61  ;;  %v7897_v54 = vpop.f32.mrf.mxu2  ;;  %v9663_v2 = vld [vmem:[#allocation37_spill] sm:$0xff]  ;;  %v9664_v61 = vld [vmem:[#allocation38_spill] sm:$0xff] }
 0x2bd   : > { %v1752_v30 = vadd.f32 %v7703_v58, %v9663_v2 }
 0x2c1   : > { %v1914_v57 = vpop.f32.mrf.mxu0  ;;  %v1993_v33 = vpop.f32.mrf.mxu1 }
 0x2c2   : > { %v2058_v21 = vadd.f32 %v1914_v57, %v1745_v38  ;;  %v2059_v39 = vadd.f32 %v1993_v33, %v1746_v16  ;;  %v1753_v38 = vadd.f32 %v7718_v42, %v9664_v61  ;;  %v9665_v16 = vld [vmem:[#allocation39_spill] sm:$0xff] }
 0x2c3   : > { %v1754_v57 = vadd.f32 %v7720_v60, %v9665_v16 }
 0x2c4   : > { %v7875_v8 = vpack.c.bf16 %v2058_v21, %v2056_v13  ;;  %v7877_v55 = vpack.c.bf16 %v2059_v39, %v2057_v22  ;;  %v7911_v29 = vpop.f32.mrf.mxu2 }
 0x2c6   : > { %2316 = vmatmul.bf16.gmra.mxu2 %v7875_v8  ;;  %5450 = vmatmul.msk.bf16.gmra.mxu3 %vm2240_vm5, %v7877_v55 }
 0x2c9   : > { %v1917_v7 = vpop.f32.mrf.mxu0  ;;  %v1996_v56 = vpop.f32.mrf.mxu1 }
 0x2ca   : > { %v2060_v43 = vadd.f32 %v1917_v7, %v1747_v4  ;;  %v2061_v17 = vadd.f32 %v1996_v56, %v1748_v26  ;;  %v9666_v56 = vld [vmem:[#allocation9_spill] sm:$0xff]  ;;  %v1756_v26 = vadd.f32 %v7730_v18, %v9667_v46 }
 0x2cb   : > { %v1755_v4 = vadd.f32 %v7728_v32, %v9666_v56 }
 0x2cc   : > { %2570 = vmatmul.bf16.vlgmr.msrb.gmra.mxu0 %v7709_v52  ;;  %5549 = vmatmul.msk.bf16.vlgmr.msrb.gmra.mxu1 %vm2240_vm5, %v7711_v9  ;;  %v7899_v9 = vpop.f32.mrf.mxu3  ;;  %v7930_v48 = vpop.f32.mrf.mxu2 }
 0x2d1   : > { %v1919_v15 = vpop.f32.mrf.mxu0  ;;  %v1998_v24 = vpop.f32.mrf.mxu1 }
 0x2d2   : > { %v2062_v52 = vadd.f32 %v1919_v15, %v1749_v53  ;;  %v2063_v11 = vadd.f32 %v1998_v24, %v1750_v5  ;;  %v9669_v53 = vld [vmem:[#allocation15_spill] sm:$0xff]  ;;  %v9670_v5 = vld [vmem:[#allocation18_spill] sm:$0xff]  ;;  %v9671_v15 = vld [vmem:[#allocation41_spill] sm:$0xff] }
 0x2d3   : > { %v1757_v34 = vadd.f32 %v9669_v53, %v9668_v14  ;;  %v1758_v24 = vadd.f32 %v9671_v15, %v9670_v5  ;;  %v9676_v5 = vld [vmem:[#allocation11_spill] sm:$0xff] }
 0x2d4   : > { %v7901_v25 = vpack.c.bf16 %v2062_v52, %v2060_v43  ;;  %v7903_v6 = vpack.c.bf16 %v2063_v11, %v2061_v17  ;;  %v7913_v49 = vpop.f32.mrf.mxu3  ;;  %v7945_v52 = vpop.f32.mrf.mxu2  ;;  %v1763_v15 = vadd.f32 %v7836_v62, %v9676_v5 }
 0x2d6   : > { %2321 = vmatmul.bf16.gmra.mxu2 %v7901_v25  ;;  %5451 = vmatmul.msk.bf16.gmra.mxu3 %vm2240_vm5, %v7903_v6 }
 0x2d9   : > { %v1922_v28 = vpop.f32.mrf.mxu0  ;;  %v2001_v59 = vpop.f32.mrf.mxu1 }
 0x2da   : > { %v2064_v13 = vadd.f32 %v1922_v28, %v1751_v35 }
 0x2dc   : > { %2575 = vmatmul.bf16.gmra.mxu0 %v7732_v12  ;;  %5550 = vmatmul.msk.bf16.gmra.mxu1 %vm2240_vm5, %v7734_v41  ;;  %v2065_v41 = vadd.f32 %v2001_v59, %v1752_v30  ;;  %v7932_v58 = vpop.f32.mrf.mxu3 }
 0x2e1   : > { %v1924_v12 = vpop.f32.mrf.mxu0  ;;  %v2003_v33 = vpop.f32.mrf.mxu1 }
 0x2e2   : > { %v2066_v22 = vadd.f32 %v1924_v12, %v1753_v38  ;;  %v2067_v21 = vadd.f32 %v2003_v33, %v1754_v57  ;;  %v9672_v38 = vld [vmem:[#allocation10_spill] sm:$0xff]  ;;  %v9673_v57 = vld [vmem:[#allocation19_spill] sm:$0xff]  ;;  %v9674_v33 = vld [vmem:[#allocation20_spill] sm:$0xff] }
 0x2e3   : > { %v1759_v16 = vadd.f32 %v7784_v10, %v9672_v38  ;;  %v1760_v12 = vadd.f32 %v7786_v36, %v9673_v57 }
 0x2e4   : > { %v7923_v39 = vpack.c.bf16 %v2066_v22, %v2064_v13  ;;  %v7925_v7 = vpack.c.bf16 %v2067_v21, %v2065_v41  ;;  %v1761_v13 = vadd.f32 %v7811_v45, %v9674_v33  ;;  %v9675_v41 = vld [vmem:[#allocation21_spill] sm:$0xff] }
 0x2e5   : > { %v1762_v22 = vadd.f32 %v7813_v3, %v9675_v41 }
 0x2e6   : > { %2326 = vmatmul.bf16.gmra.mxu2 %v7923_v39  ;;  %5452 = vmatmul.msk.bf16.gmra.mxu3 %vm2240_vm5, %v7925_v7 }
 0x2e9   : > { %v1927_v42 = vpop.f32.mrf.mxu0  ;;  %v2006_v60 = vpop.f32.mrf.mxu1 }
 0x2ea   : > { %v2068_v11 = vadd.f32 %v1927_v42, %v1755_v4 }
 0x2ec   : > { %2580 = vmatmul.bf16.gmra.mxu0 %v7770_v27  ;;  %5551 = vmatmul.msk.bf16.gmra.mxu1 %vm2240_vm5, %v7772_v40  ;;  %v7947_v27 = vpop.f32.mrf.mxu3  ;;  %v2069_v40 = vadd.f32 %v2006_v60, %v1756_v26 }
 0x2f1   : > { %v1929_v43 = vpop.f32.mrf.mxu0  ;;  %v2008_v17 = vpop.f32.mrf.mxu1 }
 0x2f2   : > { %v2070_v28 = vadd.f32 %v1929_v43, %v1757_v34  ;;  %v2071_v59 = vadd.f32 %v2008_v17, %v1758_v24  ;;  %v9677_v24 = vld [vmem:[#allocation22_spill] sm:$0xff]  ;;  %v9678_v17 = vld [vmem:[#allocation23_spill] sm:$0xff] }
 0x2f3   : > { %v1764_v43 = vadd.f32 %v7838_v23, %v9677_v24  ;;  %v9684_v24 = vld [vmem:[#allocation13_spill] sm:$0xff] }
 0x2f4   : > { %v7949_v32 = vpack.c.bf16 %v2070_v28, %v2068_v11  ;;  %v7951_v19 = vpack.c.bf16 %v2071_v59, %v2069_v40  ;;  %v1765_v11 = vadd.f32 %v7854_v31, %v9678_v17  ;;  %v9679_v40 = vld [vmem:[#allocation24_spill] sm:$0xff] }
 0x2f5   : > { %v1766_v28 = vadd.f32 %v7856_v37, %v9679_v40  ;;  %v9685_v17 = vld [vmem:[#allocation28_spill] sm:$0xff]  ;;  %v9686_v40 = vld [vmem:[#allocation29_spill] sm:$0xff] }
 0x2f6   : > { %2331 = vmatmul.bf16.gmra.mxu2 %v7949_v32  ;;  %5453 = vmatmul.msk.bf16.gmra.mxu3 %vm2240_vm5, %v7951_v19 }
 0x2f9   : > { %v1932_v18 = vpop.f32.mrf.mxu0  ;;  %v2011_v35 = vpop.f32.mrf.mxu1 }
 0x2fa   : > { %v2292_v2 = vpop.f32.mrf.mxu2  ;;  %v2371_v30 = vpop.f32.mrf.mxu3  ;;  %v2072_v60 = vadd.f32 %v1932_v18, %v1759_v16  ;;  %v2073_v56 = vadd.f32 %v2011_v35, %v1760_v12 }
 0x2fb   : > { %v7956_v61 = vadd.f32 %v2371_v30, %v2292_v2 }
 0x2fc   : > { %2585 = vmatmul.bf16.gmra.mxu0 %v7821_v47  ;;  %5552 = vmatmul.msk.bf16.gmra.mxu1 %vm2240_vm5, %v7823_v1 }
 0x301   : > { %v1934_v21 = vpop.f32.mrf.mxu0  ;;  %v2013_v42 = vpop.f32.mrf.mxu1 }
 0x302   : > { %v2074_v47 = vadd.f32 %v1934_v21, %v1761_v13  ;;  %v2075_v4 = vadd.f32 %v2013_v42, %v1762_v22  ;;  %v2294_v46 = vpop.f32.mrf.mxu2  ;;  %v2373_v1 = vpop.f32.mrf.mxu3  ;;  %v9680_v13 = vld [vmem:[#allocation12_spill] sm:$0xff]  ;;  %v9681_v22 = vld [vmem:[#allocation25_spill] sm:$0xff]  ;;  %v9682_v42 = vld [vmem:[#allocation26_spill] sm:$0xff] }
 0x303   : > { %v7969_v26 = vadd.f32 %v2373_v1, %v2294_v46  ;;  %v1767_v41 = vadd.f32 %v7871_v51, %v9680_v13  ;;  %v1768_v21 = vadd.f32 %v7873_v44, %v9681_v22 }
 0x304   : > { %v7971_v10 = vpack.c.bf16 %v2074_v47, %v2072_v60  ;;  %v7973_v14 = vpack.c.bf16 %v2075_v4, %v2073_v56  ;;  %v1769_v60 = vadd.f32 %v7882_v20, %v9682_v42  ;;  %v9683_v56 = vld [vmem:[#allocation27_spill] sm:$0xff] }
 0x305   : > { %v1770_v47 = vadd.f32 %v7884_v63, %v9683_v56 }
 0x306   : > { %2336 = vmatmul.bf16.gmra.mxu2 %v7971_v10  ;;  %5454 = vmatmul.msk.bf16.gmra.mxu3 %vm2240_vm5, %v7973_v14 }
 0x309   : > { %v1937_v36 = vpop.f32.mrf.mxu0  ;;  %v2016_v45 = vpop.f32.mrf.mxu1 }
 0x30a   : > { %v2297_v3 = vpop.f32.mrf.mxu2  ;;  %v2376_v53 = vpop.f32.mrf.mxu3  ;;  %v2076_v35 = vadd.f32 %v1937_v36, %v1763_v15  ;;  %v2077_v2 = vadd.f32 %v2016_v45, %v1764_v43  ;;  %v1771_v43 = vadd.f32 %v7897_v54, %v9684_v24 }
 0x30b   : > { %v7978_v34 = vadd.f32 %v2376_v53, %v2297_v3 }
 0x30c   : > { %2590 = vmatmul.bf16.gmra.mxu0 %v7850_v0  ;;  %5553 = vmatmul.msk.bf16.gmra.mxu1 %vm2240_vm5, %v7852_v50 }
 0x311   : > { %v1939_v59 = vpop.f32.mrf.mxu0  ;;  %v2018_v18 = vpop.f32.mrf.mxu1 }
 0x312   : > { %v2078_v0 = vadd.f32 %v1939_v59, %v1765_v11  ;;  %v2079_v30 = vadd.f32 %v2018_v18, %v1766_v28  ;;  %v2299_v38 = vpop.f32.mrf.mxu2  ;;  %v2378_v50 = vpop.f32.mrf.mxu3  ;;  %v1772_v11 = vadd.f32 %v7899_v9, %v9685_v17  ;;  %v1773_v28 = vadd.f32 %v7911_v29, %v9686_v40  ;;  %v9687_v59 = vld [vmem:[#allocation30_spill] sm:$0xff] }
 0x313   : > { %v7991_v16 = vadd.f32 %v2378_v50, %v2299_v38  ;;  %v1774_v18 = vadd.f32 %v7913_v49, %v9687_v59 }
 0x314   : > { %v7993_v62 = vpack.c.bf16 %v2078_v0, %v2076_v35  ;;  %v7995_v57 = vpack.c.bf16 %v2079_v30, %v2077_v2 }
 0x316   : > { %2341 = vmatmul.bf16.gmra.mxu2 %v7993_v62  ;;  %5455 = vmatmul.msk.bf16.gmra.mxu3 %vm2240_vm5, %v7995_v57 }
 0x319   : > { %v1942_v23 = vpop.f32.mrf.mxu0  ;;  %v2021_v31 = vpop.f32.mrf.mxu1 }
 0x31a   : > { %v2302_v37 = vpop.f32.mrf.mxu2  ;;  %v2381_v12 = vpop.f32.mrf.mxu3  ;;  %v2080_v1 = vadd.f32 %v1942_v23, %v1767_v41  ;;  %v2081_v36 = vadd.f32 %v2021_v31, %v1768_v21  ;;  %v9689_v41 = vld [vmem:[#allocation40_spill] sm:$0xff]  ;;  %v9690_v21 = vld [vmem:[#allocation31_spill] sm:$0xff] }
 0x31b   : > { %v8000_v33 = vadd.f32 %v2381_v12, %v2302_v37  ;;  %v9688_v12 = vld [vmem:[#allocation14_spill] sm:$0xff]  ;;  %v1776_v22 = vadd.f32 %v7932_v58, %v9689_v41  ;;  %v1777_v42 = vadd.f32 %v7945_v52, %v9690_v21 }
 0x31c   : > { %2595 = vmatmul.bf16.gmra.mxu0 %v7875_v8  ;;  %5554 = vmatmul.msk.bf16.gmra.mxu1 %vm2240_vm5, %v7877_v55  ;;  %v1775_v13 = vadd.f32 %v7930_v48, %v9688_v12 }
 0x321   : > { %v1944_v4 = vpop.f32.mrf.mxu0  ;;  %v2023_v46 = vpop.f32.mrf.mxu1 }
 0x322   : > { %v2082_v8 = vadd.f32 %v1944_v4, %v1769_v60  ;;  %v2083_v45 = vadd.f32 %v2023_v46, %v1770_v47  ;;  %v8013_v3 = vpop.f32.mrf.mxu2  ;;  %v8015_v55 = vpop.f32.mrf.mxu3  ;;  %v9691_v60 = vld [vmem:[#allocation32_spill] sm:$0xff] }
 0x323   : > { %v1778_v56 = vadd.f32 %v7947_v27, %v9691_v60 }
 0x324   : > { %v8017_v51 = vpack.c.bf16 %v2082_v8, %v2080_v1  ;;  %v8019_v53 = vpack.c.bf16 %v2083_v45, %v2081_v36 }
 0x326   : > { %2346 = vmatmul.bf16.gmra.mxu2 %v8017_v51  ;;  %5456 = vmatmul.msk.bf16.gmra.mxu3 %vm2240_vm5, %v8019_v53 }
 0x329   : > { %v1947_v44 = vpop.f32.mrf.mxu0  ;;  %v2026_v20 = vpop.f32.mrf.mxu1 }
 0x32a   : > { %v2307_v63 = vpop.f32.mrf.mxu2  ;;  %v2386_v5 = vpop.f32.mrf.mxu3  ;;  %v2084_v0 = vadd.f32 %v1947_v44, %v1771_v43  ;;  %v2085_v30 = vadd.f32 %v2026_v20, %v1772_v11 }
 0x32b   : > { %v8024_v15 = vadd.f32 %v2386_v5, %v2307_v63 }
 0x32c   : > { %2600 = vmatmul.bf16.gmra.mxu0 %v7901_v25  ;;  %5555 = vmatmul.msk.bf16.gmra.mxu1 %vm2240_vm5, %v7903_v6 }
 0x331   : > { %v1949_v35 = vpop.f32.mrf.mxu0  ;;  %v2028_v2 = vpop.f32.mrf.mxu1 }
 0x332   : > { %v2086_v25 = vadd.f32 %v1949_v35, %v1773_v28  ;;  %v2087_v38 = vadd.f32 %v2028_v2, %v1774_v18  ;;  %v8037_v50 = vpop.f32.mrf.mxu2  ;;  %v8039_v6 = vpop.f32.mrf.mxu3 }
 0x334   : > { %v8041_v54 = vpack.c.bf16 %v2086_v25, %v2084_v0  ;;  %v8043_v23 = vpack.c.bf16 %v2087_v38, %v2085_v30 }
 0x336   : > { %2351 = vmatmul.bf16.gmra.mxu2 %v8041_v54  ;;  %5457 = vmatmul.msk.bf16.gmra.mxu3 %vm2240_vm5, %v8043_v23 }
 0x339   : > { %v1952_v9 = vpop.f32.mrf.mxu0  ;;  %v2031_v29 = vpop.f32.mrf.mxu1 }
 0x33a   : > { %v2312_v49 = vpop.f32.mrf.mxu2  ;;  %v2391_v31 = vpop.f32.mrf.mxu3  ;;  %v2088_v46 = vadd.f32 %v1952_v9, %v1775_v13  ;;  %v2089_v1 = vadd.f32 %v2031_v29, %v1776_v22 }
 0x33b   : > { %v8048_v37 = vadd.f32 %v2391_v31, %v2312_v49 }
 0x33c   : > { %2605 = vmatmul.bf16.gmra.mxu0 %v7923_v39  ;;  %5556 = vmatmul.msk.bf16.gmra.mxu1 %vm2240_vm5, %v7925_v7 }
 0x341   : > { %v1954_v47 = vpop.f32.mrf.mxu0  ;;  %v2033_v4 = vpop.f32.mrf.mxu1 }
 0x342   : > { %v2090_v39 = vadd.f32 %v1954_v47, %v1777_v42  ;;  %v2091_v36 = vadd.f32 %v2033_v4, %v1778_v56  ;;  %v8061_v8 = vpop.f32.mrf.mxu2  ;;  %v8063_v7 = vpop.f32.mrf.mxu3 }
 0x344   : > { %v8065_v48 = vpack.c.bf16 %v2090_v39, %v2088_v46  ;;  %v8067_v45 = vpack.c.bf16 %v2091_v36, %v2089_v1 }
 0x346   : > { %2356 = vmatmul.bf16.gmra.mxu2 %v8065_v48  ;;  %5458 = vmatmul.msk.bf16.gmra.mxu3 %vm2240_vm5, %v8067_v45 }
 0x349   : > { %v2571_v58 = vpop.f32.mrf.mxu0  ;;  %v2650_v52 = vpop.f32.mrf.mxu1 }
 0x34a   : > { %v8072_v27 = vpop.f32.mrf.mxu2  ;;  %v8074_v44 = vpop.f32.mrf.mxu3  ;;  %v2651_v20 = vadd.f32 %v2650_v52, %v2571_v58 }
 0x34c   : > { %v2720_v63 = vmax.f32 %v7956_v61, %v2651_v20  ;;  %2610 = vmatmul.bf16.gmra.mxu0 %v7949_v32  ;;  %5557 = vmatmul.msk.bf16.gmra.mxu1 %vm2240_vm5, %v7951_v19 }
 0x351   : > { %v2573_v5 = vpop.f32.mrf.mxu0  ;;  %v2652_v24 = vpop.f32.mrf.mxu1 }
 0x352   : > { %v8080_v43 = vpop.f32.mrf.mxu2  ;;  %v8082_v17 = vpop.f32.mrf.mxu3  ;;  %v2653_v11 = vadd.f32 %v2652_v24, %v2573_v5 }
 0x354   : > { %v2721_v40 = vmax.f32 %v7969_v26, %v2653_v11 }
 0x356   : > { %v8085_v28 = vpack.c.bf16 %v2721_v40, %v2720_v63 }
 0x359   : > { %v2576_v59 = vpop.f32.mrf.mxu0  ;;  %v2655_v18 = vpop.f32.mrf.mxu1 }
 0x35a   : > { %v8087_v35 = vpop.f32.mrf.mxu2  ;;  %v8089_v61 = vpop.f32.mrf.mxu3  ;;  %v2656_v32 = vadd.f32 %v2655_v18, %v2576_v59 }
 0x35c   : > { %v2722_v19 = vmax.f32 %v7978_v34, %v2656_v32  ;;  %2615 = vmatmul.bf16.gmra.mxu0 %v7971_v10  ;;  %5558 = vmatmul.msk.bf16.gmra.mxu1 %vm2240_vm5, %v7973_v14 }
 0x361   : > { %v2578_v2 = vpop.f32.mrf.mxu0  ;;  %v2657_v0 = vpop.f32.mrf.mxu1 }
 0x362   : > { %v8095_v30 = vpop.f32.mrf.mxu2  ;;  %v8097_v26 = vpop.f32.mrf.mxu3  ;;  %v2658_v25 = vadd.f32 %v2657_v0, %v2578_v2 }
 0x364   : > { %v2723_v38 = vmax.f32 %v7991_v16, %v2658_v25 }
 0x366   : > { %v8100_v9 = vpack.c.bf16 %v2723_v38, %v2722_v19 }
 0x369   : > { %v2581_v29 = vpop.f32.mrf.mxu0  ;;  %v2660_v49 = vpop.f32.mrf.mxu1 }
 0x36a   : > { %v2327_v31 = vpop.f32.mrf.mxu2  ;;  %v2406_v34 = vpop.f32.mrf.mxu3  ;;  %v8102_v12 = vadd.f32 %v2660_v49, %v2581_v29 }
 0x36c   : > { %2620 = vmatmul.bf16.gmra.mxu0 %v7993_v62  ;;  %5559 = vmatmul.msk.bf16.gmra.mxu1 %vm2240_vm5, %v7995_v57 }
 0x371   : > { %v8109_v14 = vpop.f32.mrf.mxu0  ;;  %v8111_v13 = vpop.f32.mrf.mxu1 }
 0x372   : > { %v2329_v16 = vpop.f32.mrf.mxu2  ;;  %v2408_v41 = vpop.f32.mrf.mxu3 }
 0x379   : > { %v2586_v22 = vpop.f32.mrf.mxu0  ;;  %v2665_v21 = vpop.f32.mrf.mxu1 }
 0x37a   : > { %v2332_v42 = vpop.f32.mrf.mxu2  ;;  %v2411_v60 = vpop.f32.mrf.mxu3  ;;  %v8113_v56 = vadd.f32 %v2665_v21, %v2586_v22 }
 0x37b   : > { %v8115_v47 = vadd.f32 %v2411_v60, %v2332_v42  ;;  %v2407_v42 = vadd.f32 %v2406_v34, %v2327_v31  ;;  %v2409_v60 = vadd.f32 %v2408_v41, %v2329_v16  ;;  %v2397_v34 = vadd.f32 %v8074_v44, %v8072_v27 }
 0x37c   : > { %v2726_v62 = vmax.f32 %v8024_v15, %v8113_v56  ;;  %2625 = vmatmul.bf16.gmra.mxu0 %v8017_v51  ;;  %5560 = vmatmul.msk.bf16.gmra.mxu1 %vm2240_vm5, %v8019_v53  ;;  %v2389_v27 = vadd.f32 %v8039_v6, %v8037_v50 }
 0x381   : > { %v2588_v57 = vpop.f32.mrf.mxu0  ;;  %v2667_v4 = vpop.f32.mrf.mxu1 }
 0x382   : > { %v8122_v46 = vpop.f32.mrf.mxu2  ;;  %v8124_v1 = vpop.f32.mrf.mxu3 }
 0x389   : > { %v2591_v39 = vpop.f32.mrf.mxu0  ;;  %v2670_v36 = vpop.f32.mrf.mxu1 }
 0x38a   : > { %v2337_v58 = vpop.f32.mrf.mxu2  ;;  %v2416_v52 = vpop.f32.mrf.mxu3  ;;  %v8126_v20 = vadd.f32 %v2670_v36, %v2591_v39 }
 0x38b   : > { %v8128_v63 = vadd.f32 %v2416_v52, %v2337_v58 }
 0x38c   : > { %v2728_v51 = vmax.f32 %v8048_v37, %v8126_v20  ;;  %2630 = vmatmul.bf16.gmra.mxu0 %v8041_v54  ;;  %5561 = vmatmul.msk.bf16.gmra.mxu1 %vm2240_vm5, %v8043_v23  ;;  %v2402_v20 = vadd.f32 %v8089_v61, %v8087_v35  ;;  %v2394_v35 = vadd.f32 %v8063_v7, %v8061_v8 }
 0x391   : > { %v2593_v53 = vpop.f32.mrf.mxu0  ;;  %v2672_v5 = vpop.f32.mrf.mxu1 }
 0x392   : > { %v8135_v24 = vpop.f32.mrf.mxu2  ;;  %v8137_v11 = vpop.f32.mrf.mxu3 }
 0x399   : > { %v2596_v40 = vpop.f32.mrf.mxu0  ;;  %v2675_v59 = vpop.f32.mrf.mxu1 }
 0x39a   : > { %v2342_v18 = vpop.f32.mrf.mxu2  ;;  %v2421_v32 = vpop.f32.mrf.mxu3 }
 0x39b   : > { %v8139_v19 = vadd.f32 %v2421_v32, %v2342_v18 }
 0x39c   : > { %2635 = vmatmul.bf16.gmra.mxu0 %v8065_v48  ;;  %5562 = vmatmul.msk.bf16.gmra.mxu1 %vm2240_vm5, %v8067_v45  ;;  %v2404_v48 = vadd.f32 %v8097_v26, %v8095_v30  ;;  %v2673_v26 = vadd.f32 %v2672_v5, %v2593_v53  ;;  %v2663_v5 = vadd.f32 %v8111_v13, %v8109_v14 }
 0x3a1   : > { %v2598_v54 = vpop.f32.mrf.mxu0  ;;  %v2677_v37 = vpop.f32.mrf.mxu1 }
 0x3a2   : > { %v2678_v18 = vadd.f32 %v2677_v37, %v2598_v54  ;;  %v2384_v54 = vadd.f32 %v8015_v55, %v8013_v3  ;;  %v8183_v15 = vpop.f32.mrf.mxu2  ;;  %v8185_v56 = vpop.f32.mrf.mxu3 }
 0x3a9   : > { %v2601_v23 = vpop.f32.mrf.mxu0  ;;  %v2680_v2 = vpop.f32.mrf.mxu1 }
 0x3aa   : > { %v2681_v58 = vadd.f32 %v2680_v2, %v2601_v23 }
 0x3ac   : > { %v2732_v31 = vmax.f32 %v2402_v20, %v2681_v58 }
 0x3b1   : > { %v2603_v0 = vpop.f32.mrf.mxu0  ;;  %v2682_v25 = vpop.f32.mrf.mxu1 }
 0x3b2   : > { %v2683_v39 = vadd.f32 %v2682_v25, %v2603_v0  ;;  %v9692_v0 = vmax.f32 %v8000_v33, %v8102_v12  ;;  %v2426_v25 = vpop.f32.mrf.mxu3 }
 0x3b4   : > { %v2733_v32 = vmax.f32 %v2404_v48, %v2683_v39 }
 0x3b6   : > { %v2754_v2 = vpack.c.bf16 %v2733_v32, %v2732_v31 }
 0x3b9   : > { %v2606_v38 = vpop.f32.mrf.mxu0  ;;  %v2685_v29 = vpop.f32.mrf.mxu1 }
 0x3ba   : > { %v2686_v49 = vadd.f32 %v2685_v29, %v2606_v38  ;;  %v2399_v38 = vadd.f32 %v8082_v17, %v8080_v43  ;;  %v2676_v29 = vadd.f32 %v2675_v59, %v2596_v40  ;;  %v2668_v17 = vadd.f32 %v2667_v4, %v2588_v57 }
 0x3bb   : > { %v2729_v40 = vmax.f32 %v2394_v35, %v2673_v26  ;;  %v2725_v57 = vmax.f32 %v2384_v54, %v2663_v5 }
 0x3bc   : > { %v2734_v45 = vmax.f32 %v2407_v42, %v2686_v49  ;;  %v2731_v41 = vmax.f32 %v2399_v38, %v2678_v18  ;;  %v2730_v61 = vmax.f32 %v2397_v34, %v2676_v29  ;;  %v2727_v8 = vmax.f32 %v2389_v27, %v2668_v17 }
 0x3bd   : > { %v2752_v7 = vpack.c.bf16 %v2729_v40, %v2728_v51  ;;  %v2750_v14 = vpack.c.bf16 %v2725_v57, %v9692_v0  ;;  %v2347_v51 = vpop.f32.mrf.mxu2 }
 0x3be   : > { %v2753_v59 = vpack.c.bf16 %v2731_v41, %v2730_v61  ;;  %v2751_v4 = vpack.c.bf16 %v2727_v8, %v2726_v62 }
 0x3c1   : > { %v2608_v22 = vpop.f32.mrf.mxu0  ;;  %v2687_v21 = vpop.f32.mrf.mxu1 }
 0x3c2   : > { %v2688_v36 = vadd.f32 %v2687_v21, %v2608_v22 }
 0x3c4   : > { %v2735_v52 = vmax.f32 %v2409_v60, %v2688_v36  ;;  %v2428_v60 = vpop.f32.mrf.mxu3 }
 0x3c5   : > { %v2349_v42 = vpop.f32.mrf.mxu2 }
 0x3c6   : > { %v2755_v10 = vpack.c.bf16 %v2735_v52, %v2734_v45 }
 0x3c8   : > { %2850 = vmatpush.bf16.msrb.mxu2 %v2755_v10 }
 0x3c9   : > { %v2611_v16 = vpop.f32.mrf.mxu0  ;;  %v2690_v30 = vpop.f32.mrf.mxu1 }
 0x3ca   : > { %v8152_v23 = vadd.f32 %v2690_v30, %v2611_v16  ;;  %v5565_v16 = vld [vmem:[%s9514_s3] sm:$0xf] }
 0x3cc   : > { %v2736_v43 = vmax.f32 %v8115_v47, %v8152_v23  ;;  %2851 = vmatpush.bf16.msrb.mxu2 %v2754_v2  ;;  %v2431_v48 = vpop.f32.mrf.mxu3  ;;  %v6402_v47 = vld [vmem:[%s9514_s3 + $0x14] sm:$0xf]  ;;  %v5575_v23 = vld [vmem:[%s9514_s3 + $0x18] sm:$0xf0] }
 0x3d0   : > { %2852 = vmatpush.bf16.msrb.mxu2 %v2753_v59 }
 0x3d1   : > { %v8160_v44 = vpop.f32.mrf.mxu0  ;;  %v8162_v53 = vpop.f32.mrf.mxu1 }
 0x3d4   : > { %2853 = vmatpush.bf16.msrb.mxu2 %v2752_v7  ;;  %v2433_v32 = vpop.f32.mrf.mxu3 }
 0x3d8   : > { %2854 = vmatpush.bf16.msrb.mxu2 %v2751_v4 }
 0x3d9   : > { %v2616_v50 = vpop.f32.mrf.mxu0  ;;  %v2695_v6 = vpop.f32.mrf.mxu1 }
 0x3da   : > { %v8171_v37 = vadd.f32 %v2695_v6, %v2616_v50  ;;  %v5573_v50 = vld [vmem:[%s9514_s3 + $0x10] sm:$0xf]  ;;  %v6403_v6 = vld [vmem:[%s9514_s3 + $0x14] sm:$0xf0] }
 0x3dc   : > { %v2738_v13 = vmax.f32 %v8128_v63, %v8171_v37  ;;  %2855 = vmatpush.bf16.msrb.mxu2 %v2750_v14  ;;  %v2436_v34 = vpop.f32.mrf.mxu3  ;;  %v5589_v63 = vld [vmem:[%s9514_s3 + $0x30] sm:$0xf] }
 0x3e0   : > { %2856 = vmatpush.bf16.msrb.mxu2 %v8100_v9 }
 0x3e1   : > { %v8179_v3 = vpop.f32.mrf.mxu0  ;;  %v8181_v55 = vpop.f32.mrf.mxu1 }
 0x3e4   : > { %2857 = vmatpush.bf16.msrb.mxu2 %v8085_v28 }
 0x3e8   : > { %3013 = vmatpush.bf16.msra.mxu2 %v2755_v10  ;;  %v2352_v10 = vpop.f32.mrf.mxu2 }
 0x3e9   : > { %v2621_v62 = vpop.f32.mrf.mxu0  ;;  %v2700_v33 = vpop.f32.mrf.mxu1  ;;  %v2432_v0 = vadd.f32 %v2431_v48, %v2352_v10  ;;  %v2698_v10 = vadd.f32 %v8181_v55, %v8179_v3 }
 0x3ea   : > { %v8188_v12 = vadd.f32 %v2700_v33, %v2621_v62  ;;  %v5574_v33 = vor.u32 %v6403_v6, %v5573_v50  ;;  %v6417_v50 = vld [vmem:[%s9514_s3 + $0x84] sm:$0xf0] }
 0x3ec   : > { %3014 = vmatpush.bf16.msra.mxu2 %v2754_v2  ;;  %v2740_v49 = vmax.f32 %v8139_v19, %v8188_v12  ;;  %v2438_v2 = vpop.f32.mrf.mxu3  ;;  %v5567_v19 = vld [vmem:[%s9514_s3 + $0x8] sm:$0xf0]  ;;  %v6409_v12 = vld [vmem:[%s9514_s3 + $0x44] sm:$0xf0] }
 0x3f0   : > { %3015 = vmatpush.bf16.msra.mxu2 %v2753_v59  ;;  %v2354_v18 = vpop.f32.mrf.mxu2 }
 0x3f1   : > { %v2623_v22 = vpop.f32.mrf.mxu0  ;;  %v2702_v21 = vpop.f32.mrf.mxu1  ;;  %v2434_v54 = vadd.f32 %v2433_v32, %v2354_v18 }
 0x3f4   : > { %3016 = vmatpush.bf16.msra.mxu2 %v2752_v7 }
 0x3f8   : > { %3017 = vmatpush.bf16.msra.mxu2 %v2751_v4  ;;  %v2357_v31 = vpop.f32.mrf.mxu2 }
 0x3f9   : > { %v2626_v39 = vpop.f32.mrf.mxu0  ;;  %v2705_v36 = vpop.f32.mrf.mxu1  ;;  %v2437_v40 = vadd.f32 %v2436_v34, %v2357_v31 }
 0x3fc   : > { %3018 = vmatpush.bf16.msra.mxu2 %v2750_v14 }
 0x400   : > { %3019 = vmatpush.bf16.msra.mxu2 %v8100_v9  ;;  %v6401_v9 = vld [vmem:[%s9514_s3 + $0x4] sm:$0xf0] }
 0x401   : > { %v2628_v58 = vpop.f32.mrf.mxu0  ;;  %v2707_v45 = vpop.f32.mrf.mxu1  ;;  %v5566_v30 = vor.u32 %v6401_v9, %v5565_v16  ;;  %v2424_v16 = vadd.f32 %v8185_v56, %v8183_v15  ;;  %v2693_v15 = vadd.f32 %v8162_v53, %v8160_v44  ;;  %v6400_v44 = vld [vmem:[%s9514_s3 + $0x4] sm:$0xf]  ;;  %v6407_v53 = vld [vmem:[%s9514_s3 + $0x34] sm:$0xf0] }
 0x402   : > { %v2708_v14 = vadd.f32 %v2707_v45, %v2628_v58  ;;  %v5590_v37 = vor.u32 %v6407_v53, %v5589_v63  ;;  %v6411_v45 = vld [vmem:[%s9514_s3 + $0x54] sm:$0xf0] }
 0x403   : > { %2858 = vmatmul.bf16.vlgmr.msrb.gmra.mxu2 %v5566_v30 }
 0x404   : > { %3020 = vmatpush.bf16.msra.mxu2 %v8085_v28  ;;  %v2359_v28 = vpop.f32.mrf.mxu2 }
 0x405   : > { %v2439_v59 = vadd.f32 %v2438_v2, %v2359_v28  ;;  %v5631_v2 = vld [vmem:[%s9514_s3 + $0x60] sm:$0xf] }
 0x409   : > { %v2631_v52 = vpop.f32.mrf.mxu0  ;;  %v2710_v20 = vpop.f32.mrf.mxu1 }
 0x40a   : > { %v2711_v57 = vadd.f32 %v2710_v20, %v2631_v52  ;;  %v2427_v52 = vadd.f32 %v2426_v25, %v2347_v51  ;;  %v2703_v20 = vadd.f32 %v2702_v21, %v2623_v22  ;;  %v5581_v51 = vld [vmem:[%s9514_s3 + $0x20] sm:$0xf]  ;;  %v6405_v25 = vld [vmem:[%s9514_s3 + $0x24] sm:$0xf0]  ;;  %v6404_v21 = vld [vmem:[%s9514_s3 + $0x24] sm:$0xf] }
 0x40c   : > { %v2744_v34 = vmax.f32 %v2432_v0, %v2711_v57  ;;  %v2741_v48 = vmax.f32 %v2424_v16, %v2703_v20  ;;  %v6412_v0 = vld [vmem:[%s9514_s3 + $0x64] sm:$0xf]  ;;  %v5641_v20 = vld [vmem:[%s9514_s3 + $0x78] sm:$0xf0] }
 0x40e   : > { %v2758_v3 = vpack.c.bf16 %v2741_v48, %v2740_v49 }
 0x411   : > { %v2633_v38 = vpop.f32.mrf.mxu0  ;;  %v2712_v29 = vpop.f32.mrf.mxu1 }
 0x412   : > { %v2713_v5 = vadd.f32 %v2712_v29, %v2633_v38  ;;  %v2429_v38 = vadd.f32 %v2428_v60, %v2349_v42  ;;  %v2706_v29 = vadd.f32 %v2705_v36, %v2626_v39  ;;  %v2419_v42 = vadd.f32 %v8137_v11, %v8135_v24  ;;  %v5583_v60 = vld [vmem:[%s9514_s3 + $0x28] sm:$0xf0]  ;;  %v5605_v36 = vld [vmem:[%s9514_s3 + $0x50] sm:$0xf] }
 0x413   : > { %2863 = vmatmul.bf16.gmra.mxu2 %v5574_v33  ;;  %v2414_v24 = vadd.f32 %v8124_v1, %v8122_v46  ;;  %v5582_v11 = vor.u32 %v6405_v25, %v5581_v51  ;;  %v5570_v1 = vor.u32 %v6400_v44, %v5567_v19  ;;  %v5586_v39 = vor.u32 %v6404_v21, %v5583_v60  ;;  %v5657_v44 = vld [vmem:[%s9514_s3 + $0x98] sm:$0xf0]  ;;  %v6422_v60 = vld [vmem:[%s9514_s3 + $0xb4] sm:$0xf] }
 0x414   : > { %v2745_v62 = vmax.f32 %v2434_v54, %v2713_v5  ;;  %v2743_v18 = vmax.f32 %v2429_v38, %v2708_v14  ;;  %v2742_v9 = vmax.f32 %v2427_v52, %v2706_v29  ;;  %v2739_v56 = vmax.f32 %v2419_v42, %v2698_v10  ;;  %v6415_v5 = vld [vmem:[%s9514_s3 + $0x74] sm:$0xf0]  ;;  %v5607_v54 = vld [vmem:[%s9514_s3 + $0x58] sm:$0xf0]  ;;  %v5633_v14 = vld [vmem:[%s9514_s3 + $0x68] sm:$0xf0] }
 0x415   : > { %v2737_v55 = vmax.f32 %v2414_v24, %v2693_v15  ;;  %v5606_v30 = vor.u32 %v6411_v45, %v5605_v36  ;;  %v5655_v38 = vld [vmem:[%s9514_s3 + $0x90] sm:$0xf]  ;;  %v6419_v29 = vld [vmem:[%s9514_s3 + $0x94] sm:$0xf0]  ;;  %v6414_v52 = vld [vmem:[%s9514_s3 + $0x74] sm:$0xf] }
 0x416   : > { %v2760_v32 = vpack.c.bf16 %v2745_v62, %v2744_v34  ;;  %v2759_v58 = vpack.c.bf16 %v2743_v18, %v2742_v9  ;;  %v2757_v22 = vpack.c.bf16 %v2739_v56, %v2738_v13  ;;  %v5597_v13 = vld [vmem:[%s9514_s3 + $0x40] sm:$0xf]  ;;  %v5636_v62 = vor.u32 %v6412_v0, %v5633_v14  ;;  %v6421_v10 = vld [vmem:[%s9514_s3 + $0xa4] sm:$0xf0]  ;;  %v5649_v42 = vld [vmem:[%s9514_s3 + $0x88] sm:$0xf0] }
 0x417   : > { %v2756_v46 = vpack.c.bf16 %v2737_v55, %v2736_v43  ;;  %v5578_v43 = vor.u32 %v6402_v47, %v5575_v23  ;;  %v5598_v49 = vor.u32 %v6409_v12, %v5597_v13  ;;  %v5656_v34 = vor.u32 %v6419_v29, %v5655_v38  ;;  %v5663_v9 = vld [vmem:[%s9514_s3 + $0xa0] sm:$0xf]  ;;  %v6423_v24 = vld [vmem:[%s9514_s3 + $0xb4] sm:$0xf0]  ;;  %v5665_v47 = vld [vmem:[%s9514_s3 + $0xa8] sm:$0xf0] }
 0x418   : > { %v5644_v18 = vor.u32 %v6414_v52, %v5641_v20  ;;  %v5664_v48 = vor.u32 %v6421_v10, %v5663_v9  ;;  %v6435_v0 = vld [vmem:[%s9516_s5 + $0x54] sm:$0xf0]  ;;  %v6434_v14 = vld [vmem:[%s9516_s5 + $0x54] sm:$0xf]  ;;  %v5800_v20 = vld [vmem:[%s9516_s5 + $0x40] sm:$0xf] }
 0x419   : > { %v2636_v26 = vpop.f32.mrf.mxu0  ;;  %v2715_v41 = vpop.f32.mrf.mxu1  ;;  %v5802_v10 = vld [vmem:[%s9516_s5 + $0x48] sm:$0xf0] }
 0x41a   : > { %v2716_v35 = vadd.f32 %v2715_v41, %v2636_v26  ;;  %v6406_v26 = vld [vmem:[%s9514_s3 + $0x34] sm:$0xf]  ;;  %v5591_v41 = vld [vmem:[%s9514_s3 + $0x38] sm:$0xf0] }
 0x41b   : > { %v5594_v28 = vor.u32 %v6406_v26, %v5591_v41 }
 0x41c   : > { %v2746_v8 = vmax.f32 %v2437_v40, %v2716_v35  ;;  %v6413_v35 = vld [vmem:[%s9514_s3 + $0x64] sm:$0xf0]  ;;  %v5599_v40 = vld [vmem:[%s9514_s3 + $0x48] sm:$0xf0] }
 0x421   : > { %v2638_v61 = vpop.f32.mrf.mxu0  ;;  %v2717_v17 = vpop.f32.mrf.mxu1 }
 0x422   : > { %v2718_v27 = vadd.f32 %v2717_v17, %v2638_v61  ;;  %v5632_v61 = vor.u32 %v6413_v35, %v5631_v2  ;;  %v6408_v17 = vld [vmem:[%s9514_s3 + $0x44] sm:$0xf] }
 0x423   : > { %2868 = vmatmul.bf16.gmra.mxu2 %v5582_v11 }
 0x424   : > { %v2747_v7 = vmax.f32 %v2439_v59, %v2718_v27  ;;  %v5602_v59 = vor.u32 %v6408_v17, %v5599_v40  ;;  %v5639_v27 = vld [vmem:[%s9514_s3 + $0x70] sm:$0xf] }
 0x426   : > { %v2761_v4 = vpack.c.bf16 %v2747_v7, %v2746_v8  ;;  %v5640_v8 = vor.u32 %v6415_v5, %v5639_v27  ;;  %v6410_v7 = vld [vmem:[%s9514_s3 + $0x54] sm:$0xf] }
 0x427   : > { %v5610_v57 = vor.u32 %v6410_v7, %v5607_v54  ;;  %v6437_v7 = vld [vmem:[%s9516_s5 + $0x64] sm:$0xf0]  ;;  %v6436_v54 = vld [vmem:[%s9516_s5 + $0x64] sm:$0xf] }
 0x428   : > { %v2848_v31 = vsel %vm750_vm0, %v2761_v4, 0  ;;  %v5647_v4 = vld [vmem:[%s9514_s3 + $0x80] sm:$0xf] }
 0x429   : > { %2891 = vmatpush.bf16.msrb.mxu3 %v2848_v31  ;;  %v5648_v6 = vor.u32 %v6417_v50, %v5647_v4  ;;  %v5818_v4 = vld [vmem:[%s9516_s5 + $0x68] sm:$0xf0] }
 0x42a   : > { %v5821_v50 = vor.u32 %v6436_v54, %v5818_v4  ;;  %v6450_v54 = vld [vmem:[%s9516_s5 + $0xdc] sm:$0xf] }
 0x42d   : > { %2892 = vmatpush.bf16.msrb.mxu3 %v2760_v32 }
 0x431   : > { %2893 = vmatpush.bf16.msrb.mxu3 %v2759_v58 }
 0x433   : > { %2873 = vmatmul.bf16.gmra.mxu2 %v5590_v37  ;;  %v6420_v37 = vld [vmem:[%s9514_s3 + $0xa4] sm:$0xf] }
 0x434   : > { %v5668_v13 = vor.u32 %v6420_v37, %v5665_v47  ;;  %v6428_v37 = vld [vmem:[%s9516_s5 + $0x24] sm:$0xf] }
 0x435   : > { %2894 = vmatpush.bf16.msrb.mxu3 %v2758_v3 }
 0x439   : > { %2895 = vmatpush.bf16.msrb.mxu3 %v2757_v22 }
 0x43d   : > { %2896 = vmatpush.bf16.msrb.mxu3 %v2756_v46 }
 0x440   : > { %5611 = vmatmul.msk.bf16.vlgmr.msrb.gmra.mxu3 %vm2828_vm6, %v5570_v1 }
 0x441   : > { %3054 = vmatpush.bf16.msra.mxu3 %v2848_v31 }
 0x443   : > { %2878 = vmatmul.bf16.gmra.mxu2 %v5598_v49 }
 0x445   : > { %3055 = vmatpush.bf16.msra.mxu3 %v2760_v32 }
 0x449   : > { %3056 = vmatpush.bf16.msra.mxu3 %v2759_v58  ;;  %v6416_v58 = vld [vmem:[%s9514_s3 + $0x84] sm:$0xf] }
 0x44a   : > { %v5652_v51 = vor.u32 %v6416_v58, %v5649_v42  ;;  %v5792_v58 = vld [vmem:[%s9516_s5 + $0x30] sm:$0xf]  ;;  %v6431_v42 = vld [vmem:[%s9516_s5 + $0x34] sm:$0xf0] }
 0x44d   : > { %3057 = vmatpush.bf16.msra.mxu3 %v2758_v3  ;;  %v5671_v3 = vld [vmem:[%s9514_s3 + $0xb0] sm:$0xf] }
 0x44e   : > { %v5672_v55 = vor.u32 %v6423_v24, %v5671_v3 }
 0x450   : > { %5612 = vmatmul.msk.bf16.gmra.mxu3 %vm2828_vm6, %v5578_v43 }
 0x451   : > { %3058 = vmatpush.bf16.msra.mxu3 %v2757_v22  ;;  %v6418_v22 = vld [vmem:[%s9514_s3 + $0x94] sm:$0xf] }
 0x453   : > { %2883 = vmatmul.bf16.gmra.mxu2 %v5606_v30 }
 0x455   : > { %3059 = vmatpush.bf16.msra.mxu3 %v2756_v46  ;;  %v5660_v46 = vor.u32 %v6418_v22, %v5657_v44 }
 0x460   : > { %5613 = vmatmul.msk.bf16.gmra.mxu3 %vm2828_vm6, %v5586_v39  ;;  %v5673_v39 = vld [vmem:[%s9514_s3 + $0xb8] sm:$0xf0] }
 0x461   : > { %v5676_v45 = vor.u32 %v6422_v60, %v5673_v39 }
 0x463   : > { %3021 = vmatmul.bf16.vlgmr.msra.gmra.mxu2 %v5632_v61 }
 0x470   : > { %5614 = vmatmul.msk.bf16.gmra.mxu3 %vm2828_vm6, %v5594_v28  ;;  %v3157_v28 = vld [vmem:[%s9516_s5 + $0x70] sm:$0xff] }
 0x471   : > { %v3473_v2 = vunpack.c.l.b16 %v3157_v28  ;;  %v3474_v35 = vunpack.c.h.b16 %v3157_v28  ;;  %v6427_v28 = vld [vmem:[%s9516_s5 + $0x14] sm:$0xf0] }
 0x473   : > { %3026 = vmatmul.bf16.gmra.mxu2 %v5640_v8  ;;  %v3489_v17 = vpack.c.b16 %v3473_v2, %v3473_v2  ;;  %v3490_v40 = vpack.c.b16 %v3474_v35, %v3474_v35  ;;  %v5816_v8 = vld [vmem:[%s9516_s5 + $0x60] sm:$0xf]  ;;  %v6426_v2 = vld [vmem:[%s9516_s5 + $0x14] sm:$0xf] }
 0x475   : > { %v3518_v27 = vsel %vm3345_vm7, %v3489_v17, 0  ;;  %v3521_v5 = vsel %vm3345_vm7, %v3490_v40, 0  ;;  %v5778_v17 = vld [vmem:[%s9516_s5 + $0x18] sm:$0xf0]  ;;  %v5748_v40 = vld [vmem:[%s9516_s5 + $0xd8] sm:$0xf] }
 0x476   : > { %3523 = vmatpush.bf16.msra.mxu0 %v3518_v27  ;;  %3562 = vmatpush.bf16.msra.mxu1 %v3521_v5  ;;  %v6451_v27 = vld [vmem:[%s9516_s5 + $0xdc] sm:$0xf0] }
 0x47a   : > { %3563 = vmatpush.bf16.msra.mxu1 %v5821_v50 }
 0x480   : > { %5615 = vmatmul.msk.bf16.gmra.mxu3 %vm2828_vm6, %v5602_v59 }
 0x483   : > { %3031 = vmatmul.bf16.gmra.mxu2 %v5648_v6  ;;  %v5808_v6 = vld [vmem:[%s9516_s5 + $0x50] sm:$0xf] }
 0x486   : > { %v2859_v33 = vpop.f32.mrf.mxu2 }
 0x48e   : > { %v8317_v31 = vpop.f32.mrf.mxu2 }
 0x490   : > { %5616 = vmatmul.msk.bf16.gmra.mxu3 %vm2828_vm6, %v5610_v57  ;;  %v5817_v57 = vor.u32 %v6437_v7, %v5816_v8  ;;  %v5781_v8 = vor.u32 %v6426_v2, %v5778_v17  ;;  %v5749_v7 = vor.u32 %v6451_v27, %v5748_v40  ;;  %v8569_v2 = vld [vmem:[%s9515_s4] ss:$0 sm:$0xff]  ;;  %v5708_v17 = vld [vmem:[%s9516_s5 + $0x88] sm:$0xf]  ;;  %v6441_v40 = vld [vmem:[%s9516_s5 + $0x8c] sm:$0xf0] }
 0x491   : > { %v5709_v27 = vor.u32 %v6441_v40, %v5708_v17 }
 0x492   : > { %3524 = vmatpush.bf16.msra.mxu0 %v5817_v57  ;;  %v5750_v57 = vld [vmem:[%s9516_s5 + $0xe0] sm:$0xf0] }
 0x493   : > { %3036 = vmatmul.bf16.gmra.mxu2 %v5656_v34  ;;  %v5753_v50 = vor.u32 %v6450_v54, %v5750_v57  ;;  %v6439_v54 = vld [vmem:[%s9516_s5 + $0x7c] sm:$0xf0] }
 0x496   : > { %v2864_v32 = vpop.f32.mrf.mxu2 }
 0x49e   : > { %v8332_v16 = vpop.f32.mrf.mxu2 }
 0x4a0   : > { %5677 = vmatmul.msk.bf16.vlgmr.msra.gmra.mxu3 %vm2828_vm6, %v5636_v62  ;;  %v5809_v62 = vor.u32 %v6435_v0, %v5808_v6  ;;  %v5768_v6 = vld [vmem:[%s9516_s5] sm:$0xf]  ;;  %v6425_v0 = vld [vmem:[%s9516_s5 + $0x4] sm:$0xf0] }
 0x4a2   : > { %3525 = vmatpush.bf16.msra.mxu0 %v5809_v62  ;;  %v5769_v62 = vor.u32 %v6425_v0, %v5768_v6  ;;  %v6438_v0 = vld [vmem:[%s9516_s5 + $0x7c] sm:$0xf] }
 0x4a3   : > { %3041 = vmatmul.bf16.gmra.mxu2 %v5664_v48 }
 0x4a6   : > { %v2869_v25 = vpop.f32.mrf.mxu2 }
 0x4ae   : > { %v8355_v11 = vpop.f32.mrf.mxu2 }
 0x4b0   : > { %5678 = vmatmul.msk.bf16.gmra.mxu3 %vm2828_vm6, %v5644_v18  ;;  %v6433_v18 = vld [vmem:[%s9516_s5 + $0x44] sm:$0xf0] }
 0x4b1   : > { %v5801_v9 = vor.u32 %v6433_v18, %v5800_v20 }
 0x4b3   : > { %3046 = vmatmul.bf16.gmra.mxu2 %v5672_v55  ;;  %3526 = vmatpush.bf16.msra.mxu0 %v5801_v9  ;;  %v5697_v55 = vld [vmem:[%s9516_s5 + $0xe8] sm:$0xff]  ;;  %v5742_v9 = vld [vmem:[%s9516_s5 + $0xd0] sm:$0xf0] }
 0x4b4   : > { %v3294_v22 = vunpack.c.l.b16 %v5697_v55  ;;  %v3295_v44 = vunpack.c.h.b16 %v5697_v55  ;;  %v5724_v55 = vld [vmem:[%s9516_s5 + $0xa8] sm:$0xf] }
 0x4b6   : > { %v2874_v1 = vpop.f32.mrf.mxu2 }
 0x4be   : > { %v8376_v43 = vpop.f32.mrf.mxu2 }
 0x4c0   : > { %5679 = vmatmul.msk.bf16.gmra.mxu3 %vm2828_vm6, %v5652_v51  ;;  %v6430_v51 = vld [vmem:[%s9516_s5 + $0x34] sm:$0xf] }
 0x4c3   : > { %v2898_v15 = vpop.f32.mrf.mxu3 }
 0x4c4   : > { %v8347_v56 = vadd.f32 %v2898_v15, %v2859_v33  ;;  %v5810_v33 = vld [vmem:[%s9516_s5 + $0x58] sm:$0xf0] }
 0x4c5   : > { %v5813_v34 = vor.u32 %v6434_v14, %v5810_v33  ;;  %v5794_v15 = vld [vmem:[%s9516_s5 + $0x38] sm:$0xf0]  ;;  %v6424_v14 = vld [vmem:[%s9516_s5 + $0x4] sm:$0xf]  ;;  %v5740_v33 = vld [vmem:[%s9516_s5 + $0xc8] sm:$0xf] }
 0x4c6   : > { %v2879_v21 = vpop.f32.mrf.mxu2  ;;  %v5797_v24 = vor.u32 %v6430_v51, %v5794_v15  ;;  %v5734_v15 = vld [vmem:[%s9516_s5 + $0xc0] sm:$0xf0] }
 0x4c7   : > { %3564 = vmatpush.bf16.msra.mxu1 %v5813_v34 }
 0x4cb   : > { %v8363_v19 = vpop.f32.mrf.mxu3 }
 0x4ce   : > { %v8389_v30 = vpop.f32.mrf.mxu2 }
 0x4d0   : > { %5680 = vmatmul.msk.bf16.gmra.mxu3 %vm2828_vm6, %v5660_v46 }
 0x4d3   : > { %v2903_v63 = vpop.f32.mrf.mxu3 }
 0x4d4   : > { %v8366_v53 = vadd.f32 %v2903_v63, %v2864_v32  ;;  %v6432_v32 = vld [vmem:[%s9516_s5 + $0x44] sm:$0xf]  ;;  %v6429_v63 = vld [vmem:[%s9516_s5 + $0x24] sm:$0xf0] }
 0x4d5   : > { %v5805_v48 = vor.u32 %v6432_v32, %v5802_v10  ;;  %v6448_v32 = vld [vmem:[%s9516_s5 + $0xcc] sm:$0xf] }
 0x4d6   : > { %v8397_v61 = vpop.f32.mrf.mxu2  ;;  %v5745_v10 = vor.u32 %v6448_v32, %v5742_v9 }
 0x4d7   : > { %3565 = vmatpush.bf16.msra.mxu1 %v5805_v48  ;;  %v5732_v48 = vld [vmem:[%s9516_s5 + $0xb8] sm:$0xf] }
 0x4db   : > { %v8374_v23 = vpop.f32.mrf.mxu3  ;;  %3566 = vmatpush.bf16.msra.mxu1 %v5797_v24 }
 0x4de   : > { %v8427_v29 = vpop.f32.mrf.mxu2 }
 0x4e0   : > { %5681 = vmatmul.msk.bf16.gmra.mxu3 %vm2828_vm6, %v5668_v13  ;;  %v5786_v13 = vld [vmem:[%s9516_s5 + $0x28] sm:$0xf0] }
 0x4e1   : > { %v5789_v60 = vor.u32 %v6428_v37, %v5786_v13  ;;  %v5716_v13 = vld [vmem:[%s9516_s5 + $0x98] sm:$0xf] }
 0x4e3   : > { %v2908_v12 = vpop.f32.mrf.mxu3  ;;  %3567 = vmatpush.bf16.msra.mxu1 %v5789_v60 }
 0x4e4   : > { %v8379_v49 = vadd.f32 %v2908_v12, %v2869_v25  ;;  %v5793_v25 = vor.u32 %v6431_v42, %v5792_v58  ;;  %v3310_v12 = vpack.c.b16 %v3294_v22, %v3294_v22  ;;  %v6447_v58 = vld [vmem:[%s9516_s5 + $0xbc] sm:$0xf0]  ;;  %v6445_v22 = vld [vmem:[%s9516_s5 + $0xac] sm:$0xf0] }
 0x4e5   : > { %v5733_v51 = vor.u32 %v6447_v58, %v5732_v48 }
 0x4e6   : > { %3527 = vmatpush.bf16.msra.mxu0 %v5793_v25  ;;  %v8460_v46 = vpop.f32.mrf.mxu2  ;;  %v3347_v39 = vsel %vm3345_vm7, %v3310_v12, 0  ;;  %v6446_v25 = vld [vmem:[%s9516_s5 + $0xbc] sm:$0xf]  ;;  %v6443_v12 = vld [vmem:[%s9516_s5 + $0x9c] sm:$0xf0] }
 0x4e7   : > { %3352 = vmatpush.bf16.msrb.mxu2 %v3347_v39  ;;  %3568 = vmatpush.bf16.msra.mxu1 %v5781_v8  ;;  %v5737_v24 = vor.u32 %v6446_v25, %v5734_v15  ;;  %v5717_v39 = vor.u32 %v6443_v12, %v5716_v13 }
 0x4eb   : > { %v8387_v36 = vpop.f32.mrf.mxu3  ;;  %3353 = vmatpush.bf16.msrb.mxu2 %v5749_v7  ;;  %v5700_v7 = vld [vmem:[%s9516_s5 + $0x78] sm:$0xf] }
 0x4ec   : > { %v5701_v6 = vor.u32 %v6439_v54, %v5700_v7 }
 0x4ee   : > { %v3024_v34 = vpop.f32.mrf.mxu2 }
 0x4f0   : > { %5682 = vmatmul.msk.bf16.gmra.mxu3 %vm2828_vm6, %v5676_v45 }
 0x4f3   : > { %v2913_v26 = vpop.f32.mrf.mxu3 }
 0x4f4   : > { %v8392_v41 = vadd.f32 %v2913_v26, %v2874_v1  ;;  %v5784_v1 = vld [vmem:[%s9516_s5 + $0x20] sm:$0xf]  ;;  %v5776_v26 = vld [vmem:[%s9516_s5 + $0x10] sm:$0xf] }
 0x4f5   : > { %v5785_v47 = vor.u32 %v6429_v63, %v5784_v1  ;;  %v5777_v35 = vor.u32 %v6427_v28, %v5776_v26  ;;  %v5725_v1 = vor.u32 %v6445_v22, %v5724_v55  ;;  %v5726_v63 = vld [vmem:[%s9516_s5 + $0xb0] sm:$0xf0] }
 0x4f7   : > { %3528 = vmatpush.bf16.msra.mxu0 %v5785_v47  ;;  %v3027_v47 = vpop.f32.mrf.mxu2 }
 0x4fb   : > { %v8399_v59 = vpop.f32.mrf.mxu3  ;;  %3529 = vmatpush.bf16.msra.mxu0 %v5777_v35 }
 0x4ff   : > { %3530 = vmatpush.bf16.msra.mxu0 %v5769_v62  ;;  %v2901_v62 = vadd.f32 %v8363_v19, %v8317_v31 }
 0x503   : > { %v2918_v38 = vpop.f32.mrf.mxu3 }
 0x504   : > { %v8429_v52 = vadd.f32 %v2918_v38, %v2879_v21  ;;  %v3311_v21 = vpack.c.b16 %v3295_v44, %v3295_v44  ;;  %v6449_v38 = vld [vmem:[%s9516_s5 + $0xcc] sm:$0xf0]  ;;  %v6444_v44 = vld [vmem:[%s9516_s5 + $0xac] sm:$0xf] }
 0x505   : > { %v5741_v18 = vor.u32 %v6449_v38, %v5740_v33  ;;  %v5729_v37 = vor.u32 %v6444_v44, %v5726_v63  ;;  %v2906_v44 = vadd.f32 %v8374_v23, %v8332_v16 }
 0x506   : > { %v3350_v45 = vsel %vm3345_vm7, %v3311_v21, 0  ;;  %v6442_v21 = vld [vmem:[%s9516_s5 + $0x9c] sm:$0xf] }
 0x507   : > { %3391 = vmatpush.bf16.msrb.mxu3 %v3350_v45  ;;  %3354 = vmatpush.bf16.msrb.mxu2 %v5741_v18  ;;  %v5718_v45 = vld [vmem:[%s9516_s5 + $0xa0] sm:$0xf0] }
 0x508   : > { %v5721_v28 = vor.u32 %v6442_v21, %v5718_v45 }
 0x50b   : > { %v8455_v3 = vpop.f32.mrf.mxu3  ;;  %3392 = vmatpush.bf16.msrb.mxu3 %v5753_v50  ;;  %3355 = vmatpush.bf16.msrb.mxu2 %v5733_v51  ;;  %v3029_v50 = vpop.f32.mrf.mxu2 }
 0x50f   : > { %3393 = vmatpush.bf16.msrb.mxu3 %v5745_v10  ;;  %3356 = vmatpush.bf16.msrb.mxu2 %v5725_v1 }
 0x513   : > { %v2923_v5 = vpop.f32.mrf.mxu3  ;;  %3394 = vmatpush.bf16.msrb.mxu3 %v5737_v24  ;;  %3357 = vmatpush.bf16.msrb.mxu2 %v5717_v39  ;;  %v3032_v51 = vpop.f32.mrf.mxu2 }
 0x514   : > { %v8501_v4 = vadd.f32 %v2923_v5, %v8397_v61  ;;  %v5770_v61 = vld [vmem:[%s9516_s5 + $0x8] sm:$0xf0]  ;;  %v5710_v5 = vld [vmem:[%s9516_s5 + $0x90] sm:$0xf0] }
 0x515   : > { %v5773_v20 = vor.u32 %v6424_v14, %v5770_v61  ;;  %v5702_v14 = vld [vmem:[%s9516_s5 + $0x80] sm:$0xf0] }
 0x516   : > { %v5705_v33 = vor.u32 %v6438_v0, %v5702_v14 }
 0x517   : > { %3569 = vmatpush.bf16.msra.mxu1 %v5773_v20  ;;  %3395 = vmatpush.bf16.msrb.mxu3 %v5729_v37 }
 0x518   : > { %3358 = vmatpush.bf16.msrb.mxu2 %v5709_v27 }
 0x51b   : > { %v8533_v42 = vpop.f32.mrf.mxu3  ;;  %3396 = vmatpush.bf16.msrb.mxu3 %v5721_v28 }
 0x51c   : > { %3359 = vmatpush.bf16.msrb.mxu2 %v5701_v6 }
 0x523   : > { %v3061_v60 = vpop.f32.mrf.mxu3 }
 0x524   : > { %v3062_v26 = vadd.f32 %v3061_v60, %v8460_v46  ;;  %v6440_v46 = vld [vmem:[%s9516_s5 + $0x8c] sm:$0xf] }
 0x525   : > { %v5713_v8 = vor.u32 %v6440_v46, %v5710_v5 }
 0x526   : > { %v3091_v35 = vmax.f32 %v8347_v56, %v3062_v26 }
 0x527   : > { %3397 = vmatpush.bf16.msrb.mxu3 %v5713_v8 }
 0x528   : > { %v3107_v56 = vadd.f32 %v8569_v2, %v3091_v35 }
 0x52a   : > { %v3119_v38 = vmax.f32 %v3107_v56, 0.0 }
 0x52b   : > { %v3063_v57 = vpop.f32.mrf.mxu3  ;;  %3398 = vmatpush.bf16.msrb.mxu3 %v5705_v33 }
 0x52c   : > { %v3064_v61 = vadd.f32 %v3063_v57, %v3024_v34  ;;  %v3131_v32 = vpack.c.bf16 %v3119_v38, %v3119_v38 }
 0x52e   : > { %v3092_v20 = vmax.f32 %v2901_v62, %v3064_v61  ;;  %v3186_v25 = vunpack.c.l.b16 %v3131_v32 }
 0x530   : > { %v3108_v18 = vadd.f32 %v8569_v2, %v3092_v20 }
 0x532   : > { %v3120_v9 = vmax.f32 %v3108_v18, 0.0 }
 0x533   : > { %v3066_v10 = vpop.f32.mrf.mxu3 }
 0x534   : > { %v3132_v48 = vpack.c.bf16 %v3120_v9, %v3120_v9  ;;  %v3067_v58 = vadd.f32 %v3066_v10, %v3027_v47 }
 0x536   : > { %v3187_v15 = vunpack.c.l.b16 %v3132_v48  ;;  %v3093_v24 = vmax.f32 %v8366_v53, %v3067_v58  ;;  %v3034_v53 = vpop.f32.mrf.mxu2 }
 0x538   : > { %v3198_v31 = vpack.c.b16 %v3187_v15, %v3186_v25  ;;  %v3109_v19 = vadd.f32 %v8569_v2, %v3093_v24 }
 0x53a   : > { %5822 = vmatmul.msk.bf16.vlgmr.msra.gmra.mxu0 %vm3326_vm8, %v3198_v31  ;;  %5828 = vmatmul.msk.bf16.vlgmr.msra.gmra.mxu1 %vm3326_vm8, %v3198_v31  ;;  %v3205_v34 = vshrl.u32 %v3198_v31, 16  ;;  %v3207_v55 = vshll.u32 %v3198_v31, 16  ;;  %v3121_v47 = vmax.f32 %v3109_v19, 0.0  ;;  %v3617_v54 = vrot.slane %v3198_v31, 1 }
 0x53b   : > { %v3068_v22 = vpop.f32.mrf.mxu3  ;;  %v4085_v57 = vrot.slane %v3198_v31, 2 }
 0x53c   : > { %v3069_v1 = vadd.f32 %v3068_v22, %v3029_v50  ;;  %v3845_v63 = vrot.slane %v3205_v34, 1  ;;  %v3846_v37 = vrot.slane %v3207_v55, 2  ;;  %v3133_v60 = vpack.c.bf16 %v3121_v47, %v3121_v47 }
 0x53d   : > { %v3209_v16 = vrot.slane %v3207_v55, 1 }
 0x53e   : > { %v3094_v13 = vmax.f32 %v2906_v44, %v3069_v1  ;;  %v3847_v12 = vor.u32 %v3846_v37, %v3845_v63  ;;  %v3188_v35 = vunpack.c.l.b16 %v3133_v60  ;;  %v3037_v23 = vpop.f32.mrf.mxu2 }
 0x53f   : > { %v3210_v0 = vor.u32 %v3209_v16, %v3205_v34  ;;  %v5931_v34 = vld [vmem:[%s9516_s5 + $0x1d8] sm:$0xff] }
 0x540   : > { %v3110_v21 = vadd.f32 %v8569_v2, %v3094_v13  ;;  %v3911_v55 = vunpack.c.l.b16 %v5931_v34  ;;  %v3912_v22 = vunpack.c.h.b16 %v5931_v34 }
 0x542   : > { %v3122_v39 = vmax.f32 %v3110_v21, 0.0  ;;  %v3927_v1 = vpack.c.b16 %v3911_v55, %v3911_v55  ;;  %v3928_v63 = vpack.c.b16 %v3912_v22, %v3912_v22 }
 0x543   : > { %v3071_v45 = vpop.f32.mrf.mxu3 }
 0x544   : > { %v3134_v26 = vpack.c.bf16 %v3122_v39, %v3122_v39  ;;  %v3072_v28 = vadd.f32 %v3071_v45, %v3032_v51  ;;  %v3962_v21 = vsel %vm3345_vm7, %v3927_v1, 0  ;;  %v3965_v60 = vsel %vm3345_vm7, %v3928_v63, 0  ;;  %v5958_v1 = vld [vmem:[%s9516_s5 + $0x198] sm:$0xf]  ;;  %v6473_v63 = vld [vmem:[%s9516_s5 + $0x19c] sm:$0xf0] }
 0x545   : > { %3967 = vmatpush.bf16.msrb.mxu0 %v3962_v21  ;;  %4006 = vmatpush.bf16.msrb.mxu1 %v3965_v60  ;;  %v5960_v21 = vld [vmem:[%s9516_s5 + $0x1a0] sm:$0xf0] }
 0x546   : > { %v3189_v17 = vunpack.c.l.b16 %v3134_v26  ;;  %v3095_v40 = vmax.f32 %v8379_v49, %v3072_v28  ;;  %v2911_v49 = vadd.f32 %v8387_v36, %v8355_v11  ;;  %v3039_v51 = vpop.f32.mrf.mxu2 }
 0x548   : > { %v8608_v46 = vpack.c.b16 %v3189_v17, %v3188_v35  ;;  %v3111_v27 = vadd.f32 %v8569_v2, %v3095_v40  ;;  %v6478_v40 = vld [vmem:[%s9516_s5 + $0x1cc] sm:$0xf] }
 0x54a   : > { %5823 = vmatmul.msk.bf16.gmra.mxu0 %vm3326_vm8, %v8608_v46  ;;  %5829 = vmatmul.msk.bf16.gmra.mxu1 %vm3326_vm8, %v8608_v46  ;;  %v3212_v5 = vshll.u32 %v8608_v46, 16  ;;  %v3216_v8 = vshrl.u32 %v8608_v46, 16  ;;  %v3618_v56 = vrot.slane %v8608_v46, 1  ;;  %v4086_v50 = vrot.slane %v8608_v46, 2 }
 0x54b   : > { %v3073_v7 = vpop.f32.mrf.mxu3  ;;  %v3123_v20 = vmax.f32 %v3111_v27, 0.0 }
 0x54c   : > { %v3074_v6 = vadd.f32 %v3073_v7, %v3034_v53  ;;  %v3214_v14 = vrot.slane %v3212_v5, 1  ;;  %v3848_v62 = vrot.slane %v3216_v8, 1  ;;  %v3849_v61 = vrot.slane %v3212_v5, 2 }
 0x54d   : > { %v8622_v33 = vsel %vm1130_vm4, %v3617_v54, %v3618_v56  ;;  %v8625_v38 = vsel %vm750_vm0, %v4085_v57, %v4086_v50  ;;  %v3135_v10 = vpack.c.bf16 %v3123_v20, %v3123_v20  ;;  %v2916_v53 = vadd.f32 %v8399_v59, %v8376_v43  ;;  %v5982_v43 = vld [vmem:[%s9516_s5 + $0x1c8] sm:$0xf]  ;;  %v6479_v59 = vld [vmem:[%s9516_s5 + $0x1cc] sm:$0xf0]  ;;  %v5974_v57 = vld [vmem:[%s9516_s5 + $0x1b8] sm:$0xf] }
 0x54e   : > { %v3096_v18 = vmax.f32 %v2911_v49, %v3074_v6  ;;  %v3215_v11 = vsel %vm577_vm2, %v3210_v0, %v3214_v14  ;;  %v8630_v36 = vor.u32 %v3849_v61, %v3848_v62  ;;  %v3218_v26 = vor.u32 %v3216_v8, %v3214_v14  ;;  %v3042_v17 = vpop.f32.mrf.mxu2  ;;  %v5984_v8 = vld [vmem:[%s9516_s5 + $0x1d0] sm:$0xf0]  ;;  %v6476_v6 = vld [vmem:[%s9516_s5 + $0x1bc] sm:$0xf]  ;;  %v5976_v20 = vld [vmem:[%s9516_s5 + $0x1c0] sm:$0xf0] }
 0x54f   : > { %5754 = vmatmul.msk.bf16.vlgmr.msrb.gmra.mxu2 %vm3326_vm8, %v3215_v11  ;;  %5760 = vmatmul.msk.bf16.vlgmr.msrb.gmra.mxu3 %vm3326_vm8, %v3215_v11  ;;  %v3190_v24 = vunpack.c.l.b16 %v3135_v10  ;;  %v5983_v49 = vor.u32 %v6479_v59, %v5982_v43  ;;  %v5979_v11 = vor.u32 %v6476_v6, %v5976_v20  ;;  %v6468_v6 = vld [vmem:[%s9516_s5 + $0x17c] sm:$0xf]  ;;  %v5899_v20 = vld [vmem:[%s9516_s5 + $0x150] sm:$0xf] }
 0x550   : > { %v3112_v32 = vadd.f32 %v8569_v2, %v3096_v18  ;;  %v8635_v9 = vsel %vm1443_vm3, %v3847_v12, %v8630_v36 }
 0x551   : > { %3968 = vmatpush.bf16.msrb.mxu0 %v5983_v49 }
 0x552   : > { %v3124_v48 = vmax.f32 %v3112_v32, 0.0 }
 0x553   : > { %v3076_v58 = vpop.f32.mrf.mxu3 }
 0x554   : > { %v3136_v25 = vpack.c.bf16 %v3124_v48, %v3124_v48  ;;  %v3077_v15 = vadd.f32 %v3076_v58, %v3037_v23  ;;  %v5966_v58 = vld [vmem:[%s9516_s5 + $0x1a8] sm:$0xf] }
 0x556   : > { %v3191_v31 = vunpack.c.l.b16 %v3136_v25  ;;  %v3097_v19 = vmax.f32 %v8392_v41, %v3077_v15  ;;  %v6474_v25 = vld [vmem:[%s9516_s5 + $0x1ac] sm:$0xf]  ;;  %v3044_v34 = vpop.f32.mrf.mxu2 }
 0x558   : > { %v8641_v44 = vpack.c.b16 %v3191_v31, %v3190_v24  ;;  %v3113_v37 = vadd.f32 %v8569_v2, %v3097_v19  ;;  %v5968_v19 = vld [vmem:[%s9516_s5 + $0x1b0] sm:$0xf0] }
 0x559   : > { %v5971_v55 = vor.u32 %v6474_v25, %v5968_v19  ;;  %v5901_v25 = vld [vmem:[%s9516_s5 + $0x158] sm:$0xf0] }
 0x55a   : > { %5824 = vmatmul.msk.bf16.gmra.mxu0 %vm3326_vm8, %v8641_v44  ;;  %5830 = vmatmul.msk.bf16.gmra.mxu1 %vm3326_vm8, %v8641_v44  ;;  %v3220_v41 = vshll.u32 %v8641_v44, 16  ;;  %v3224_v47 = vshrl.u32 %v8641_v44, 16  ;;  %v3620_v13 = vrot.slane %v8641_v44, 1  ;;  %v4088_v39 = vrot.slane %v8641_v44, 2  ;;  %v5942_v44 = vld [vmem:[%s9516_s5 + $0x178] sm:$0xf] }
 0x55b   : > { %v3078_v12 = vpop.f32.mrf.mxu3  ;;  %v3125_v23 = vmax.f32 %v3113_v37, 0.0  ;;  %v2921_v37 = vadd.f32 %v8455_v3, %v8389_v30  ;;  %v5848_v3 = vld [vmem:[%s9516_s5 + $0x160] sm:$0xff] }
 0x55c   : > { %v3079_v45 = vadd.f32 %v3078_v12, %v3039_v51  ;;  %v3222_v28 = vrot.slane %v3220_v41, 1  ;;  %v3852_v35 = vrot.slane %v3224_v47, 1  ;;  %v8670_v46 = vsel %vm1130_vm4, %v3618_v56, %v3620_v13  ;;  %v6475_v51 = vld [vmem:[%s9516_s5 + $0x1ac] sm:$0xf0] }
 0x55d   : > { %v8675_v16 = vsel %vm750_vm0, %v4086_v50, %v4088_v39  ;;  %v5987_v56 = vor.u32 %v6478_v40, %v5984_v8  ;;  %v3853_v7 = vrot.slane %v3220_v41, 2  ;;  %v6477_v50 = vld [vmem:[%s9516_s5 + $0x1bc] sm:$0xf0]  ;;  %v3137_v14 = vpack.c.bf16 %v3125_v23, %v3125_v23  ;;  %v6470_v23 = vld [vmem:[%s9516_s5 + $0x18c] sm:$0xf] }
 0x55e   : > { %v3098_v27 = vmax.f32 %v2916_v53, %v3079_v45  ;;  %v3223_v5 = vsel %vm577_vm2, %v3218_v26, %v3222_v28  ;;  %v5975_v61 = vor.u32 %v6477_v50, %v5974_v57  ;;  %v5967_v31 = vor.u32 %v6475_v51, %v5966_v58  ;;  %v6464_v51 = vld [vmem:[%s9516_s5 + $0x154] sm:$0xf] }
 0x55f   : > { %5755 = vmatmul.msk.bf16.gmra.mxu2 %vm3326_vm8, %v3223_v5  ;;  %5761 = vmatmul.msk.bf16.gmra.mxu3 %vm3326_vm8, %v3223_v5  ;;  %v8693_v0 = vor.u32 %v3853_v7, %v3852_v35  ;;  %v3192_v15 = vunpack.c.l.b16 %v3137_v14  ;;  %v5959_v12 = vor.u32 %v6473_v63, %v5958_v1  ;;  %v3226_v45 = vor.u32 %v3224_v47, %v3222_v28  ;;  %v5950_v47 = vld [vmem:[%s9516_s5 + $0x188] sm:$0xf]  ;;  %v6471_v28 = vld [vmem:[%s9516_s5 + $0x18c] sm:$0xf0] }
 0x560   : > { %v3114_v54 = vadd.f32 %v8569_v2, %v3098_v27  ;;  %4007 = vmatpush.bf16.msrb.mxu1 %v5987_v56  ;;  %3969 = vmatpush.bf16.msrb.mxu0 %v5975_v61  ;;  %v3671_v40 = vunpack.c.l.b16 %v5848_v3  ;;  %v3672_v27 = vunpack.c.h.b16 %v5848_v3  ;;  %v5944_v61 = vld [vmem:[%s9516_s5 + $0x180] sm:$0xf0]  ;;  %v5904_v63 = vor.u32 %v6464_v51, %v5901_v25  ;;  %v5875_v51 = vld [vmem:[%s9516_s5 + $0x120] sm:$0xf]  ;;  %v6459_v25 = vld [vmem:[%s9516_s5 + $0x124] sm:$0xf0] }
 0x561   : > { %v8701_v32 = vsel %vm1443_vm3, %v8630_v36, %v8693_v0  ;;  %v5947_v58 = vor.u32 %v6468_v6, %v5944_v61 }
 0x562   : > { %v3126_v62 = vmax.f32 %v3114_v54, 0.0  ;;  %v5952_v54 = vld [vmem:[%s9516_s5 + $0x190] sm:$0xf0]  ;;  %v3687_v50 = vpack.c.b16 %v3671_v40, %v3671_v40 }
 0x563   : > { %v3081_v18 = vpop.f32.mrf.mxu3  ;;  %v5955_v57 = vor.u32 %v6470_v23, %v5952_v54 }
 0x564   : > { %v3138_v10 = vpack.c.bf16 %v3126_v62, %v3126_v62  ;;  %v3082_v48 = vadd.f32 %v3081_v18, %v3042_v17  ;;  %4008 = vmatpush.bf16.msrb.mxu1 %v5979_v11  ;;  %3970 = vmatpush.bf16.msrb.mxu0 %v5967_v31  ;;  %v3688_v62 = vpack.c.b16 %v3672_v27, %v3672_v27  ;;  %v6465_v18 = vld [vmem:[%s9516_s5 + $0x154] sm:$0xf0]  ;;  %v3047_v11 = vpop.f32.mrf.mxu2 }
 0x565   : > { %v5900_v19 = vor.u32 %v6465_v18, %v5899_v20 }
 0x566   : > { %v3193_v24 = vunpack.c.l.b16 %v3138_v10  ;;  %v3099_v36 = vmax.f32 %v8429_v52, %v3082_v48  ;;  %v6472_v52 = vld [vmem:[%s9516_s5 + $0x19c] sm:$0xf]  ;;  %v3722_v10 = vsel %vm3345_vm7, %v3687_v50, 0  ;;  %v3725_v31 = vsel %vm3345_vm7, %v3688_v62, 0  ;;  %v6460_v62 = vld [vmem:[%s9516_s5 + $0x134] sm:$0xf] }
 0x567   : > { %v5963_v30 = vor.u32 %v6472_v52, %v5960_v21  ;;  %3727 = vmatpush.bf16.msra.mxu2 %v3722_v10  ;;  %3766 = vmatpush.bf16.msra.mxu3 %v3725_v31  ;;  %v6466_v52 = vld [vmem:[%s9516_s5 + $0x16c] sm:$0xf]  ;;  %v5876_v31 = vor.u32 %v6459_v25, %v5875_v51 }
 0x568   : > { %v8716_v22 = vpack.c.b16 %v3193_v24, %v3192_v15  ;;  %4009 = vmatpush.bf16.msrb.mxu1 %v5971_v55  ;;  %v3115_v41 = vadd.f32 %v8569_v2, %v3099_v36  ;;  %3971 = vmatpush.bf16.msrb.mxu0 %v5959_v12  ;;  %v6467_v55 = vld [vmem:[%s9516_s5 + $0x16c] sm:$0xf0] }
 0x56a   : > { %5825 = vmatmul.msk.bf16.gmra.mxu0 %vm3326_vm8, %v8716_v22  ;;  %5831 = vmatmul.msk.bf16.gmra.mxu1 %vm3326_vm8, %v8716_v22  ;;  %v3228_v53 = vshll.u32 %v8716_v22, 16  ;;  %v3622_v26 = vrot.slane %v8716_v22, 1  ;;  %v4090_v35 = vrot.slane %v8716_v22, 2  ;;  %v3232_v59 = vshrl.u32 %v8716_v22, 16 }
 0x56b   : > { %v3083_v60 = vpop.f32.mrf.mxu3  ;;  %v3127_v49 = vmax.f32 %v3115_v41, 0.0  ;;  %v5891_v41 = vld [vmem:[%s9516_s5 + $0x140] sm:$0xf]  ;;  %3728 = vmatpush.bf16.msra.mxu2 %v5900_v19  ;;  %3767 = vmatpush.bf16.msra.mxu3 %v5904_v63 }
 0x56c   : > { %v3084_v17 = vadd.f32 %v3083_v60, %v3044_v34  ;;  %v8747_v43 = vrot.slane %v3228_v53, 1  ;;  %4010 = vmatpush.bf16.msrb.mxu1 %v5963_v30  ;;  %v8764_v5 = vsel %vm1130_vm4, %v3620_v13, %v3622_v26  ;;  %v8771_v8 = vsel %vm750_vm0, %v4088_v39, %v4090_v35  ;;  %v6469_v39 = vld [vmem:[%s9516_s5 + $0x17c] sm:$0xf0]  ;;  %v5934_v34 = vld [vmem:[%s9516_s5 + $0x168] sm:$0xf] }
 0x56d   : > { %v5951_v13 = vor.u32 %v6471_v28, %v5950_v47  ;;  %v5943_v48 = vor.u32 %v6469_v39, %v5942_v44  ;;  %v3856_v15 = vrot.slane %v3232_v59, 1  ;;  %v3139_v24 = vpack.c.bf16 %v3127_v49, %v3127_v49  ;;  %v6463_v60 = vld [vmem:[%s9516_s5 + $0x144] sm:$0xf0]  ;;  %v5893_v30 = vld [vmem:[%s9516_s5 + $0x148] sm:$0xf0]  ;;  %v3049_v44 = vpop.f32.mrf.mxu2 }
 0x56e   : > { %v3100_v56 = vmax.f32 %v2921_v37, %v3084_v17  ;;  %v3231_v7 = vsel %vm577_vm2, %v3226_v45, %v8747_v43  ;;  %v5936_v37 = vld [vmem:[%s9516_s5 + $0x170] sm:$0xf0]  ;;  %v6462_v45 = vld [vmem:[%s9516_s5 + $0x144] sm:$0xf]  ;;  %v5935_v3 = vor.u32 %v6467_v55, %v5934_v34  ;;  %v3857_v40 = vrot.slane %v3228_v53, 2 }
 0x56f   : > { %5756 = vmatmul.msk.bf16.gmra.mxu2 %vm3326_vm8, %v3231_v7  ;;  %5762 = vmatmul.msk.bf16.gmra.mxu3 %vm3326_vm8, %v3231_v7  ;;  %v5939_v17 = vor.u32 %v6466_v52, %v5936_v37  ;;  %v3194_v47 = vunpack.c.l.b16 %v3139_v24  ;;  %v5892_v27 = vor.u32 %v6463_v60, %v5891_v41  ;;  %v5896_v49 = vor.u32 %v6462_v45, %v5893_v30  ;;  %v5867_v34 = vld [vmem:[%s9516_s5 + $0x110] sm:$0xf]  ;;  %v6457_v55 = vld [vmem:[%s9516_s5 + $0x114] sm:$0xf0]  ;;  %v5859_v45 = vld [vmem:[%s9516_s5 + $0x100] sm:$0xf] }
 0x570   : > { %v3116_v14 = vadd.f32 %v8569_v2, %v3100_v56  ;;  %3972 = vmatpush.bf16.msrb.mxu0 %v5951_v13  ;;  %4011 = vmatpush.bf16.msrb.mxu1 %v5955_v57  ;;  %v3858_v56 = vor.u32 %v3857_v40, %v3856_v15  ;;  %v5883_v57 = vld [vmem:[%s9516_s5 + $0x130] sm:$0xf]  ;;  %v3234_v6 = vor.u32 %v3232_v59, %v8747_v43  ;;  %v6458_v15 = vld [vmem:[%s9516_s5 + $0x124] sm:$0xf]  ;;  %v5861_v40 = vld [vmem:[%s9516_s5 + $0x108] sm:$0xf0] }
 0x571   : > { %3729 = vmatpush.bf16.msra.mxu2 %v5892_v27  ;;  %3768 = vmatpush.bf16.msra.mxu3 %v5896_v49 }
 0x572   : > { %v3128_v36 = vmax.f32 %v3116_v14, 0.0  ;;  %v8841_v13 = vsel %vm1443_vm3, %v8693_v0, %v3858_v56  ;;  %v2926_v0 = vadd.f32 %v8533_v42, %v8427_v29  ;;  %v6461_v14 = vld [vmem:[%s9516_s5 + $0x134] sm:$0xf0]  ;;  %v5885_v29 = vld [vmem:[%s9516_s5 + $0x138] sm:$0xf0] }
 0x573   : > { %v3086_v1 = vpop.f32.mrf.mxu3  ;;  %v5884_v18 = vor.u32 %v6461_v14, %v5883_v57 }
 0x574   : > { %v3140_v12 = vpack.c.bf16 %v3128_v36, %v3128_v36  ;;  %v3087_v21 = vadd.f32 %v3086_v1, %v3047_v11  ;;  %3973 = vmatpush.bf16.msrb.mxu0 %v5943_v48  ;;  %4012 = vmatpush.bf16.msrb.mxu1 %v5947_v58  ;;  %v5888_v11 = vor.u32 %v6460_v62, %v5885_v29  ;;  %v6456_v1 = vld [vmem:[%s9516_s5 + $0x114] sm:$0xf] }
 0x575   : > { %3730 = vmatpush.bf16.msra.mxu2 %v5884_v18 }
 0x576   : > { %v3195_v28 = vunpack.c.l.b16 %v3140_v12  ;;  %v3101_v23 = vmax.f32 %v8501_v4, %v3087_v21  ;;  %3769 = vmatpush.bf16.msra.mxu3 %v5888_v11  ;;  %v5868_v12 = vor.u32 %v6457_v55, %v5867_v34  ;;  %v6067_v55 = vld [vmem:[%s9516_s5 + $0x248] sm:$0xf0] }
 0x578   : > { %v8836_v7 = vpack.c.b16 %v3195_v28, %v3194_v47  ;;  %v3117_v54 = vadd.f32 %v8569_v2, %v3101_v23  ;;  %3974 = vmatpush.bf16.msrb.mxu0 %v5935_v3  ;;  %4013 = vmatpush.bf16.msrb.mxu1 %v5939_v17  ;;  %v6455_v3 = vld [vmem:[%s9516_s5 + $0x104] sm:$0xf0]  ;;  %v6454_v17 = vld [vmem:[%s9516_s5 + $0x104] sm:$0xf] }
 0x579   : > { %3731 = vmatpush.bf16.msra.mxu2 %v5876_v31  ;;  %v5860_v22 = vor.u32 %v6455_v3, %v5859_v45  ;;  %v6492_v31 = vld [vmem:[%s9516_s5 + $0x244] sm:$0xf] }
 0x57a   : > { %5826 = vmatmul.msk.bf16.gmra.mxu0 %vm3326_vm8, %v8836_v7  ;;  %5832 = vmatmul.msk.bf16.gmra.mxu1 %vm3326_vm8, %v8836_v7  ;;  %v3236_v4 = vshll.u32 %v8836_v7, 16  ;;  %v3240_v53 = vshrl.u32 %v8836_v7, 16  ;;  %v3624_v50 = vrot.slane %v8836_v7, 1  ;;  %v3129_v42 = vmax.f32 %v3117_v54, 0.0  ;;  %v6453_v54 = vld [vmem:[%s9516_s5 + $0xf4] sm:$0xf0] }
 0x57b   : > { %v3088_v39 = vpop.f32.mrf.mxu3  ;;  %v4092_v41 = vrot.slane %v8836_v7, 2 }
 0x57c   : > { %v3089_v61 = vadd.f32 %v3088_v39, %v3049_v44  ;;  %v3238_v20 = vrot.slane %v3236_v4, 1  ;;  %v3860_v43 = vrot.slane %v3240_v53, 1  ;;  %v3861_v59 = vrot.slane %v3236_v4, 2  ;;  %v5853_v44 = vld [vmem:[%s9516_s5 + $0xf8] sm:$0xf0] }
 0x57d   : > { %v8874_v10 = vsel %vm1130_vm4, %v3622_v26, %v3624_v50  ;;  %v5877_v26 = vld [vmem:[%s9516_s5 + $0x128] sm:$0xf0]  ;;  %v3141_v52 = vpack.c.bf16 %v3129_v42, %v3129_v42  ;;  %v8914_v30 = vsel %vm750_vm0, %v4090_v35, %v4092_v41  ;;  %3732 = vmatpush.bf16.msra.mxu2 %v5868_v12  ;;  %v5864_v35 = vor.u32 %v6454_v17, %v5861_v40  ;;  %v6049_v40 = vld [vmem:[%s9516_s5 + $0x220] sm:$0xf] }
 0x57e   : > { %v3102_v48 = vmax.f32 %v2926_v0, %v3089_v61  ;;  %v3239_v58 = vsel %vm577_vm2, %v3234_v6, %v3238_v20  ;;  %v3862_v24 = vor.u32 %v3861_v59, %v3860_v43  ;;  %v5880_v19 = vor.u32 %v6458_v15, %v5877_v26  ;;  %v6452_v0 = vld [vmem:[%s9516_s5 + $0xf4] sm:$0xf] }
 0x57f   : > { %5757 = vmatmul.msk.bf16.gmra.mxu2 %vm3326_vm8, %v3239_v58  ;;  %5763 = vmatmul.msk.bf16.gmra.mxu3 %vm3326_vm8, %v3239_v58  ;;  %v3196_v47 = vunpack.c.l.b16 %v3141_v52  ;;  %v3242_v4 = vor.u32 %v3240_v53, %v3238_v20  ;;  %v5856_v62 = vor.u32 %v6452_v0, %v5853_v44  ;;  %v6491_v52 = vld [vmem:[%s9516_s5 + $0x234] sm:$0xf0] }
 0x580   : > { %v3118_v36 = vadd.f32 %v8569_v2, %v3102_v48  ;;  %v5869_v2 = vld [vmem:[%s9516_s5 + $0x118] sm:$0xf0]  ;;  %v8905_v63 = vsel %vm1443_vm3, %v3858_v56, %v3862_v24  ;;  %3770 = vmatpush.bf16.msra.mxu3 %v5880_v19  ;;  %v5851_v56 = vld [vmem:[%s9516_s5 + $0xf0] sm:$0xf] }
 0x581   : > { %v5872_v60 = vor.u32 %v6456_v1, %v5869_v2  ;;  %v5852_v57 = vor.u32 %v6453_v54, %v5851_v56  ;;  %3733 = vmatpush.bf16.msra.mxu2 %v5860_v22  ;;  %v6070_v2 = vor.u32 %v6492_v31, %v6067_v55  ;;  %v6486_v56 = vld [vmem:[%s9516_s5 + $0x214] sm:$0xf]  ;;  %v6043_v54 = vld [vmem:[%s9516_s5 + $0x218] sm:$0xf0]  ;;  %v6019_v31 = vld [vmem:[%s9516_s5 + $0x1e8] sm:$0xf0] }
 0x582   : > { %v3130_v37 = vmax.f32 %v3118_v36, 0.0  ;;  %v6493_v36 = vld [vmem:[%s9516_s5 + $0x244] sm:$0xf0] }
 0x584   : > { %v3142_v21 = vpack.c.bf16 %v3130_v37, %v3130_v37  ;;  %3771 = vmatpush.bf16.msra.mxu3 %v5872_v60  ;;  %v6490_v37 = vld [vmem:[%s9516_s5 + $0x234] sm:$0xf] }
 0x585   : > { %3734 = vmatpush.bf16.msra.mxu2 %v5852_v57 }
 0x586   : > { %v3197_v28 = vunpack.c.l.b16 %v3142_v21 }
 0x588   : > { %v3203_v23 = vpack.c.b16 %v3197_v28, %v3196_v47  ;;  %3772 = vmatpush.bf16.msra.mxu3 %v5864_v35  ;;  %v6489_v47 = vld [vmem:[%s9516_s5 + $0x224] sm:$0xf0]  ;;  %v6488_v28 = vld [vmem:[%s9516_s5 + $0x224] sm:$0xf] }
 0x589   : > { %v6050_v22 = vor.u32 %v6489_v47, %v6049_v40 }
 0x58a   : > { %5827 = vmatmul.msk.bf16.gmra.mxu0 %vm3326_vm8, %v3203_v23  ;;  %5833 = vmatmul.msk.bf16.gmra.mxu1 %vm3326_vm8, %v3203_v23  ;;  %v3244_v27 = vshll.u32 %v3203_v23, 16  ;;  %v3248_v49 = vshrl.u32 %v3203_v23, 16  ;;  %v8941_v39 = vrot.slane %v3203_v23, 1  ;;  %v8943_v6 = vrot.slane %v3203_v23, 2  ;;  %v6051_v23 = vld [vmem:[%s9516_s5 + $0x228] sm:$0xf0] }
 0x58b   : > { %v6054_v35 = vor.u32 %v6488_v28, %v6051_v23 }
 0x58c   : > { %v3246_v14 = vrot.slane %v3244_v27, 1  ;;  %v3864_v29 = vrot.slane %v3248_v49, 1  ;;  %v3865_v42 = vrot.slane %v3244_v27, 2  ;;  %v8949_v53 = vsel %vm1130_vm4, %v3624_v50, %v8941_v39  ;;  %3773 = vmatpush.bf16.msra.mxu3 %v5856_v62  ;;  %v6041_v27 = vld [vmem:[%s9516_s5 + $0x210] sm:$0xf] }
 0x58d   : > { %v8953_v61 = vsel %vm750_vm0, %v4092_v41, %v8943_v6  ;;  %v6059_v41 = vld [vmem:[%s9516_s5 + $0x238] sm:$0xf0]  ;;  %v6033_v62 = vld [vmem:[%s9516_s5 + $0x200] sm:$0xf] }
 0x58e   : > { %v3247_v20 = vsel %vm577_vm2, %v3242_v4, %v3246_v14  ;;  %v8956_v18 = vor.u32 %v3865_v42, %v3864_v29  ;;  %v3250_v50 = vor.u32 %v3248_v49, %v3246_v14  ;;  %v6062_v21 = vor.u32 %v6490_v37, %v6059_v41  ;;  %v6487_v49 = vld [vmem:[%s9516_s5 + $0x214] sm:$0xf0]  ;;  %v6485_v29 = vld [vmem:[%s9516_s5 + $0x204] sm:$0xf0]  ;;  %v6484_v42 = vld [vmem:[%s9516_s5 + $0x204] sm:$0xf] }
 0x58f   : > { %5758 = vmatmul.msk.bf16.gmra.mxu2 %vm3326_vm8, %v3247_v20  ;;  %5764 = vmatmul.msk.bf16.gmra.mxu3 %vm3326_vm8, %v3247_v20  ;;  %v6042_v4 = vor.u32 %v6487_v49, %v6041_v27  ;;  %v6035_v20 = vld [vmem:[%s9516_s5 + $0x208] sm:$0xf0] }
 0x590   : > { %v3867_v7 = vsel %vm1443_vm3, %v3862_v24, %v8956_v18 }
 0x59a   : > { %5988 = vmatmul.msk.bf16.vlgmr.msrb.gmra.mxu0 %vm3326_vm8, %v8635_v9  ;;  %5994 = vmatmul.msk.bf16.vlgmr.msrb.gmra.mxu1 %vm3326_vm8, %v8635_v9 }
 0x59f   : > { %5759 = vmatmul.msk.bf16.gmra.mxu2 %vm3326_vm8, %v3250_v50  ;;  %5765 = vmatmul.msk.bf16.gmra.mxu3 %vm3326_vm8, %v3250_v50 }
 0x5aa   : > { %5989 = vmatmul.msk.bf16.gmra.mxu0 %vm3326_vm8, %v8701_v32  ;;  %5995 = vmatmul.msk.bf16.gmra.mxu1 %vm3326_vm8, %v8701_v32 }
 0x5af   : > { %5905 = vmatmul.msk.bf16.vlgmr.msra.gmra.mxu2 %vm3326_vm8, %v8622_v33  ;;  %5911 = vmatmul.msk.bf16.vlgmr.msra.gmra.mxu3 %vm3326_vm8, %v8622_v33  ;;  %v6014_v33 = vld [vmem:[%s9516_s5 + $0x250] sm:$0xff] }
 0x5b7   : > { %v3532_v9 = vpop.f32.mrf.mxu0  ;;  %v3571_v11 = vpop.f32.mrf.mxu1 }
 0x5ba   : > { %5990 = vmatmul.msk.bf16.gmra.mxu0 %vm3326_vm8, %v8841_v13  ;;  %5996 = vmatmul.msk.bf16.gmra.mxu1 %vm3326_vm8, %v8841_v13  ;;  %v4140_v13 = vunpack.c.h.b16 %v6014_v33 }
 0x5bc   : > { %v4156_v15 = vpack.c.b16 %v4140_v13, %v4140_v13  ;;  %v6482_v13 = vld [vmem:[%s9516_s5 + $0x1f4] sm:$0xf] }
 0x5be   : > { %v4193_v34 = vsel %vm3345_vm7, %v4156_v15, 0  ;;  %v6017_v15 = vld [vmem:[%s9516_s5 + $0x1e0] sm:$0xf] }
 0x5bf   : > { %5906 = vmatmul.msk.bf16.gmra.mxu2 %vm3326_vm8, %v8670_v46  ;;  %5912 = vmatmul.msk.bf16.gmra.mxu3 %vm3326_vm8, %v8670_v46  ;;  %v8984_v32 = vpop.f32.mrf.mxu0  ;;  %v8986_v43 = vpop.f32.mrf.mxu1  ;;  %v4139_v46 = vunpack.c.l.b16 %v6014_v33  ;;  %v6025_v33 = vld [vmem:[%s9516_s5 + $0x1f0] sm:$0xf] }
 0x5c0   : > { %4234 = vmatpush.bf16.msrb.mxu3 %v4193_v34 }
 0x5c1   : > { %v4155_v25 = vpack.c.b16 %v4139_v46, %v4139_v46  ;;  %v6483_v46 = vld [vmem:[%s9516_s5 + $0x1f4] sm:$0xf0] }
 0x5c3   : > { %v4190_v19 = vsel %vm3345_vm7, %v4155_v25, 0 }
 0x5c4   : > { %4195 = vmatpush.bf16.msrb.mxu2 %v4190_v19  ;;  %4235 = vmatpush.bf16.msrb.mxu3 %v6070_v2 }
 0x5c7   : > { %v3537_v59 = vpop.f32.mrf.mxu0  ;;  %v3576_v48 = vpop.f32.mrf.mxu1 }
 0x5c8   : > { %4236 = vmatpush.bf16.msrb.mxu3 %v6062_v21 }
 0x5ca   : > { %5991 = vmatmul.msk.bf16.gmra.mxu0 %vm3326_vm8, %v8905_v63  ;;  %5997 = vmatmul.msk.bf16.gmra.mxu1 %vm3326_vm8, %v8905_v63  ;;  %v6057_v63 = vld [vmem:[%s9516_s5 + $0x230] sm:$0xf] }
 0x5cb   : > { %v6058_v12 = vor.u32 %v6491_v52, %v6057_v63 }
 0x5cc   : > { %4237 = vmatpush.bf16.msrb.mxu3 %v6054_v35 }
 0x5cf   : > { %5907 = vmatmul.msk.bf16.gmra.mxu2 %vm3326_vm8, %v8764_v5  ;;  %5913 = vmatmul.msk.bf16.gmra.mxu3 %vm3326_vm8, %v8764_v5  ;;  %v6065_v5 = vld [vmem:[%s9516_s5 + $0x240] sm:$0xf]  ;;  %v9035_v3 = vpop.f32.mrf.mxu0  ;;  %v9037_v17 = vpop.f32.mrf.mxu1 }
 0x5d0   : > { %v6066_v1 = vor.u32 %v6493_v36, %v6065_v5  ;;  %v6481_v5 = vld [vmem:[%s9516_s5 + $0x1e4] sm:$0xf0]  ;;  %v6480_v36 = vld [vmem:[%s9516_s5 + $0x1e4] sm:$0xf] }
 0x5d1   : > { %v6018_v19 = vor.u32 %v6481_v5, %v6017_v15 }
 0x5d2   : > { %v3361_v58 = vpop.f32.mrf.mxu2  ;;  %v3400_v51 = vpop.f32.mrf.mxu3  ;;  %4196 = vmatpush.bf16.msrb.mxu2 %v6066_v1 }
 0x5d3   : > { %v8999_v26 = vadd.f32 %v3532_v9, %v3361_v58  ;;  %v9001_v24 = vadd.f32 %v3571_v11, %v3400_v51  ;;  %v6034_v9 = vor.u32 %v6485_v29, %v6033_v62  ;;  %v6038_v11 = vor.u32 %v6484_v42, %v6035_v20 }
 0x5d6   : > { %4197 = vmatpush.bf16.msrb.mxu2 %v6058_v12 }
 0x5d7   : > { %v3581_v50 = vpop.f32.mrf.mxu1 }
 0x5da   : > { %v9029_v60 = vpop.f32.mrf.mxu2  ;;  %v9031_v45 = vpop.f32.mrf.mxu3  ;;  %5992 = vmatmul.msk.bf16.gmra.mxu0 %vm3326_vm8, %v3867_v7  ;;  %5998 = vmatmul.msk.bf16.gmra.mxu1 %vm3326_vm8, %v3867_v7 }
 0x5db   : > { %4198 = vmatpush.bf16.msrb.mxu2 %v6050_v22  ;;  %v3542_v7 = vpop.f32.mrf.mxu0 }
 0x5df   : > { %5908 = vmatmul.msk.bf16.gmra.mxu2 %vm3326_vm8, %v8874_v10  ;;  %5914 = vmatmul.msk.bf16.gmra.mxu3 %vm3326_vm8, %v8874_v10  ;;  %v6046_v10 = vor.u32 %v6486_v56, %v6043_v54  ;;  %v9117_v55 = vpop.f32.mrf.mxu1 }
 0x5e0   : > { %4199 = vmatpush.bf16.msrb.mxu2 %v6042_v4 }
 0x5e1   : > { %4238 = vmatpush.bf16.msrb.mxu3 %v6046_v10 }
 0x5e2   : > { %v3366_v57 = vpop.f32.mrf.mxu2  ;;  %v3405_v0 = vpop.f32.mrf.mxu3 }
 0x5e3   : > { %v9067_v44 = vadd.f32 %v3537_v59, %v3366_v57  ;;  %v9069_v14 = vadd.f32 %v3576_v48, %v3405_v0  ;;  %v6027_v59 = vld [vmem:[%s9516_s5 + $0x1f8] sm:$0xf0]  ;;  %v6026_v48 = vor.u32 %v6483_v46, %v6025_v33  ;;  %v9115_v34 = vpop.f32.mrf.mxu0 }
 0x5e4   : > { %4200 = vmatpush.bf16.msrb.mxu2 %v6034_v9  ;;  %v6030_v58 = vor.u32 %v6482_v13, %v6027_v59 }
 0x5e5   : > { %4239 = vmatpush.bf16.msrb.mxu3 %v6038_v11 }
 0x5e7   : > { %v3586_v41 = vpop.f32.mrf.mxu1 }
 0x5e8   : > { %4201 = vmatpush.bf16.msrb.mxu2 %v6026_v48 }
 0x5e9   : > { %4240 = vmatpush.bf16.msrb.mxu3 %v6030_v58 }
 0x5ea   : > { %v9095_v51 = vpop.f32.mrf.mxu2  ;;  %v9097_v25 = vpop.f32.mrf.mxu3  ;;  %5993 = vmatmul.msk.bf16.gmra.mxu0 %vm3326_vm8, %v8956_v18  ;;  %5999 = vmatmul.msk.bf16.gmra.mxu1 %vm3326_vm8, %v8956_v18  ;;  %v6022_v18 = vor.u32 %v6480_v36, %v6019_v31 }
 0x5eb   : > { %v3547_v37 = vpop.f32.mrf.mxu0 }
 0x5ec   : > { %4202 = vmatpush.bf16.msrb.mxu2 %v6018_v19 }
 0x5ed   : > { %4241 = vmatpush.bf16.msrb.mxu3 %v6022_v18 }
 0x5ef   : > { %5909 = vmatmul.msk.bf16.gmra.mxu2 %vm3326_vm8, %v8949_v53  ;;  %5915 = vmatmul.msk.bf16.gmra.mxu3 %vm3326_vm8, %v8949_v53  ;;  %v9133_v28 = vpop.f32.mrf.mxu1 }
 0x5f2   : > { %v3371_v1 = vpop.f32.mrf.mxu2  ;;  %v3410_v2 = vpop.f32.mrf.mxu3 }
 0x5f3   : > { %v3543_v63 = vadd.f32 %v3542_v7, %v3371_v1  ;;  %v3582_v52 = vadd.f32 %v3581_v50, %v3410_v2  ;;  %v9131_v47 = vpop.f32.mrf.mxu0  ;;  %v6501_v1 = vld [vmem:[%s9517_s6 + $0x38] sm:$0xff]  ;;  %v6511_v2 = vld [vmem:[%s9517_s6 + $0x88] sm:$0xff] }
 0x5f4   : > { %4408 = vmatpush.bf16.msra.mxu0 %v6501_v1  ;;  %4567 = vmatpush.bf16.msra.mxu2 %v6511_v2 }
 0x5f7   : > { %v3591_v56 = vpop.f32.mrf.mxu1 }
 0x5fa   : > { %v9123_v12 = vpop.f32.mrf.mxu2  ;;  %v9125_v21 = vpop.f32.mrf.mxu3 }
 0x5fb   : > { %v3552_v49 = vpop.f32.mrf.mxu0 }
 0x5ff   : > { %5910 = vmatmul.msk.bf16.gmra.mxu2 %vm3326_vm8, %v8941_v39  ;;  %5916 = vmatmul.msk.bf16.gmra.mxu3 %vm3326_vm8, %v8941_v39  ;;  %v9149_v0 = vpop.f32.mrf.mxu1 }
 0x602   : > { %v3376_v40 = vpop.f32.mrf.mxu2  ;;  %v3415_v53 = vpop.f32.mrf.mxu3 }
 0x603   : > { %v3548_v23 = vadd.f32 %v3547_v37, %v3376_v40  ;;  %v3587_v22 = vadd.f32 %v3586_v41, %v3415_v53  ;;  %v9147_v57 = vpop.f32.mrf.mxu0  ;;  %v6500_v41 = vld [vmem:[%s9517_s6 + $0x30] sm:$0xff]  ;;  %v6510_v40 = vld [vmem:[%s9517_s6 + $0x80] sm:$0xff]  ;;  %v6509_v53 = vld [vmem:[%s9517_s6 + $0x78] sm:$0xff] }
 0x604   : > { %4409 = vmatpush.bf16.msra.mxu0 %v6500_v41  ;;  %4568 = vmatpush.bf16.msra.mxu2 %v6510_v40  ;;  %v6494_v41 = vld [vmem:[%s9517_s6] sm:$0xff] }
 0x605   : > { %v6502_v40 = vld [vmem:[%s9517_s6 + $0x40] sm:$0xff] }
 0x607   : > { %v3596_v42 = vpop.f32.mrf.mxu1 }
 0x608   : > { %4569 = vmatpush.bf16.msra.mxu2 %v6509_v53  ;;  %v6512_v53 = vld [vmem:[%s9517_s6 + $0x90] sm:$0xff] }
 0x60a   : > { %v9135_v35 = vpop.f32.mrf.mxu2  ;;  %v9137_v27 = vpop.f32.mrf.mxu3 }
 0x60f   : > { %6071 = vmatmul.msk.bf16.vlgmr.msrb.gmra.mxu2 %vm3326_vm8, %v8625_v38  ;;  %6077 = vmatmul.msk.bf16.vlgmr.msrb.gmra.mxu3 %vm3326_vm8, %v8625_v38  ;;  %v3557_v38 = vpop.f32.mrf.mxu0 }
 0x612   : > { %v3381_v39 = vpop.f32.mrf.mxu2  ;;  %v3420_v54 = vpop.f32.mrf.mxu3 }
 0x613   : > { %v9143_v4 = vadd.f32 %v3552_v49, %v3381_v39  ;;  %v9145_v10 = vadd.f32 %v3591_v56, %v3420_v54  ;;  %v6498_v49 = vld [vmem:[%s9517_s6 + $0x20] sm:$0xff]  ;;  %v6508_v56 = vld [vmem:[%s9517_s6 + $0x70] sm:$0xff]  ;;  %v6497_v39 = vld [vmem:[%s9517_s6 + $0x18] sm:$0xff] }
 0x614   : > { %4570 = vmatpush.bf16.msra.mxu2 %v6508_v56  ;;  %v6507_v54 = vld [vmem:[%s9517_s6 + $0x68] sm:$0xff] }
 0x618   : > { %4571 = vmatpush.bf16.msra.mxu2 %v6507_v54 }
 0x61a   : > { %v9151_v62 = vpop.f32.mrf.mxu2  ;;  %v9153_v29 = vpop.f32.mrf.mxu3 }
 0x61f   : > { %6072 = vmatmul.msk.bf16.gmra.mxu2 %vm3326_vm8, %v8675_v16  ;;  %6078 = vmatmul.msk.bf16.gmra.mxu3 %vm3326_vm8, %v8675_v16 }
 0x622   : > { %v3386_v20 = vpop.f32.mrf.mxu2  ;;  %v3425_v7 = vpop.f32.mrf.mxu3 }
 0x623   : > { %v9159_v50 = vadd.f32 %v3557_v38, %v3386_v20  ;;  %v9161_v9 = vadd.f32 %v3596_v42, %v3425_v7  ;;  %v9249_v38 = vpop.f32.mrf.mxu0  ;;  %v9251_v42 = vpop.f32.mrf.mxu1 }
 0x624   : > { %9694 = vst [vmem:[#allocation34_spill] sm:$0xff] %v9251_v42 }
 0x62a   : > { %v9163_v11 = vpop.f32.mrf.mxu2  ;;  %v9165_v33 = vpop.f32.mrf.mxu3 }
 0x62b   : > { %9693 = vst [vmem:[#allocation33_spill] sm:$0xff] %v9165_v33  ;;  %v3976_v1 = vpop.f32.mrf.mxu0  ;;  %v4015_v2 = vpop.f32.mrf.mxu1 }
 0x62f   : > { %6073 = vmatmul.msk.bf16.gmra.mxu2 %vm3326_vm8, %v8771_v8  ;;  %6079 = vmatmul.msk.bf16.gmra.mxu3 %vm3326_vm8, %v8771_v8 }
 0x632   : > { %v3736_v46 = vpop.f32.mrf.mxu2  ;;  %v3775_v16 = vpop.f32.mrf.mxu3 }
 0x633   : > { %v9172_v13 = vadd.f32 %v3736_v46, %v8999_v26  ;;  %v9175_v59 = vadd.f32 %v3775_v16, %v9001_v24  ;;  %v4017_v54 = vpop.f32.mrf.mxu1 }
 0x63a   : > { %v9177_v48 = vpop.f32.mrf.mxu2  ;;  %v9179_v58 = vpop.f32.mrf.mxu3 }
 0x63f   : > { %6074 = vmatmul.msk.bf16.gmra.mxu2 %vm3326_vm8, %v8914_v30  ;;  %6080 = vmatmul.msk.bf16.gmra.mxu3 %vm3326_vm8, %v8914_v30 }
 0x642   : > { %v3741_v15 = vpop.f32.mrf.mxu2  ;;  %v3780_v8 = vpop.f32.mrf.mxu3 }
 0x643   : > { %v9186_v5 = vadd.f32 %v3741_v15, %v9067_v44  ;;  %v9189_v26 = vadd.f32 %v3780_v8, %v9069_v14  ;;  %v6496_v15 = vld [vmem:[%s9517_s6 + $0x10] sm:$0xff]  ;;  %v6506_v8 = vld [vmem:[%s9517_s6 + $0x60] sm:$0xff] }
 0x644   : > { %4572 = vmatpush.bf16.msra.mxu2 %v6506_v8 }
 0x64a   : > { %v9191_v24 = vpop.f32.mrf.mxu2  ;;  %v9193_v36 = vpop.f32.mrf.mxu3 }
 0x64f   : > { %6075 = vmatmul.msk.bf16.gmra.mxu2 %vm3326_vm8, %v8953_v61  ;;  %6081 = vmatmul.msk.bf16.gmra.mxu3 %vm3326_vm8, %v8953_v61 }
 0x652   : > { %v3746_v31 = vpop.f32.mrf.mxu2  ;;  %v3785_v30 = vpop.f32.mrf.mxu3 }
 0x653   : > { %v9199_v19 = vadd.f32 %v3746_v31, %v3543_v63  ;;  %v9201_v18 = vadd.f32 %v3785_v30, %v3582_v52  ;;  %v6503_v31 = vld [vmem:[%s9517_s6 + $0x48] sm:$0xff]  ;;  %v6505_v30 = vld [vmem:[%s9517_s6 + $0x58] sm:$0xff] }
 0x654   : > { %4453 = vmatpush.bf16.msra.mxu1 %v6503_v31  ;;  %4573 = vmatpush.bf16.msra.mxu2 %v6505_v30 }
 0x658   : > { %4454 = vmatpush.bf16.msra.mxu1 %v6502_v40  ;;  %v3574_v40 = vadd.f32 %v8986_v43, %v9031_v45 }
 0x65a   : > { %v9203_v44 = vpop.f32.mrf.mxu2  ;;  %v9205_v14 = vpop.f32.mrf.mxu3 }
 0x65f   : > { %6076 = vmatmul.msk.bf16.gmra.mxu2 %vm3326_vm8, %v8943_v6  ;;  %6082 = vmatmul.msk.bf16.gmra.mxu3 %vm3326_vm8, %v8943_v6  ;;  %v6499_v6 = vld [vmem:[%s9517_s6 + $0x28] sm:$0xff] }
 0x660   : > { %4410 = vmatpush.bf16.msra.mxu0 %v6499_v6  ;;  %v6504_v6 = vld [vmem:[%s9517_s6 + $0x50] sm:$0xff] }
 0x661   : > { %4574 = vmatpush.bf16.msra.mxu2 %v6504_v6  ;;  %v3808_v6 = vadd.f32 %v9179_v58, %v3574_v40 }
 0x662   : > { %v3751_v61 = vpop.f32.mrf.mxu2  ;;  %v3790_v63 = vpop.f32.mrf.mxu3 }
 0x663   : > { %v9217_v52 = vadd.f32 %v3751_v61, %v3548_v23  ;;  %v9219_v37 = vadd.f32 %v3790_v63, %v3587_v22 }
 0x664   : > { %4411 = vmatpush.bf16.msra.mxu0 %v6498_v49 }
 0x668   : > { %4412 = vmatpush.bf16.msra.mxu0 %v6497_v39  ;;  %v3978_v39 = vpop.f32.mrf.mxu0 }
 0x66a   : > { %v9233_v23 = vpop.f32.mrf.mxu2  ;;  %v9235_v22 = vpop.f32.mrf.mxu3 }
 0x66c   : > { %4413 = vmatpush.bf16.msra.mxu0 %v6496_v15 }
 0x670   : > { %v3981_v31 = vpop.f32.mrf.mxu0 }
 0x672   : > { %v3756_v20 = vpop.f32.mrf.mxu2  ;;  %v3795_v7 = vpop.f32.mrf.mxu3 }
 0x673   : > { %v9254_v46 = vadd.f32 %v3756_v20, %v9143_v4  ;;  %v9257_v16 = vadd.f32 %v3795_v7, %v9145_v10  ;;  %v6513_v4 = vld [vmem:[%s9517_s6 + $0x98] sm:$0xff]  ;;  %v6495_v10 = vld [vmem:[%s9517_s6 + $0x8] sm:$0xff] }
 0x674   : > { %4612 = vmatpush.bf16.msra.mxu3 %v6513_v4  ;;  %4414 = vmatpush.bf16.msra.mxu0 %v6495_v10  ;;  %v4020_v4 = vpop.f32.mrf.mxu1 }
 0x678   : > { %4415 = vmatpush.bf16.msra.mxu0 %v6494_v41  ;;  %4613 = vmatpush.bf16.msra.mxu3 %v6512_v53  ;;  %v3535_v41 = vadd.f32 %v8984_v32, %v9029_v60 }
 0x67a   : > { %v9277_v61 = vpop.f32.mrf.mxu2  ;;  %v9279_v63 = vpop.f32.mrf.mxu3 }
 0x67c   : > { %v4022_v53 = vpop.f32.mrf.mxu1 }
 0x682   : > { %v3761_v49 = vpop.f32.mrf.mxu2  ;;  %v3800_v56 = vpop.f32.mrf.mxu3 }
 0x683   : > { %v9294_v20 = vadd.f32 %v3761_v49, %v9159_v50  ;;  %v9297_v7 = vadd.f32 %v3800_v56, %v9161_v9  ;;  %v3807_v50 = vadd.f32 %v9177_v48, %v3535_v41  ;;  %v3983_v9 = vpop.f32.mrf.mxu0  ;;  %v4045_v49 = vadd.f32 %v3976_v1, %v9172_v13 }
 0x684   : > { %v4046_v56 = vadd.f32 %v4015_v2, %v9175_v59  ;;  %v4025_v48 = vpop.f32.mrf.mxu1  ;;  %v3540_v1 = vadd.f32 %v9035_v3, %v9095_v51  ;;  %v3579_v2 = vadd.f32 %v9037_v17, %v9097_v25 }
 0x685   : > { %9695 = vst [vmem:[#allocation35_spill] sm:$0xff] %v9294_v20  ;;  %v4048_v20 = vadd.f32 %v4017_v54, %v3808_v6  ;;  %v4050_v54 = vadd.f32 %v4020_v4, %v9189_v26  ;;  %v3545_v26 = vadd.f32 %v9115_v34, %v9123_v12 }
 0x686   : > { %9696 = vst [vmem:[#allocation36_spill] sm:$0xff] %v9297_v7  ;;  %v4047_v7 = vadd.f32 %v3978_v39, %v3807_v50  ;;  %v3811_v39 = vadd.f32 %v9191_v24, %v3540_v1  ;;  %v3584_v24 = vadd.f32 %v9117_v55, %v9125_v21 }
 0x687   : > { %v3815_v4 = vadd.f32 %v9203_v44, %v3545_v26  ;;  %v3550_v44 = vadd.f32 %v9131_v47, %v9135_v35 }
 0x688   : > { %v3816_v6 = vadd.f32 %v9205_v14, %v3584_v24  ;;  %v3589_v14 = vadd.f32 %v9133_v28, %v9137_v27 }
 0x68a   : > { %v9299_v15 = vpop.f32.mrf.mxu2  ;;  %v9301_v8 = vpop.f32.mrf.mxu3 }
 0x68b   : > { %9697 = vst [vmem:[#allocation37_spill] sm:$0xff] %v9299_v15  ;;  %v3986_v13 = vpop.f32.mrf.mxu0 }
 0x68c   : > { %9698 = vst [vmem:[#allocation38_spill] sm:$0xff] %v9301_v8 }
 0x692   : > { %v4204_v10 = vpop.f32.mrf.mxu2  ;;  %v4243_v30 = vpop.f32.mrf.mxu3 }
 0x693   : > { %v4273_v42 = vadd.f32 %v4204_v10, %v4045_v49  ;;  %v4274_v33 = vadd.f32 %v4243_v30, %v4046_v56  ;;  %v3988_v10 = vpop.f32.mrf.mxu0  ;;  %v4027_v30 = vpop.f32.mrf.mxu1 }
 0x694   : > { %v4055_v49 = vadd.f32 %v3988_v10, %v3815_v4  ;;  %v4056_v56 = vadd.f32 %v4027_v30, %v3816_v6  ;;  %v9700_v4 = vld [vmem:[#allocation34_spill] sm:$0xff] }
 0x69a   : > { %v4206_v8 = vpop.f32.mrf.mxu2  ;;  %v4245_v15 = vpop.f32.mrf.mxu3 }
 0x69b   : > { %v4275_v32 = vadd.f32 %v4206_v8, %v4047_v7  ;;  %v4276_v60 = vadd.f32 %v4245_v15, %v4048_v20  ;;  %v4051_v20 = vadd.f32 %v3983_v9, %v3811_v39  ;;  %v4053_v9 = vadd.f32 %v3986_v13, %v9199_v19 }
 0x69c   : > { %v3819_v13 = vadd.f32 %v9233_v23, %v3550_v44  ;;  %v3594_v23 = vadd.f32 %v9149_v0, %v9153_v29 }
 0x69d   : > { %v4297_v43 = vpack.c.bf16 %v4275_v32, %v4273_v42  ;;  %v4298_v45 = vpack.c.bf16 %v4276_v60, %v4274_v33  ;;  %v3812_v33 = vadd.f32 %v9193_v36, %v3579_v2  ;;  %v4049_v42 = vadd.f32 %v3981_v31, %v9186_v5  ;;  %v3991_v36 = vpop.f32.mrf.mxu0  ;;  %v4030_v31 = vpop.f32.mrf.mxu1 }
 0x69e   : > { %v4057_v39 = vadd.f32 %v3991_v36, %v9217_v52 }
 0x69f   : > { %4416 = vmatmul.bf16.vlgmr.msra.gmra.mxu0 %v4297_v43  ;;  %6123 = vmatmul.msk.bf16.vlgmr.msra.gmra.mxu1 %vm4389_vm9, %v4298_v45  ;;  %v4052_v7 = vadd.f32 %v4022_v53, %v3812_v33  ;;  %v4054_v53 = vadd.f32 %v4025_v48, %v9201_v18  ;;  %v3820_v48 = vadd.f32 %v9235_v22, %v3589_v14 }
 0x6a0   : > { %4575 = vmatmul.bf16.vlgmr.msra.gmra.mxu2 %v4297_v43  ;;  %6189 = vmatmul.msk.bf16.vlgmr.msra.gmra.mxu3 %vm4389_vm9, %v4298_v45  ;;  %v4058_v33 = vadd.f32 %v4030_v31, %v9219_v37  ;;  %v3555_v37 = vadd.f32 %v9147_v57, %v9151_v62 }
 0x6a2   : > { %v4209_v59 = vpop.f32.mrf.mxu2  ;;  %v4248_v58 = vpop.f32.mrf.mxu3 }
 0x6a3   : > { %v4277_v41 = vadd.f32 %v4209_v59, %v4049_v42  ;;  %v4278_v40 = vadd.f32 %v4248_v58, %v4050_v54 }
 0x6a5   : > { %v3993_v21 = vpop.f32.mrf.mxu0  ;;  %v4032_v58 = vpop.f32.mrf.mxu1 }
 0x6a6   : > { %v4059_v42 = vadd.f32 %v3993_v21, %v3819_v13  ;;  %v4060_v54 = vadd.f32 %v4032_v58, %v3820_v48 }
 0x6aa   : > { %v4211_v15 = vpop.f32.mrf.mxu2  ;;  %v4250_v8 = vpop.f32.mrf.mxu3 }
 0x6ab   : > { %v4279_v3 = vadd.f32 %v4211_v15, %v4051_v20  ;;  %v4280_v51 = vadd.f32 %v4250_v8, %v4052_v7 }
 0x6ad   : > { %v4299_v50 = vpack.c.bf16 %v4279_v3, %v4277_v41  ;;  %v4300_v17 = vpack.c.bf16 %v4280_v51, %v4278_v40  ;;  %v3996_v1 = vpop.f32.mrf.mxu0  ;;  %v4035_v2 = vpop.f32.mrf.mxu1  ;;  %v3823_v41 = vadd.f32 %v9277_v61, %v3555_v37  ;;  %v3824_v40 = vadd.f32 %v9279_v63, %v3594_v23  ;;  %v9699_v63 = vld [vmem:[#allocation33_spill] sm:$0xff] }
 0x6ae   : > { %v4061_v3 = vadd.f32 %v3996_v1, %v9254_v46  ;;  %v4062_v51 = vadd.f32 %v4035_v2, %v9257_v16  ;;  %v3560_v61 = vadd.f32 %v9249_v38, %v9163_v11  ;;  %v3599_v6 = vadd.f32 %v9700_v4, %v9699_v63 }
 0x6af   : > { %4421 = vmatmul.bf16.gmra.mxu0 %v4299_v50  ;;  %6124 = vmatmul.msk.bf16.gmra.mxu1 %vm4389_vm9, %v4300_v17 }
 0x6b0   : > { %4580 = vmatmul.bf16.gmra.mxu2 %v4299_v50  ;;  %6190 = vmatmul.msk.bf16.gmra.mxu3 %vm4389_vm9, %v4300_v17 }
 0x6b2   : > { %v4214_v25 = vpop.f32.mrf.mxu2  ;;  %v4253_v5 = vpop.f32.mrf.mxu3 }
 0x6b3   : > { %v4281_v43 = vadd.f32 %v4214_v25, %v4053_v9  ;;  %v4282_v45 = vadd.f32 %v4253_v5, %v4054_v53  ;;  %v9701_v9 = vld [vmem:[#allocation37_spill] sm:$0xff] }
 0x6b4   : > { %v3827_v53 = vadd.f32 %v9701_v9, %v3560_v61 }
 0x6b5   : > { %v3998_v22 = vpop.f32.mrf.mxu0  ;;  %v4037_v30 = vpop.f32.mrf.mxu1 }
 0x6b6   : > { %v4063_v50 = vadd.f32 %v3998_v22, %v3823_v41  ;;  %v4064_v17 = vadd.f32 %v4037_v30, %v3824_v40 }
 0x6ba   : > { %v4216_v32 = vpop.f32.mrf.mxu2  ;;  %v4255_v60 = vpop.f32.mrf.mxu3 }
 0x6bb   : > { %v4283_v34 = vadd.f32 %v4216_v32, %v4055_v49  ;;  %v4284_v12 = vadd.f32 %v4255_v60, %v4056_v56  ;;  %v9702_v49 = vld [vmem:[#allocation38_spill] sm:$0xff] }
 0x6bc   : > { %v3828_v56 = vadd.f32 %v9702_v49, %v3599_v6 }
 0x6bd   : > { %v4301_v59 = vpack.c.bf16 %v4283_v34, %v4281_v43  ;;  %v4302_v55 = vpack.c.bf16 %v4284_v12, %v4282_v45  ;;  %v4001_v29 = vpop.f32.mrf.mxu0  ;;  %v4040_v31 = vpop.f32.mrf.mxu1  ;;  %v9703_v43 = vld [vmem:[#allocation35_spill] sm:$0xff]  ;;  %v9704_v34 = vld [vmem:[#allocation36_spill] sm:$0xff] }
 0x6be   : > { %v4065_v45 = vadd.f32 %v4001_v29, %v9703_v43  ;;  %v4066_v12 = vadd.f32 %v4040_v31, %v9704_v34 }
 0x6bf   : > { %4426 = vmatmul.bf16.gmra.mxu0 %v4301_v59  ;;  %6125 = vmatmul.msk.bf16.gmra.mxu1 %vm4389_vm9, %v4302_v55 }
 0x6c0   : > { %4585 = vmatmul.bf16.gmra.mxu2 %v4301_v59  ;;  %6191 = vmatmul.msk.bf16.gmra.mxu3 %vm4389_vm9, %v4302_v55 }
 0x6c2   : > { %v4219_v19 = vpop.f32.mrf.mxu2  ;;  %v4258_v18 = vpop.f32.mrf.mxu3 }
 0x6c3   : > { %v4285_v15 = vadd.f32 %v4219_v19, %v4057_v39  ;;  %v4286_v8 = vadd.f32 %v4258_v18, %v4058_v33 }
 0x6c5   : > { %v4003_v32 = vpop.f32.mrf.mxu0  ;;  %v4042_v60 = vpop.f32.mrf.mxu1 }
 0x6c6   : > { %v4067_v59 = vadd.f32 %v4003_v32, %v3827_v53  ;;  %v4068_v55 = vadd.f32 %v4042_v60, %v3828_v56 }
 0x6ca   : > { %v4221_v20 = vpop.f32.mrf.mxu2  ;;  %v4260_v7 = vpop.f32.mrf.mxu3 }
 0x6cb   : > { %v4287_v47 = vadd.f32 %v4221_v20, %v4059_v42  ;;  %v4288_v35 = vadd.f32 %v4260_v7, %v4060_v54 }
 0x6cd   : > { %v4303_v10 = vpack.c.bf16 %v4287_v47, %v4285_v15  ;;  %v4304_v28 = vpack.c.bf16 %v4288_v35, %v4286_v8 }
 0x6cf   : > { %4431 = vmatmul.bf16.gmra.mxu0 %v4303_v10  ;;  %6126 = vmatmul.msk.bf16.gmra.mxu1 %vm4389_vm9, %v4304_v28 }
 0x6d0   : > { %4590 = vmatmul.bf16.gmra.mxu2 %v4303_v10  ;;  %6192 = vmatmul.msk.bf16.gmra.mxu3 %vm4389_vm9, %v4304_v28 }
 0x6d2   : > { %v4224_v27 = vpop.f32.mrf.mxu2  ;;  %v4263_v52 = vpop.f32.mrf.mxu3 }
 0x6d3   : > { %v4289_v26 = vadd.f32 %v4224_v27, %v4061_v3  ;;  %v4290_v24 = vadd.f32 %v4263_v52, %v4062_v51 }
 0x6da   : > { %v4226_v25 = vpop.f32.mrf.mxu2  ;;  %v4265_v5 = vpop.f32.mrf.mxu3 }
 0x6db   : > { %v4291_v57 = vadd.f32 %v4226_v25, %v4063_v50  ;;  %v4292_v62 = vadd.f32 %v4265_v5, %v4064_v17 }
 0x6dd   : > { %v4305_v36 = vpack.c.bf16 %v4291_v57, %v4289_v26  ;;  %v4306_v0 = vpack.c.bf16 %v4292_v62, %v4290_v24 }
 0x6df   : > { %4436 = vmatmul.bf16.gmra.mxu0 %v4305_v36  ;;  %6127 = vmatmul.msk.bf16.gmra.mxu1 %vm4389_vm9, %v4306_v0 }
 0x6e0   : > { %4595 = vmatmul.bf16.gmra.mxu2 %v4305_v36  ;;  %6193 = vmatmul.msk.bf16.gmra.mxu3 %vm4389_vm9, %v4306_v0 }
 0x6e2   : > { %v4229_v46 = vpop.f32.mrf.mxu2  ;;  %v4268_v16 = vpop.f32.mrf.mxu3 }
 0x6e3   : > { %v4293_v19 = vadd.f32 %v4229_v46, %v4065_v45  ;;  %v4294_v18 = vadd.f32 %v4268_v16, %v4066_v12 }
 0x6ea   : > { %v4231_v21 = vpop.f32.mrf.mxu2  ;;  %v4270_v58 = vpop.f32.mrf.mxu3 }
 0x6eb   : > { %v4295_v11 = vadd.f32 %v4231_v21, %v4067_v59  ;;  %v4296_v38 = vadd.f32 %v4270_v58, %v4068_v55 }
 0x6ed   : > { %v4307_v44 = vpack.c.bf16 %v4295_v11, %v4293_v19  ;;  %v4308_v14 = vpack.c.bf16 %v4296_v38, %v4294_v18 }
 0x6ef   : > { %4441 = vmatmul.bf16.gmra.mxu0 %v4307_v44  ;;  %6128 = vmatmul.msk.bf16.gmra.mxu1 %vm4389_vm9, %v4308_v14 }
 0x6f0   : > { %4600 = vmatmul.bf16.gmra.mxu2 %v4307_v44  ;;  %6194 = vmatmul.msk.bf16.gmra.mxu3 %vm4389_vm9, %v4308_v14 }
 0x71c   : > { %v4417_v13 = vpop.f32.mrf.mxu0  ;;  %v4456_v48 = vpop.f32.mrf.mxu1 }
 0x71d   : > { %v4457_v1 = vadd.f32 %v4456_v48, %v4417_v13 }
 0x723   : > { %v4576_v2 = vpop.f32.mrf.mxu2  ;;  %v4615_v39 = vpop.f32.mrf.mxu3 }
 0x724   : > { %v4616_v33 = vadd.f32 %v4615_v39, %v4576_v2  ;;  %v4419_v42 = vpop.f32.mrf.mxu0  ;;  %v4458_v54 = vpop.f32.mrf.mxu1 }
 0x725   : > { %v4459_v20 = vadd.f32 %v4458_v54, %v4419_v42 }
 0x726   : > { %v4645_v7 = vmax.f32 %v4457_v1, %v4616_v33 }
 0x72b   : > { %v4578_v15 = vpop.f32.mrf.mxu2  ;;  %v4617_v8 = vpop.f32.mrf.mxu3 }
 0x72c   : > { %v4618_v47 = vadd.f32 %v4617_v8, %v4578_v15  ;;  %v4422_v35 = vpop.f32.mrf.mxu0  ;;  %v4461_v10 = vpop.f32.mrf.mxu1 }
 0x72d   : > { %v4462_v28 = vadd.f32 %v4461_v10, %v4422_v35 }
 0x72e   : > { %v4646_v27 = vmax.f32 %v4459_v20, %v4618_v47 }
 0x730   : > { %v9363_v52 = vpack.c.bf16 %v4646_v27, %v4645_v7 }
 0x733   : > { %v4581_v37 = vpop.f32.mrf.mxu2  ;;  %v4620_v23 = vpop.f32.mrf.mxu3 }
 0x734   : > { %v4621_v22 = vadd.f32 %v4620_v23, %v4581_v37  ;;  %v4424_v30 = vpop.f32.mrf.mxu0  ;;  %v4463_v41 = vpop.f32.mrf.mxu1 }
 0x735   : > { %v4464_v40 = vadd.f32 %v4463_v41, %v4424_v30 }
 0x736   : > { %v4647_v3 = vmax.f32 %v4462_v28, %v4621_v22 }
 0x73b   : > { %v4583_v51 = vpop.f32.mrf.mxu2  ;;  %v4622_v50 = vpop.f32.mrf.mxu3 }
 0x73c   : > { %v4623_v17 = vadd.f32 %v4622_v50, %v4583_v51  ;;  %v4427_v25 = vpop.f32.mrf.mxu0  ;;  %v4466_v5 = vpop.f32.mrf.mxu1 }
 0x73d   : > { %v9365_v26 = vadd.f32 %v4466_v5, %v4427_v25  ;;  %v6514_v25 = vld [vmem:[%s9518_s7] sm:$0xff]  ;;  %v6516_v5 = vld [vmem:[%s9518_s7 + $0x10] sm:$0xff] }
 0x73e   : > { %v4648_v24 = vmax.f32 %v4464_v40, %v4623_v17 }
 0x740   : > { %v9367_v57 = vpack.c.bf16 %v4648_v24, %v4647_v3  ;;  %v6517_v24 = vld [vmem:[%s9518_s7 + $0x18] sm:$0xff] }
 0x743   : > { %v4586_v62 = vpop.f32.mrf.mxu2  ;;  %v4625_v36 = vpop.f32.mrf.mxu3 }
 0x744   : > { %v4626_v0 = vadd.f32 %v4625_v36, %v4586_v62  ;;  %v4429_v29 = vpop.f32.mrf.mxu0  ;;  %v4468_v31 = vpop.f32.mrf.mxu1  ;;  %v6525_v62 = vld [vmem:[%s9520_s9 + $0x38] sm:$0xff] }
 0x745   : > { %v4469_v40 = vadd.f32 %v4468_v31, %v4429_v29  ;;  %v6537_v36 = vld [vmem:[%s9520_s9 + $0x98] sm:$0xff]  ;;  %v6523_v29 = vld [vmem:[%s9520_s9 + $0x28] sm:$0xff]  ;;  %v6522_v31 = vld [vmem:[%s9520_s9 + $0x20] sm:$0xff] }
 0x746   : > { %v4649_v46 = vmax.f32 %v9365_v26, %v4626_v0  ;;  %v6515_v26 = vld [vmem:[%s9518_s7 + $0x8] sm:$0xff]  ;;  %v6524_v0 = vld [vmem:[%s9520_s9 + $0x30] sm:$0xff] }
 0x74b   : > { %v4588_v16 = vpop.f32.mrf.mxu2  ;;  %v4627_v61 = vpop.f32.mrf.mxu3 }
 0x74c   : > { %v4432_v63 = vpop.f32.mrf.mxu0  ;;  %v4471_v4 = vpop.f32.mrf.mxu1  ;;  %v4628_v23 = vadd.f32 %v4627_v61, %v4588_v16  ;;  %v6521_v16 = vld [vmem:[%s9520_s9 + $0x18] sm:$0xff]  ;;  %v6535_v61 = vld [vmem:[%s9520_s9 + $0x88] sm:$0xff] }
 0x74d   : > { %v4472_v22 = vadd.f32 %v4471_v4, %v4432_v63  ;;  %v6520_v63 = vld [vmem:[%s9520_s9 + $0x10] sm:$0xff]  ;;  %v6534_v4 = vld [vmem:[%s9520_s9 + $0x80] sm:$0xff] }
 0x74e   : > { %v4650_v51 = vmax.f32 %v4469_v40, %v4628_v23 }
 0x750   : > { %v4659_v17 = vpack.c.bf16 %v4650_v51, %v4649_v46  ;;  %v6536_v46 = vld [vmem:[%s9520_s9 + $0x90] sm:$0xff] }
 0x753   : > { %v4591_v6 = vpop.f32.mrf.mxu2  ;;  %v4630_v9 = vpop.f32.mrf.mxu3 }
 0x754   : > { %v4434_v53 = vpop.f32.mrf.mxu0  ;;  %v4473_v49 = vpop.f32.mrf.mxu1  ;;  %v4631_v28 = vadd.f32 %v4630_v9, %v4591_v6 }
 0x755   : > { %v4474_v27 = vadd.f32 %v4473_v49, %v4434_v53  ;;  %v6519_v53 = vld [vmem:[%s9520_s9 + $0x8] sm:$0xff]  ;;  %v6533_v49 = vld [vmem:[%s9520_s9 + $0x78] sm:$0xff] }
 0x756   : > { %v4651_v3 = vmax.f32 %v4472_v22, %v4631_v28  ;;  %v6539_v22 = vld [vmem:[%s9522_s11 + $0x8] sm:$0xff] }
 0x75b   : > { %v4593_v56 = vpop.f32.mrf.mxu2  ;;  %v4632_v32 = vpop.f32.mrf.mxu3 }
 0x75c   : > { %v4437_v60 = vpop.f32.mrf.mxu0  ;;  %v4476_v43 = vpop.f32.mrf.mxu1  ;;  %v4633_v8 = vadd.f32 %v4632_v32, %v4593_v56  ;;  %v6532_v56 = vld [vmem:[%s9520_s9 + $0x70] sm:$0xff]  ;;  %v6518_v32 = vld [vmem:[%s9520_s9] sm:$0xff] }
 0x75d   : > { %v4477_v47 = vadd.f32 %v4476_v43, %v4437_v60  ;;  %v6531_v60 = vld [vmem:[%s9520_s9 + $0x68] sm:$0xff] }
 0x75e   : > { %v4652_v30 = vmax.f32 %v4474_v27, %v4633_v8 }
 0x760   : > { %v4660_v50 = vpack.c.bf16 %v4652_v30, %v4651_v3  ;;  %v6538_v30 = vld [vmem:[%s9522_s11] sm:$0xff] }
 0x763   : > { %v4596_v45 = vpop.f32.mrf.mxu2  ;;  %v4635_v34 = vpop.f32.mrf.mxu3 }
 0x764   : > { %v4439_v12 = vpop.f32.mrf.mxu0  ;;  %v4478_v59 = vpop.f32.mrf.mxu1  ;;  %v4636_v20 = vadd.f32 %v4635_v34, %v4596_v45  ;;  %v6581_v34 = vld [vmem:[%s9519_s8] ss:$0 sm:$0xff] }
 0x765   : > { %v4479_v7 = vadd.f32 %v4478_v59, %v4439_v12  ;;  %v6530_v59 = vld [vmem:[%s9520_s9 + $0x60] sm:$0xff] }
 0x766   : > { %v4653_v37 = vmax.f32 %v4477_v47, %v4636_v20  ;;  %v5007_v47 = vld [vmem:[%s9522_s11 + $0x18] sm:$0x1] }
 0x76b   : > { %v4598_v55 = vpop.f32.mrf.mxu2  ;;  %v4637_v21 = vpop.f32.mrf.mxu3 }
 0x76c   : > { %v4442_v58 = vpop.f32.mrf.mxu0  ;;  %v4481_v19 = vpop.f32.mrf.mxu1  ;;  %v4638_v33 = vadd.f32 %v4637_v21, %v4598_v55 }
 0x76d   : > { %v4482_v1 = vadd.f32 %v4481_v19, %v4442_v58  ;;  %v6529_v58 = vld [vmem:[%s9520_s9 + $0x58] sm:$0xff] }
 0x76e   : > { %v4654_v35 = vmax.f32 %v4479_v7, %v4638_v33 }
 0x770   : > { %v4661_v41 = vpack.c.bf16 %v4654_v35, %v4653_v37  ;;  %v5025_v35 = vunpack.c.l.b16 %v5007_v47  ;;  %v6540_v37 = vld [vmem:[%s9522_s11 + $0x10] sm:$0xff] }
 0x773   : > { %v4601_v18 = vpop.f32.mrf.mxu2  ;;  %v4640_v11 = vpop.f32.mrf.mxu3 }
 0x774   : > { %v4444_v38 = vpop.f32.mrf.mxu0  ;;  %v4483_v44 = vpop.f32.mrf.mxu1  ;;  %v4641_v14 = vadd.f32 %v4640_v11, %v4601_v18 }
 0x775   : > { %v4484_v2 = vadd.f32 %v4483_v44, %v4444_v38  ;;  %v6528_v38 = vld [vmem:[%s9520_s9 + $0x50] sm:$0xff] }
 0x776   : > { %v4655_v42 = vmax.f32 %v4482_v1, %v4641_v14 }
 0x77b   : > { %v4603_v13 = vpop.f32.mrf.mxu2  ;;  %v4642_v48 = vpop.f32.mrf.mxu3 }
 0x77c   : > { %v4643_v39 = vadd.f32 %v4642_v48, %v4603_v13 }
 0x77e   : > { %v4656_v54 = vmax.f32 %v4484_v2, %v4643_v39 }
 0x780   : > { %v4662_v15 = vpack.c.bf16 %v4656_v54, %v4655_v42 }
 0x782   : > { %v4684_v10 = vsel %vm750_vm0, %v4662_v15, 0 }
 0x783   : > { %4688 = vmatpush.bf16.msrb.mxu0 %v4684_v10  ;;  %4728 = vmatpush.bf16.msrb.mxu1 %v4684_v10  ;;  %v5029_v10 = vpack.c.b16 %v5025_v35, %v5025_v35 }
 0x785   : > { %v5039_v28 = vsel %vm5037_vm11, %v5029_v10, 0 }
 0x786   : > { %5045 = vmatpush.bf16.msrb.mxu2 %v5039_v28 }
 0x787   : > { %4689 = vmatpush.bf16.msrb.mxu0 %v4661_v41  ;;  %4729 = vmatpush.bf16.msrb.mxu1 %v4661_v41 }
 0x78a   : > { %5046 = vmatpush.bf16.msrb.mxu2 %v6540_v37 }
 0x78b   : > { %4690 = vmatpush.bf16.msrb.mxu0 %v4660_v50  ;;  %4730 = vmatpush.bf16.msrb.mxu1 %v4660_v50 }
 0x78e   : > { %5047 = vmatpush.bf16.msrb.mxu2 %v6539_v22 }
 0x78f   : > { %4691 = vmatpush.bf16.msrb.mxu0 %v4659_v17  ;;  %4731 = vmatpush.bf16.msrb.mxu1 %v4659_v17 }
 0x792   : > { %5048 = vmatpush.bf16.msrb.mxu2 %v6538_v30 }
 0x793   : > { %4692 = vmatpush.bf16.msrb.mxu0 %v9367_v57  ;;  %4732 = vmatpush.bf16.msrb.mxu1 %v9367_v57  ;;  %v6526_v57 = vld [vmem:[%s9520_s9 + $0x40] sm:$0xff] }
 0x797   : > { %4693 = vmatpush.bf16.msrb.mxu0 %v9363_v52  ;;  %4733 = vmatpush.bf16.msrb.mxu1 %v9363_v52  ;;  %v6527_v52 = vld [vmem:[%s9520_s9 + $0x48] sm:$0xff] }
 0x79a   : > { %6203 = vmatmul.msk.bf16.vlgmr.msrb.gmra.mxu0 %vm2828_vm6, %v6514_v25  ;;  %6217 = vmatmul.msk.bf16.vlgmr.msrb.gmra.mxu1 %vm2828_vm6, %v6516_v5  ;;  %v6582_v5 = vld [vmem:[%s9521_s10] ss:$0 sm:$0xff] }
 0x79b   : > { %4823 = vmatpush.bf16.msra.mxu0 %v6527_v52  ;;  %4891 = vmatpush.bf16.msra.mxu1 %v6537_v36  ;;  %v6583_v36 = vld [vmem:[%s9523_s12] ss:$0 sm:$0xff] }
 0x79f   : > { %4824 = vmatpush.bf16.msra.mxu0 %v6526_v57  ;;  %4892 = vmatpush.bf16.msra.mxu1 %v6536_v46 }
 0x7a3   : > { %4825 = vmatpush.bf16.msra.mxu0 %v6525_v62  ;;  %4893 = vmatpush.bf16.msra.mxu1 %v6535_v61 }
 0x7a7   : > { %4826 = vmatpush.bf16.msra.mxu0 %v6524_v0  ;;  %4894 = vmatpush.bf16.msra.mxu1 %v6534_v4 }
 0x7aa   : > { %6204 = vmatmul.msk.bf16.gmra.mxu0 %vm2828_vm6, %v6515_v26  ;;  %6218 = vmatmul.msk.bf16.gmra.mxu1 %vm2828_vm6, %v6517_v24 }
 0x7ab   : > { %4827 = vmatpush.bf16.msra.mxu0 %v6523_v29  ;;  %4895 = vmatpush.bf16.msra.mxu1 %v6533_v49 }
 0x7af   : > { %4937 = vmatpush.bf16.msrb.mxu0 %v6522_v31  ;;  %4983 = vmatpush.bf16.msrb.mxu1 %v6532_v56 }
 0x7b3   : > { %4938 = vmatpush.bf16.msrb.mxu0 %v6521_v16  ;;  %4984 = vmatpush.bf16.msrb.mxu1 %v6531_v60 }
 0x7b7   : > { %4939 = vmatpush.bf16.msrb.mxu0 %v6520_v63  ;;  %4985 = vmatpush.bf16.msrb.mxu1 %v6530_v59 }
 0x7bb   : > { %4940 = vmatpush.bf16.msrb.mxu0 %v6519_v53  ;;  %4986 = vmatpush.bf16.msrb.mxu1 %v6529_v58 }
 0x7bf   : > { %4941 = vmatpush.bf16.msrb.mxu0 %v6518_v32  ;;  %4987 = vmatpush.bf16.msrb.mxu1 %v6528_v38 }
 0x817   : > { %v4695_v6 = vpop.f32.mrf.mxu0  ;;  %v4735_v9 = vpop.f32.mrf.mxu1 }
 0x818   : > { %v4745_v44 = vmax.f32 %v4695_v6, %v4735_v9 }
 0x81a   : > { %v4753_v14 = vadd.f32 %v6581_v34, %v4745_v44 }
 0x81c   : > { %v4757_v2 = vmax.f32 %v4753_v14, 0.0 }
 0x81e   : > { %v4761_v42 = vpack.c.bf16 %v4757_v2, %v4757_v2 }
 0x81f   : > { %v4697_v43 = vpop.f32.mrf.mxu0  ;;  %v4737_v45 = vpop.f32.mrf.mxu1 }
 0x820   : > { %v4746_v12 = vmax.f32 %v4697_v43, %v4737_v45 }
 0x822   : > { %v4754_v55 = vadd.f32 %v6581_v34, %v4746_v12 }
 0x824   : > { %v4758_v21 = vmax.f32 %v4754_v55, 0.0 }
 0x826   : > { %v4762_v19 = vpack.c.bf16 %v4758_v21, %v4758_v21 }
 0x827   : > { %v4700_v18 = vpop.f32.mrf.mxu0  ;;  %v4740_v11 = vpop.f32.mrf.mxu1 }
 0x828   : > { %6249 = vmatmul.msk.bf16.vlgmr.msra.gmra.mxu0 %vm4816_vm10, %v4762_v19  ;;  %v4747_v20 = vmax.f32 %v4700_v18, %v4740_v11 }
 0x82a   : > { %v4755_v7 = vadd.f32 %v6581_v34, %v4747_v20 }
 0x82c   : > { %v4759_v15 = vmax.f32 %v4755_v7, 0.0 }
 0x82e   : > { %v4763_v8 = vpack.c.bf16 %v4759_v15, %v4759_v15 }
 0x82f   : > { %v4702_v13 = vpop.f32.mrf.mxu0  ;;  %v4742_v48 = vpop.f32.mrf.mxu1 }
 0x830   : > { %v4748_v1 = vmax.f32 %v4702_v13, %v4742_v48 }
 0x832   : > { %v4756_v39 = vadd.f32 %v6581_v34, %v4748_v1 }
 0x834   : > { %v4760_v33 = vmax.f32 %v4756_v39, 0.0 }
 0x836   : > { %v4764_v54 = vpack.c.bf16 %v4760_v33, %v4760_v33 }
 0x838   : > { %6290 = vmatmul.msk.bf16.vlgmr.msra.gmra.mxu1 %vm4816_vm10, %v4764_v54  ;;  %6311 = vmatmul.msk.bf16.vlgmr.msrb.gmra.mxu0 %vm4816_vm10, %v4761_v42 }
 0x848   : > { %6332 = vmatmul.msk.bf16.vlgmr.msrb.gmra.mxu1 %vm4816_vm10, %v4763_v8 }
 0x8a5   : > { %v4829_v27 = vpop.f32.mrf.mxu0 }
 0x8ad   : > { %v4831_v23 = vpop.f32.mrf.mxu0 }
 0x8b5   : > { %v4897_v41 = vpop.f32.mrf.mxu1  ;;  %v4943_v40 = vpop.f32.mrf.mxu0 }
 0x8b6   : > { %v4944_v17 = vadd.f32 %v4943_v40, %v4829_v27 }
 0x8bd   : > { %v4899_v3 = vpop.f32.mrf.mxu1  ;;  %v4945_v51 = vpop.f32.mrf.mxu0 }
 0x8c5   : > { %v4989_v50 = vpop.f32.mrf.mxu1 }
 0x8c6   : > { %v4990_v25 = vadd.f32 %v4989_v50, %v4897_v41 }
 0x8c8   : > { %v4993_v26 = vadd.f32 %v4990_v25, %v4944_v17 }
 0x8ca   : > { %v4998_v24 = vadd.f32 %v6582_v5, %v4993_v26 }
 0x8cc   : > { %v4999_v52 = vmax.f32 %v4998_v24, 0.0 }
 0x8cd   : > { %v4991_v57 = vpop.f32.mrf.mxu1 }
 0x8ce   : > { %v5000_v62 = vpack.c.bf16 %v4999_v52, %v4999_v52 }
 0x8d0   : > { %6345 = vmatmul.msk.bf16.vlgmr.msrb.gmra.mxu2 %vm5033_vm12, %v5000_v62 }
 0x953   : > { %v5050_v0 = vpop.f32.mrf.mxu2 }
 0x954   : > { %v5051_v29 = vadd.f32 %v6583_v36, %v5050_v0 }
 0x956   : > { %v5055_v31 = vsel %vm5054_vm13, %v5051_v29, -inf }
 0x957   : > { %5056 = vmax.xlane.f32.xlu0 %v5055_v31 }
 0x95b   : > { %v5052_v46 = vpop.f32.mrf.mxu2 }
 0x9ca   : > { %v5057_v16 = vpop.xlane.xlu0 %5056 }
 0x9cb   : > { %v5058_v61 = vsub.f32 %v5051_v29, %v5057_v16 }
 0x9cd   : > { %v5059_v63 = vmul.f32 1.442695, %v5058_v61 }
 0x9cf   : > { %6584 = vpow2.f32 %v5059_v63 }
 0x9d5   : > { %v6585_v4 = vpop.eup %6584 }
 0x9d6   : > { %v5061_v6 = vsel %vm5054_vm13, %v6585_v4, 0.0 }
 0x9d7   : > { %5062 = vadd.xlane.f32.xlu0 %v5061_v6 }
 0xa4a   : > { %v5063_v9 = vpop.xlane.xlu0 %5062 }
 0xa4b   : > { %6586 = vlog2.f32 %v5063_v9 }
 0xa51   : > { %v6587_v53 = vpop.eup %6586 }
 0xa52   : > { %v5065_v49 = vmul.f32 0.6931472, %v6587_v53 }
 0xa54   : > { %v5066_v56 = vsub.f32 %v5058_v61, %v5065_v49 }
 0xa56   : > { %5067 = vst.msk [vmem:[%s434_s15] sm:$0xff] %vm5054_vm13, %v5066_v56 }
 0xa57   : > { %6615 = shalt.err (!%p6612_p3)
}
 0xa58   : > { %6541 = dma.vmem_to_hbm [thread:$0]  (%p6760_p5), %s5082_s27, 128, %s5084_s14, %s5069_s16  }
 0xa59 PF: > { %p6547_p4 = scmp.ge.s32.totalorder %s6650_s28, 2  ;;  %s5095_s17 = sand.u32 1, %s6638_s25  }
 0xa5a   : > { %s5096_s15 = scalar_lea.sflag [#allocation3], %s5095_s17 }
 0xa5b   : > { %p6544_p7 = pnand %p6547_p4, %p6764_p6 }
 0xa5d   : > { %p6545_p8 = pneg %p6544_p7 }
 0xa5f   : > { %6633 = dma.done.wait (%p6545_p8), %s5096_s15, 128  }
 0xa60   : > { %6635 = vsyncadd (%p6545_p8), %s5096_s15, 4294967168  ;;  %s9706_s28 = sld [smem:[#allocation6_spill]]  ;;  %s9709_s25 = smov %s6642_s26 }
 0xa61   : > { %s9707_s20 = sld [smem:[#allocation5_spill]] }
 0xa62   : > { %s9708_s27 = sld [smem:[#allocation7_spill]] }
 0xa66   : > { %p23_p9 = scmp.ge.s32.totalorder %s9706_s28, 4  }
 0xa67   : > { %s9710_s26 = smov %s9707_s20 }
 0xa68   :  { %25 = sbr.rel (!%p23_p9) target bundleno = 3 (0x3), region = 122 }
 0xa6d   :  { %5102 = vsyncpa [#allocation3], 1 }
 0xa6e   :  { %5104 = vsyncpa [#allocation3 + $0x1], 1 }

</bundles_post_ra>
